<compile_context>
chip_gen: v6e
topology: v6e:2x2x1
jax: 0.10.0
libtpu: 0.0.40
codegen_flags: <defaults>
</compile_context>

<pallas_src>
import functools

import numpy as np

import jax
import jax.numpy as jnp
from jax.experimental import pallas as pl
from jax.experimental.pallas import tpu as pltpu


CP = 128                        # padded channel / class width (lane-dense)
VMEM_LIMIT = 32 * 1024 * 1024   # safe on v5e/v6e (128 MiB) and v7x (64 MiB)


# ----------------------------------------------------------------------------
# Kernels
# ----------------------------------------------------------------------------
def _conv1_relu_pool_kernel(p_ref, w_ref, b_ref, o_ref):
    """conv1 (packed-K matmul) + bias + ReLU + 2x2 max-pool for a batch block.

    p_ref: (nb, 576, 32)  bf16 im2col patches, rows ordered (h%2, w%2, h//2, w//2)
    w_ref: (32, 128)      bf16 weights (25 taps padded to 32, Cout 20 -> 128)
    b_ref: (1, 128)       f32 bias
    o_ref: (nb, 144, 32)  bf16 pooled output, rows (h//2)*12 + (w//2), 20 live ch.
    """
    nb = p_ref.shape[0]
    lhs = p_ref[...].reshape(nb * 576, 32)                       # bf16, lane-packed K
    acc = jnp.dot(lhs, w_ref[...], preferred_element_type=jnp.float32)
    acc = jnp.maximum(acc + b_ref[...], 0.0)                     # bias + ReLU in f32

    # Pool: row order is (h-parity, w-parity, hp, wp) so the 2x2 max is three
    # elementwise maxima over outer-dim slices (pure VPU, no MXU, no strides).
    acc = acc.reshape(nb, 2, 2, 144, CP)
    pooled = jnp.maximum(jnp.maximum(acc[:, 0, 0], acc[:, 0, 1]),
                         jnp.maximum(acc[:, 1, 0], acc[:, 1, 1]))  # (nb, 144, 128)

    o_ref[...] = pooled[:, :, :32].astype(o_ref.dtype)


def _conv2_fc_kernel(p_ref, w2_ref, b2_ref, w3_ref, b3_ref, w4_ref, b4_ref,
                     o_ref, p2_scr, lhs_scr):
    """Fused conv2 + bias + ReLU + 2x2 pool + fc1 + ReLU + fc2 for a batch block.

    p_ref:  (nb, 64, 800)  bf16 conv2 im2col patches (K = 25 taps * 32 ch)
    w2_ref: (800, 128)     bf16 conv2 weights (50 live output channels)
    w3_ref: (2048, 512)    bf16 fc1 weights, rows in padded-HWC order
    w4_ref: (512, 128)     bf16 fc2 weights (10 live classes)
    o_ref:  (nb, 1, 128)   f32 logits (classes padded to 128)
    p2_scr: (nb, 16, 128)  bf16 scratch, pooled conv2 activations
    lhs_scr:(nb, 2048)     bf16 scratch, assembled fc1 LHS
    """
    nb = p_ref.shape[0]

    # conv2: single packed-K matmul, f32 accumulate, f32 epilogue.
    lhs2 = p_ref[...].reshape(nb * 64, 800)
    a2 = jnp.dot(lhs2, w2_ref[...], preferred_element_type=jnp.float32)
    a2 = jnp.maximum(a2 + b2_ref[...], 0.0)

    # 2x2 max-pool via parity-ordered rows (outer-dim maxima only).
    a2 = a2.reshape(nb, 2, 2, 16, CP)
    pooled = jnp.maximum(jnp.maximum(a2[:, 0, 0], a2[:, 0, 1]),
                         jnp.maximum(a2[:, 1, 0], a2[:, 1, 1]))   # (nb, 16, 128) f32

    # Flatten (pos, channel) -> 2048 lanes via aligned 128-lane slot copies.
    p2_scr[...] = pooled.astype(jnp.bfloat16)
    for pos in range(16):
        lhs_scr[:, pos * CP:(pos + 1) * CP] = p2_scr[:, pos, :]

    # fc1 (+ReLU) and fc2, weights fully VMEM-resident, f32 accumulation.
    h = jnp.dot(lhs_scr[...], w3_ref[...], preferred_element_type=jnp.float32)
    h = jnp.maximum(h + b3_ref[...], 0.0).astype(jnp.bfloat16)   # (nb, 512)
    out = jnp.dot(h, w4_ref[...], preferred_element_type=jnp.float32) + b4_ref[...]
    o_ref[:, 0, :] = out.astype(o_ref.dtype)


# ----------------------------------------------------------------------------
# pallas_call wrappers
# ----------------------------------------------------------------------------
def _pick_nb(batch, pref):
    """Largest batch block <= pref dividing `batch`, keeping grid >= 2 if possible
    (so the 'parallel' axis still splits across v7x's two TensorCores)."""
    best = 1
    for cand in range(1, pref + 1):
        if batch % cand == 0 and batch // cand >= 2:
            best = cand
    return best


def conv1_relu_pool(patches, w1, b1):
    """patches: (B, 576, 32) bf16 -> pooled conv1 activations (B, 144, 32) bf16."""
    B = patches.shape[0]
    nb = _pick_nb(B, 2)
    flops = 2 * B * 576 * 32 * CP
    bytes_acc = (patches.size * patches.dtype.itemsize
                 + w1.size * w1.dtype.itemsize + b1.size * 4
                 + B * 144 * 32 * 2)
    return pl.pallas_call(
        _conv1_relu_pool_kernel,
        grid_spec=pltpu.PrefetchScalarGridSpec(
            num_scalar_prefetch=0,
            grid=(B // nb,),
            in_specs=[
                pl.BlockSpec((nb, 576, 32), lambda i: (i, 0, 0)),
                pl.BlockSpec((32, CP), lambda i: (0, 0)),
                pl.BlockSpec((1, CP), lambda i: (0, 0)),
            ],
            out_specs=pl.BlockSpec((nb, 144, 32), lambda i: (i, 0, 0)),
        ),
        out_shape=jax.ShapeDtypeStruct((B, 144, 32), jnp.bfloat16),
        compiler_params=pltpu.CompilerParams(
            dimension_semantics=("parallel",),
            vmem_limit_bytes=VMEM_LIMIT),
        cost_estimate=pl.CostEstimate(flops=flops, transcendentals=0,
                                      bytes_accessed=bytes_acc),
    )(patches, w1, b1)


def conv2_fc(pat2, w2, b2, w3, b3, w4, b4):
    """pat2: (B, 64, 800) bf16 conv2 patches -> logits (B, 128) f32 (10 live)."""
    B = pat2.shape[0]
    nb = _pick_nb(B, 8)
    flops = 2 * B * (64 * 800 * CP + 2048 * 512 + 512 * CP)
    bytes_acc = (pat2.size * 2 + (w2.size + w3.size + w4.size) * 2
                 + (b2.size + b3.size + b4.size) * 4 + B * CP * 4)
    out = pl.pallas_call(
        _conv2_fc_kernel,
        grid_spec=pltpu.PrefetchScalarGridSpec(
            num_scalar_prefetch=0,
            grid=(B // nb,),
            in_specs=[
                pl.BlockSpec((nb, 64, 800), lambda i: (i, 0, 0)),
                pl.BlockSpec((800, CP), lambda i: (0, 0)),
                pl.BlockSpec((1, CP), lambda i: (0, 0)),
                pl.BlockSpec((2048, 512), lambda i: (0, 0)),
                pl.BlockSpec((1, 512), lambda i: (0, 0)),
                pl.BlockSpec((512, CP), lambda i: (0, 0)),
                pl.BlockSpec((1, CP), lambda i: (0, 0)),
            ],
            out_specs=pl.BlockSpec((nb, 1, CP), lambda i: (i, 0, 0)),
            scratch_shapes=[
                pltpu.VMEM((nb, 16, CP), jnp.bfloat16),
                pltpu.VMEM((nb, 16 * CP), jnp.bfloat16),
            ],
        ),
        out_shape=jax.ShapeDtypeStruct((B, 1, CP), jnp.float32),
        compiler_params=pltpu.CompilerParams(
            dimension_semantics=("parallel",),
            vmem_limit_bytes=VMEM_LIMIT),
        cost_estimate=pl.CostEstimate(flops=flops, transcendentals=0,
                                      bytes_accessed=bytes_acc),
    )(pat2, w2, b2, w3, b3, w4, b4)
    return out[:, 0, :]


# ----------------------------------------------------------------------------
# Wrapper-side im2col (layout prep only; tiny tensors, plain XLA)
# ----------------------------------------------------------------------------
def _im2col_conv1(x):
    """x: (B, 28, 28) f32 -> (B, 576, 32) bf16; rows ordered (h%2, w%2, h//2, w//2)."""
    B = x.shape[0]
    cols = [x[:, di:di + 24, dj:dj + 24] for di in range(5) for dj in range(5)]
    pat = jnp.stack(cols, axis=-1)                              # (B,24,24,25)
    pat = pat.reshape(B, 12, 2, 12, 2, 25).transpose(0, 2, 4, 1, 3, 5)
    pat = pat.reshape(B, 576, 25)
    pat = jnp.pad(pat, ((0, 0), (0, 0), (0, 7)))                # K 25 -> 32
    return pat.astype(jnp.bfloat16)


def _im2col_conv2(h1):
    """h1: (B, 144, 32) bf16 -> (B, 64, 800) bf16; rows ordered (h%2, w%2, h//2, w//2)."""
    B = h1.shape[0]
    h1 = h1.reshape(B, 12, 12, 32)
    cols = [h1[:, di:di + 8, dj:dj + 8, :] for di in range(5) for dj in range(5)]
    pat = jnp.concatenate(cols, axis=-1)                        # (B,8,8,800)
    pat = pat.reshape(B, 4, 2, 4, 2, 800).transpose(0, 2, 4, 1, 3, 5)
    return pat.reshape(B, 64, 800)


# ----------------------------------------------------------------------------
# Parameters (PyTorch-layout init) and one-time host-side repacking
# ----------------------------------------------------------------------------
def init_params(key, num_classes=10):
    ks = jax.random.split(key, 8)
    s = 0.05
    return {
        "conv1_w": jax.random.normal(ks[0], (20, 1, 5, 5), jnp.float32) * s,
        "conv1_b": jax.random.normal(ks[1], (20,), jnp.float32) * s,
        "conv2_w": jax.random.normal(ks[2], (50, 20, 5, 5), jnp.float32) * s,
        "conv2_b": jax.random.normal(ks[3], (50,), jnp.float32) * s,
        "fc1_w": jax.random.normal(ks[4], (4 * 4 * 50, 500), jnp.float32) * s,
        "fc1_b": jax.random.normal(ks[5], (500,), jnp.float32) * s,
        "fc2_w": jax.random.normal(ks[6], (500, num_classes), jnp.float32) * s,
        "fc2_b": jax.random.normal(ks[7], (num_classes,), jnp.float32) * s,
    }


def prepare_params(params, num_classes=10):
    """Packed-K im2col weight layouts, channel/class padding, bf16 MXU operands."""
    # conv1: (20,1,5,5) -> (25,20) taps x Cout -> pad to (32,128) bf16.
    w1 = params["conv1_w"].transpose(2, 3, 1, 0).reshape(25, 20)
    w1 = jnp.pad(w1, ((0, 7), (0, CP - 20))).astype(jnp.bfloat16)
    b1 = jnp.pad(params["conv1_b"], (0, CP - 20)).reshape(1, CP).astype(jnp.float32)

    # conv2: (50,20,5,5) -> (5,5,20,50) -> pad Cin 20->32, Cout 50->128 -> (800,128).
    w2 = params["conv2_w"].transpose(2, 3, 1, 0)
    w2 = jnp.pad(w2, ((0, 0), (0, 0), (0, 12), (0, CP - 50)))
    w2 = w2.reshape(800, CP).astype(jnp.bfloat16)
    b2 = jnp.pad(params["conv2_b"], (0, CP - 50)).reshape(1, CP).astype(jnp.float32)

    # fc1: rows reordered from PyTorch CHW flatten (c*16 + h*4 + w) to padded
    # HWC ((h*4+w)*128 + c); N padded 500 -> 512.
    w3 = params["fc1_w"].reshape(50, 4, 4, 500).transpose(1, 2, 0, 3)   # (4,4,50,500)
    w3 = jnp.pad(w3, ((0, 0), (0, 0), (0, CP - 50), (0, 12)))            # (4,4,128,512)
    w3 = w3.reshape(16 * CP, 512).astype(jnp.bfloat16)
    b3 = jnp.pad(params["fc1_b"], (0, 12)).reshape(1, 512).astype(jnp.float32)

    # fc2: K padded 500 -> 512 (zero rows), N padded num_classes -> 128.
    w4 = jnp.pad(params["fc2_w"], ((0, 12), (0, CP - num_classes))).astype(jnp.bfloat16)
    b4 = jnp.pad(params["fc2_b"], (0, CP - num_classes)).reshape(1, CP).astype(jnp.float32)

    return {"c1_w": w1, "c1_b": b1, "c2_w": w2, "c2_b": b2,
            "fc1_w": w3, "fc1_b": b3, "fc2_w": w4, "fc2_b": b4}


# ----------------------------------------------------------------------------
# Full forward pass (2 pallas_calls) + pure-JAX f32 reference
# ----------------------------------------------------------------------------
def simple_cnn_forward(prepared, x_nchw, num_classes=10):
    """x_nchw: (B, 1, 28, 28) float32 -> logits (B, num_classes)."""
    x = x_nchw[:, 0].astype(jnp.float32)                         # (B, 28, 28)
    p1 = _im2col_conv1(x)                                        # (B, 576, 32) bf16
    h1 = conv1_relu_pool(p1, prepared["c1_w"], prepared["c1_b"])  # (B, 144, 32) bf16
    p2 = _im2col_conv2(h1)                                       # (B, 64, 800) bf16
    logits = conv2_fc(p2, prepared["c2_w"], prepared["c2_b"],
                      prepared["fc1_w"], prepared["fc1_b"],
                      prepared["fc2_w"], prepared["fc2_b"])      # (B, 128) f32
    return logits[:, :num_classes]


def reference_forward(params, x_nchw):
    """Pure jnp f32 reference matching the PyTorch module."""
    B = x_nchw.shape[0]
    x = x_nchw[:, 0].astype(jnp.float32)
    cols = [x[:, di:di + 24, dj:dj + 24] for di in range(5) for dj in range(5)]
    pat = jnp.stack(cols, axis=-1)                               # (B,24,24,25)
    w1 = params["conv1_w"].transpose(2, 3, 1, 0).reshape(25, 20)
    a1 = jnp.maximum(jnp.einsum("bhwk,kc->bhwc", pat, w1) + params["conv1_b"], 0.0)
    a1 = a1.reshape(B, 12, 2, 12, 2, 20).max(axis=(2, 4))        # (B,12,12,20)
    cols2 = [a1[:, di:di + 8, dj:dj + 8, :] for di in range(5) for dj in range(5)]
    pat2 = jnp.concatenate(cols2, axis=-1)                       # (B,8,8,500)
    w2 = params["conv2_w"].transpose(2, 3, 1, 0).reshape(500, 50)
    a2 = jnp.maximum(jnp.einsum("bhwk,kc->bhwc", pat2, w2) + params["conv2_b"], 0.0)
    a2 = a2.reshape(B, 4, 2, 4, 2, 50).max(axis=(2, 4))          # (B,4,4,50)
    flat = a2.transpose(0, 3, 1, 2).reshape(B, 800)              # PyTorch CHW flatten
    h = jnp.maximum(flat @ params["fc1_w"] + params["fc1_b"], 0.0)
    return h @ params["fc2_w"] + params["fc2_b"]


if __name__ == "__main__":
    key = jax.random.PRNGKey(0)
    pkey, xkey = jax.random.split(key)
    params = init_params(pkey, num_classes=10)
    prepared = prepare_params(params, num_classes=10)

    # Spatial size is fixed by fc1 (4*4*50): 28 -> 24 -> 12 -> 8 -> 4.
    batch = 2
    x = jax.random.normal(xkey, (batch, 1, 28, 28), jnp.float32)

    fwd = jax.jit(functools.partial(simple_cnn_forward, num_classes=10))
    logits = fwd(prepared, x)
    jax.block_until_ready(logits)
    assert logits.shape == (batch, 10), logits.shape

    # Tolerance-based check against the pure-JAX f32 reference (bf16 MXU operands).
    ref = jax.jit(reference_forward)(params, x)
    err = float(jnp.max(jnp.abs(logits - ref)))
    assert err < 5e-2, f"max |pallas - reference| = {err}"

    print("KERNEL_OK")
</pallas_src>

<mosaic_0001>
module attributes {stable_mosaic.version = 11 : i64} {
  func.func @_conv1_relu_pool_kernel(%arg0: i32, %arg1: memref<1x576x32xbf16, #tpu.memory_space<vmem>>, %arg2: memref<32x128xbf16, #tpu.memory_space<vmem>>, %arg3: memref<1x128xf32, #tpu.memory_space<vmem>>, %arg4: memref<1x144x32xbf16, #tpu.memory_space<vmem>>) attributes {dimension_semantics = [#tpu.dimension_semantics<parallel>], iteration_bounds = array<i64: 2>, scalar_prefetch = 0 : i64, scratch_operands = 0 : i64, tpu.core_type = #tpu.core_type<tc>, window_params = [{transform_indices = @transform_0, window_bounds = array<i64: 1, 576, 32>}, {pipeline_mode = #tpu.pipeline_mode<synchronous>, transform_indices = @transform_1, window_bounds = array<i64: 32, 128>}, {pipeline_mode = #tpu.pipeline_mode<synchronous>, transform_indices = @transform_2, window_bounds = array<i64: 1, 128>}, {transform_indices = @transform_3, window_bounds = array<i64: 1, 144, 32>}]} {
    %c0 = arith.constant 0 : index
    %c0_0 = arith.constant 0 : index
    %c0_1 = arith.constant 0 : index
    %0 = vector.load %arg1[%c0, %c0_0, %c0_1] : memref<1x576x32xbf16, #tpu.memory_space<vmem>>, vector<1x576x32xbf16>
    %1 = vector.shape_cast %0 : vector<1x576x32xbf16> to vector<576x32xbf16>
    %c0_2 = arith.constant 0 : index
    %c0_3 = arith.constant 0 : index
    %2 = vector.load %arg2[%c0_2, %c0_3] : memref<32x128xbf16, #tpu.memory_space<vmem>>, vector<32x128xbf16>
    %cst = arith.constant dense<0.000000e+00> : vector<576x128xf32>
    %3 = tpu.matmul %1, %2, %cst {dimension_numbers = #tpu.dot_dimension_numbers<[1], [0], [0], [1], [0, 0, 1, 1], [], []>} : vector<576x32xbf16>, vector<32x128xbf16>, vector<576x128xf32> -> vector<576x128xf32>
    %c0_4 = arith.constant 0 : index
    %c0_5 = arith.constant 0 : index
    %4 = vector.load %arg3[%c0_4, %c0_5] : memref<1x128xf32, #tpu.memory_space<vmem>>, vector<1x128xf32>
    %5 = vector.broadcast %4 : vector<1x128xf32> to vector<576x128xf32>
    %6 = arith.addf %3, %5 : vector<576x128xf32>
    %cst_6 = arith.constant 0.000000e+00 : f32
    %7 = vector.broadcast %cst_6 : f32 to vector<576x128xf32>
    %8 = arith.maximumf %6, %7 : vector<576x128xf32>
    %9 = vector.shape_cast %8 : vector<576x128xf32> to vector<1x2x2x144x128xf32>
    %10 = vector.extract_strided_slice %9 {offsets = [0, 0, 0, 0, 0], sizes = [1, 1, 1, 144, 128], strides = [1, 1, 1, 1, 1]} : vector<1x2x2x144x128xf32> to vector<1x1x1x144x128xf32>
    %11 = vector.shape_cast %10 : vector<1x1x1x144x128xf32> to vector<1x144x128xf32>
    %12 = vector.extract_strided_slice %9 {offsets = [0, 0, 1, 0, 0], sizes = [1, 1, 1, 144, 128], strides = [1, 1, 1, 1, 1]} : vector<1x2x2x144x128xf32> to vector<1x1x1x144x128xf32>
    %13 = vector.shape_cast %12 : vector<1x1x1x144x128xf32> to vector<1x144x128xf32>
    %14 = arith.maximumf %11, %13 : vector<1x144x128xf32>
    %15 = vector.extract_strided_slice %9 {offsets = [0, 1, 0, 0, 0], sizes = [1, 1, 1, 144, 128], strides = [1, 1, 1, 1, 1]} : vector<1x2x2x144x128xf32> to vector<1x1x1x144x128xf32>
    %16 = vector.shape_cast %15 : vector<1x1x1x144x128xf32> to vector<1x144x128xf32>
    %17 = vector.extract_strided_slice %9 {offsets = [0, 1, 1, 0, 0], sizes = [1, 1, 1, 144, 128], strides = [1, 1, 1, 1, 1]} : vector<1x2x2x144x128xf32> to vector<1x1x1x144x128xf32>
    %18 = vector.shape_cast %17 : vector<1x1x1x144x128xf32> to vector<1x144x128xf32>
    %19 = arith.maximumf %16, %18 : vector<1x144x128xf32>
    %20 = arith.maximumf %14, %19 : vector<1x144x128xf32>
    %21 = vector.extract_strided_slice %20 {offsets = [0, 0, 0], sizes = [1, 144, 32], strides = [1, 1, 1]} : vector<1x144x128xf32> to vector<1x144x32xf32>
    %22 = arith.truncf %21 : vector<1x144x32xf32> to vector<1x144x32xbf16>
    %c0_7 = arith.constant 0 : index
    %c0_8 = arith.constant 0 : index
    %c0_9 = arith.constant 0 : index
    %23 = vector.load %arg4[%c0_7, %c0_8, %c0_9] : memref<1x144x32xbf16, #tpu.memory_space<vmem>>, vector<1x144x32xbf16>
    tpu.vector_store %arg4[%c0_7, %c0_8, %c0_9], %22 {strides = array<i32>} : memref<1x144x32xbf16, #tpu.memory_space<vmem>>, vector<1x144x32xbf16>,
    return
  }
  func.func @transform_0(%arg0: i32) -> (i32, i32, i32) {
    %c0_i32 = arith.constant 0 : i32
    %c0_i32_0 = arith.constant 0 : i32
    %c0_i32_1 = arith.constant 0 : i32
    return %arg0, %c0_i32, %c0_i32_0 : i32, i32, i32
  }
  func.func @transform_1(%arg0: i32) -> (i32, i32) {
    %c0_i32 = arith.constant 0 : i32
    %c0_i32_0 = arith.constant 0 : i32
    %c0_i32_1 = arith.constant 0 : i32
    return %c0_i32, %c0_i32_0 : i32, i32
  }
  func.func @transform_2(%arg0: i32) -> (i32, i32) {
    %c0_i32 = arith.constant 0 : i32
    %c0_i32_0 = arith.constant 0 : i32
    %c0_i32_1 = arith.constant 0 : i32
    return %c0_i32, %c0_i32_0 : i32, i32
  }
  func.func @transform_3(%arg0: i32) -> (i32, i32, i32) {
    %c0_i32 = arith.constant 0 : i32
    %c0_i32_0 = arith.constant 0 : i32
    %c0_i32_1 = arith.constant 0 : i32
    return %arg0, %c0_i32, %c0_i32_0 : i32, i32, i32
  }
}

module attributes {stable_mosaic.version = 11 : i64} {
  func.func @_conv2_fc_kernel(%arg0: i32, %arg1: memref<1x64x800xbf16, #tpu.memory_space<vmem>>, %arg2: memref<800x128xbf16, #tpu.memory_space<vmem>>, %arg3: memref<1x128xf32, #tpu.memory_space<vmem>>, %arg4: memref<2048x512xbf16, #tpu.memory_space<vmem>>, %arg5: memref<1x512xf32, #tpu.memory_space<vmem>>, %arg6: memref<512x128xbf16, #tpu.memory_space<vmem>>, %arg7: memref<1x128xf32, #tpu.memory_space<vmem>>, %arg8: memref<1x1x128xf32, #tpu.memory_space<vmem>>, %arg9: memref<1x16x128xbf16, #tpu.memory_space<vmem>>, %arg10: memref<1x2048xbf16, #tpu.memory_space<vmem>>) attributes {dimension_semantics = [#tpu.dimension_semantics<parallel>], iteration_bounds = array<i64: 2>, scalar_prefetch = 0 : i64, scratch_operands = 2 : i64, tpu.core_type = #tpu.core_type<tc>, window_params = [{transform_indices = @transform_0, window_bounds = array<i64: 1, 64, 800>}, {pipeline_mode = #tpu.pipeline_mode<synchronous>, transform_indices = @transform_1, window_bounds = array<i64: 800, 128>}, {pipeline_mode = #tpu.pipeline_mode<synchronous>, transform_indices = @transform_2, window_bounds = array<i64: 1, 128>}, {pipeline_mode = #tpu.pipeline_mode<synchronous>, transform_indices = @transform_3, window_bounds = array<i64: 2048, 512>}, {pipeline_mode = #tpu.pipeline_mode<synchronous>, transform_indices = @transform_4, window_bounds = array<i64: 1, 512>}, {pipeline_mode = #tpu.pipeline_mode<synchronous>, transform_indices = @transform_5, window_bounds = array<i64: 512, 128>}, {pipeline_mode = #tpu.pipeline_mode<synchronous>, transform_indices = @transform_6, window_bounds = array<i64: 1, 128>}, {transform_indices = @transform_7, window_bounds = array<i64: 1, 1, 128>}]} {
    %c0 = arith.constant 0 : index
    %c0_0 = arith.constant 0 : index
    %c0_1 = arith.constant 0 : index
    %0 = vector.load %arg1[%c0, %c0_0, %c0_1] : memref<1x64x800xbf16, #tpu.memory_space<vmem>>, vector<1x64x800xbf16>
    %1 = vector.shape_cast %0 : vector<1x64x800xbf16> to vector<64x800xbf16>
    %c0_2 = arith.constant 0 : index
    %c0_3 = arith.constant 0 : index
    %2 = vector.load %arg2[%c0_2, %c0_3] : memref<800x128xbf16, #tpu.memory_space<vmem>>, vector<800x128xbf16>
    %cst = arith.constant dense<0.000000e+00> : vector<64x128xf32>
    %3 = tpu.matmul %1, %2, %cst {dimension_numbers = #tpu.dot_dimension_numbers<[1], [0], [0], [1], [0, 0, 1, 1], [], []>} : vector<64x800xbf16>, vector<800x128xbf16>, vector<64x128xf32> -> vector<64x128xf32>
    %c0_4 = arith.constant 0 : index
    %c0_5 = arith.constant 0 : index
    %4 = vector.load %arg3[%c0_4, %c0_5] : memref<1x128xf32, #tpu.memory_space<vmem>>, vector<1x128xf32>
    %5 = vector.broadcast %4 : vector<1x128xf32> to vector<64x128xf32>
    %6 = arith.addf %3, %5 : vector<64x128xf32>
    %cst_6 = arith.constant 0.000000e+00 : f32
    %7 = vector.broadcast %cst_6 : f32 to vector<64x128xf32>
    %8 = arith.maximumf %6, %7 : vector<64x128xf32>
    %9 = vector.shape_cast %8 : vector<64x128xf32> to vector<1x2x2x16x128xf32>
    %10 = vector.extract_strided_slice %9 {offsets = [0, 0, 0, 0, 0], sizes = [1, 1, 1, 16, 128], strides = [1, 1, 1, 1, 1]} : vector<1x2x2x16x128xf32> to vector<1x1x1x16x128xf32>
    %11 = vector.shape_cast %10 : vector<1x1x1x16x128xf32> to vector<1x16x128xf32>
    %12 = vector.extract_strided_slice %9 {offsets = [0, 0, 1, 0, 0], sizes = [1, 1, 1, 16, 128], strides = [1, 1, 1, 1, 1]} : vector<1x2x2x16x128xf32> to vector<1x1x1x16x128xf32>
    %13 = vector.shape_cast %12 : vector<1x1x1x16x128xf32> to vector<1x16x128xf32>
    %14 = arith.maximumf %11, %13 : vector<1x16x128xf32>
    %15 = vector.extract_strided_slice %9 {offsets = [0, 1, 0, 0, 0], sizes = [1, 1, 1, 16, 128], strides = [1, 1, 1, 1, 1]} : vector<1x2x2x16x128xf32> to vector<1x1x1x16x128xf32>
    %16 = vector.shape_cast %15 : vector<1x1x1x16x128xf32> to vector<1x16x128xf32>
    %17 = vector.extract_strided_slice %9 {offsets = [0, 1, 1, 0, 0], sizes = [1, 1, 1, 16, 128], strides = [1, 1, 1, 1, 1]} : vector<1x2x2x16x128xf32> to vector<1x1x1x16x128xf32>
    %18 = vector.shape_cast %17 : vector<1x1x1x16x128xf32> to vector<1x16x128xf32>
    %19 = arith.maximumf %16, %18 : vector<1x16x128xf32>
    %20 = arith.maximumf %14, %19 : vector<1x16x128xf32>
    %21 = arith.truncf %20 : vector<1x16x128xf32> to vector<1x16x128xbf16>
    %c0_7 = arith.constant 0 : index
    %c0_8 = arith.constant 0 : index
    %c0_9 = arith.constant 0 : index
    %22 = vector.load %arg9[%c0_7, %c0_8, %c0_9] : memref<1x16x128xbf16, #tpu.memory_space<vmem>>, vector<1x16x128xbf16>
    tpu.vector_store %arg9[%c0_7, %c0_8, %c0_9], %21 {strides = array<i32>} : memref<1x16x128xbf16, #tpu.memory_space<vmem>>, vector<1x16x128xbf16>,
    %c0_10 = arith.constant 0 : index
    %c0_11 = arith.constant 0 : index
    %c0_12 = arith.constant 0 : index
    %23 = vector.load %arg9[%c0_10, %c0_11, %c0_12] : memref<1x16x128xbf16, #tpu.memory_space<vmem>>, vector<1x1x128xbf16>
    %24 = vector.shape_cast %23 : vector<1x1x128xbf16> to vector<1x128xbf16>
    %c0_13 = arith.constant 0 : index
    %c0_14 = arith.constant 0 : index
    %25 = vector.load %arg10[%c0_13, %c0_14] : memref<1x2048xbf16, #tpu.memory_space<vmem>>, vector<1x128xbf16>
    tpu.vector_store %arg10[%c0_13, %c0_14], %24 {strides = array<i32>} : memref<1x2048xbf16, #tpu.memory_space<vmem>>, vector<1x128xbf16>,
    %c0_15 = arith.constant 0 : index
    %c1 = arith.constant 1 : index
    %c0_16 = arith.constant 0 : index
    %26 = vector.load %arg9[%c0_15, %c1, %c0_16] : memref<1x16x128xbf16, #tpu.memory_space<vmem>>, vector<1x1x128xbf16>
    %27 = vector.shape_cast %26 : vector<1x1x128xbf16> to vector<1x128xbf16>
    %c0_17 = arith.constant 0 : index
    %c128 = arith.constant 128 : index
    %28 = vector.load %arg10[%c0_17, %c128] : memref<1x2048xbf16, #tpu.memory_space<vmem>>, vector<1x128xbf16>
    tpu.vector_store %arg10[%c0_17, %c128], %27 {strides = array<i32>} : memref<1x2048xbf16, #tpu.memory_space<vmem>>, vector<1x128xbf16>,
    %c0_18 = arith.constant 0 : index
    %c2 = arith.constant 2 : index
    %c0_19 = arith.constant 0 : index
    %29 = vector.load %arg9[%c0_18, %c2, %c0_19] : memref<1x16x128xbf16, #tpu.memory_space<vmem>>, vector<1x1x128xbf16>
    %30 = vector.shape_cast %29 : vector<1x1x128xbf16> to vector<1x128xbf16>
    %c0_20 = arith.constant 0 : index
    %c256 = arith.constant 256 : index
    %31 = vector.load %arg10[%c0_20, %c256] : memref<1x2048xbf16, #tpu.memory_space<vmem>>, vector<1x128xbf16>
    tpu.vector_store %arg10[%c0_20, %c256], %30 {strides = array<i32>} : memref<1x2048xbf16, #tpu.memory_space<vmem>>, vector<1x128xbf16>,
    %c0_21 = arith.constant 0 : index
    %c3 = arith.constant 3 : index
    %c0_22 = arith.constant 0 : index
    %32 = vector.load %arg9[%c0_21, %c3, %c0_22] : memref<1x16x128xbf16, #tpu.memory_space<vmem>>, vector<1x1x128xbf16>
    %33 = vector.shape_cast %32 : vector<1x1x128xbf16> to vector<1x128xbf16>
    %c0_23 = arith.constant 0 : index
    %c384 = arith.constant 384 : index
    %34 = vector.load %arg10[%c0_23, %c384] : memref<1x2048xbf16, #tpu.memory_space<vmem>>, vector<1x128xbf16>
    tpu.vector_store %arg10[%c0_23, %c384], %33 {strides = array<i32>} : memref<1x2048xbf16, #tpu.memory_space<vmem>>, vector<1x128xbf16>,
    %c0_24 = arith.constant 0 : index
    %c4 = arith.constant 4 : index
    %c0_25 = arith.constant 0 : index
    %35 = vector.load %arg9[%c0_24, %c4, %c0_25] : memref<1x16x128xbf16, #tpu.memory_space<vmem>>, vector<1x1x128xbf16>
    %36 = vector.shape_cast %35 : vector<1x1x128xbf16> to vector<1x128xbf16>
    %c0_26 = arith.constant 0 : index
    %c512 = arith.constant 512 : index
    %37 = vector.load %arg10[%c0_26, %c512] : memref<1x2048xbf16, #tpu.memory_space<vmem>>, vector<1x128xbf16>
    tpu.vector_store %arg10[%c0_26, %c512], %36 {strides = array<i32>} : memref<1x2048xbf16, #tpu.memory_space<vmem>>, vector<1x128xbf16>,
    %c0_27 = arith.constant 0 : index
    %c5 = arith.constant 5 : index
    %c0_28 = arith.constant 0 : index
    %38 = vector.load %arg9[%c0_27, %c5, %c0_28] : memref<1x16x128xbf16, #tpu.memory_space<vmem>>, vector<1x1x128xbf16>
    %39 = vector.shape_cast %38 : vector<1x1x128xbf16> to vector<1x128xbf16>
    %c0_29 = arith.constant 0 : index
    %c640 = arith.constant 640 : index
    %40 = vector.load %arg10[%c0_29, %c640] : memref<1x2048xbf16, #tpu.memory_space<vmem>>, vector<1x128xbf16>
    tpu.vector_store %arg10[%c0_29, %c640], %39 {strides = array<i32>} : memref<1x2048xbf16, #tpu.memory_space<vmem>>, vector<1x128xbf16>,
    %c0_30 = arith.constant 0 : index
    %c6 = arith.constant 6 : index
    %c0_31 = arith.constant 0 : index
    %41 = vector.load %arg9[%c0_30, %c6, %c0_31] : memref<1x16x128xbf16, #tpu.memory_space<vmem>>, vector<1x1x128xbf16>
    %42 = vector.shape_cast %41 : vector<1x1x128xbf16> to vector<1x128xbf16>
    %c0_32 = arith.constant 0 : index
    %c768 = arith.constant 768 : index
    %43 = vector.load %arg10[%c0_32, %c768] : memref<1x2048xbf16, #tpu.memory_space<vmem>>, vector<1x128xbf16>
    tpu.vector_store %arg10[%c0_32, %c768], %42 {strides = array<i32>} : memref<1x2048xbf16, #tpu.memory_space<vmem>>, vector<1x128xbf16>,
    %c0_33 = arith.constant 0 : index
    %c7 = arith.constant 7 : index
    %c0_34 = arith.constant 0 : index
    %44 = vector.load %arg9[%c0_33, %c7, %c0_34] : memref<1x16x128xbf16, #tpu.memory_space<vmem>>, vector<1x1x128xbf16>
    %45 = vector.shape_cast %44 : vector<1x1x128xbf16> to vector<1x128xbf16>
    %c0_35 = arith.constant 0 : index
    %c896 = arith.constant 896 : index
    %46 = vector.load %arg10[%c0_35, %c896] : memref<1x2048xbf16, #tpu.memory_space<vmem>>, vector<1x128xbf16>
    tpu.vector_store %arg10[%c0_35, %c896], %45 {strides = array<i32>} : memref<1x2048xbf16, #tpu.memory_space<vmem>>, vector<1x128xbf16>,
    %c0_36 = arith.constant 0 : index
    %c8 = arith.constant 8 : index
    %c0_37 = arith.constant 0 : index
    %47 = vector.load %arg9[%c0_36, %c8, %c0_37] : memref<1x16x128xbf16, #tpu.memory_space<vmem>>, vector<1x1x128xbf16>
    %48 = vector.shape_cast %47 : vector<1x1x128xbf16> to vector<1x128xbf16>
    %c0_38 = arith.constant 0 : index
    %c1024 = arith.constant 1024 : index
    %49 = vector.load %arg10[%c0_38, %c1024] : memref<1x2048xbf16, #tpu.memory_space<vmem>>, vector<1x128xbf16>
    tpu.vector_store %arg10[%c0_38, %c1024], %48 {strides = array<i32>} : memref<1x2048xbf16, #tpu.memory_space<vmem>>, vector<1x128xbf16>,
    %c0_39 = arith.constant 0 : index
    %c9 = arith.constant 9 : index
    %c0_40 = arith.constant 0 : index
    %50 = vector.load %arg9[%c0_39, %c9, %c0_40] : memref<1x16x128xbf16, #tpu.memory_space<vmem>>, vector<1x1x128xbf16>
    %51 = vector.shape_cast %50 : vector<1x1x128xbf16> to vector<1x128xbf16>
    %c0_41 = arith.constant 0 : index
    %c1152 = arith.constant 1152 : index
    %52 = vector.load %arg10[%c0_41, %c1152] : memref<1x2048xbf16, #tpu.memory_space<vmem>>, vector<1x128xbf16>
    tpu.vector_store %arg10[%c0_41, %c1152], %51 {strides = array<i32>} : memref<1x2048xbf16, #tpu.memory_space<vmem>>, vector<1x128xbf16>,
    %c0_42 = arith.constant 0 : index
    %c10 = arith.constant 10 : index
    %c0_43 = arith.constant 0 : index
    %53 = vector.load %arg9[%c0_42, %c10, %c0_43] : memref<1x16x128xbf16, #tpu.memory_space<vmem>>, vector<1x1x128xbf16>
    %54 = vector.shape_cast %53 : vector<1x1x128xbf16> to vector<1x128xbf16>
    %c0_44 = arith.constant 0 : index
    %c1280 = arith.constant 1280 : index
    %55 = vector.load %arg10[%c0_44, %c1280] : memref<1x2048xbf16, #tpu.memory_space<vmem>>, vector<1x128xbf16>
    tpu.vector_store %arg10[%c0_44, %c1280], %54 {strides = array<i32>} : memref<1x2048xbf16, #tpu.memory_space<vmem>>, vector<1x128xbf16>,
    %c0_45 = arith.constant 0 : index
    %c11 = arith.constant 11 : index
    %c0_46 = arith.constant 0 : index
    %56 = vector.load %arg9[%c0_45, %c11, %c0_46] : memref<1x16x128xbf16, #tpu.memory_space<vmem>>, vector<1x1x128xbf16>
    %57 = vector.shape_cast %56 : vector<1x1x128xbf16> to vector<1x128xbf16>
    %c0_47 = arith.constant 0 : index
    %c1408 = arith.constant 1408 : index
    %58 = vector.load %arg10[%c0_47, %c1408] : memref<1x2048xbf16, #tpu.memory_space<vmem>>, vector<1x128xbf16>
    tpu.vector_store %arg10[%c0_47, %c1408], %57 {strides = array<i32>} : memref<1x2048xbf16, #tpu.memory_space<vmem>>, vector<1x128xbf16>,
    %c0_48 = arith.constant 0 : index
    %c12 = arith.constant 12 : index
    %c0_49 = arith.constant 0 : index
    %59 = vector.load %arg9[%c0_48, %c12, %c0_49] : memref<1x16x128xbf16, #tpu.memory_space<vmem>>, vector<1x1x128xbf16>
    %60 = vector.shape_cast %59 : vector<1x1x128xbf16> to vector<1x128xbf16>
    %c0_50 = arith.constant 0 : index
    %c1536 = arith.constant 1536 : index
    %61 = vector.load %arg10[%c0_50, %c1536] : memref<1x2048xbf16, #tpu.memory_space<vmem>>, vector<1x128xbf16>
    tpu.vector_store %arg10[%c0_50, %c1536], %60 {strides = array<i32>} : memref<1x2048xbf16, #tpu.memory_space<vmem>>, vector<1x128xbf16>,
    %c0_51 = arith.constant 0 : index
    %c13 = arith.constant 13 : index
    %c0_52 = arith.constant 0 : index
    %62 = vector.load %arg9[%c0_51, %c13, %c0_52] : memref<1x16x128xbf16, #tpu.memory_space<vmem>>, vector<1x1x128xbf16>
    %63 = vector.shape_cast %62 : vector<1x1x128xbf16> to vector<1x128xbf16>
    %c0_53 = arith.constant 0 : index
    %c1664 = arith.constant 1664 : index
    %64 = vector.load %arg10[%c0_53, %c1664] : memref<1x2048xbf16, #tpu.memory_space<vmem>>, vector<1x128xbf16>
    tpu.vector_store %arg10[%c0_53, %c1664], %63 {strides = array<i32>} : memref<1x2048xbf16, #tpu.memory_space<vmem>>, vector<1x128xbf16>,
    %c0_54 = arith.constant 0 : index
    %c14 = arith.constant 14 : index
    %c0_55 = arith.constant 0 : index
    %65 = vector.load %arg9[%c0_54, %c14, %c0_55] : memref<1x16x128xbf16, #tpu.memory_space<vmem>>, vector<1x1x128xbf16>
    %66 = vector.shape_cast %65 : vector<1x1x128xbf16> to vector<1x128xbf16>
    %c0_56 = arith.constant 0 : index
    %c1792 = arith.constant 1792 : index
    %67 = vector.load %arg10[%c0_56, %c1792] : memref<1x2048xbf16, #tpu.memory_space<vmem>>, vector<1x128xbf16>
    tpu.vector_store %arg10[%c0_56, %c1792], %66 {strides = array<i32>} : memref<1x2048xbf16, #tpu.memory_space<vmem>>, vector<1x128xbf16>,
    %c0_57 = arith.constant 0 : index
    %c15 = arith.constant 15 : index
    %c0_58 = arith.constant 0 : index
    %68 = vector.load %arg9[%c0_57, %c15, %c0_58] : memref<1x16x128xbf16, #tpu.memory_space<vmem>>, vector<1x1x128xbf16>
    %69 = vector.shape_cast %68 : vector<1x1x128xbf16> to vector<1x128xbf16>
    %c0_59 = arith.constant 0 : index
    %c1920 = arith.constant 1920 : index
    %70 = vector.load %arg10[%c0_59, %c1920] : memref<1x2048xbf16, #tpu.memory_space<vmem>>, vector<1x128xbf16>
    tpu.vector_store %arg10[%c0_59, %c1920], %69 {strides = array<i32>} : memref<1x2048xbf16, #tpu.memory_space<vmem>>, vector<1x128xbf16>,
    %c0_60 = arith.constant 0 : index
    %c0_61 = arith.constant 0 : index
    %71 = vector.load %arg10[%c0_60, %c0_61] : memref<1x2048xbf16, #tpu.memory_space<vmem>>, vector<1x2048xbf16>
    %c0_62 = arith.constant 0 : index
    %c0_63 = arith.constant 0 : index
    %72 = vector.load %arg4[%c0_62, %c0_63] : memref<2048x512xbf16, #tpu.memory_space<vmem>>, vector<2048x512xbf16>
    %cst_64 = arith.constant dense<0.000000e+00> : vector<1x512xf32>
    %73 = tpu.matmul %71, %72, %cst_64 {dimension_numbers = #tpu.dot_dimension_numbers<[1], [0], [0], [1], [0, 0, 1, 1], [], []>} : vector<1x2048xbf16>, vector<2048x512xbf16>, vector<1x512xf32> -> vector<1x512xf32>
    %c0_65 = arith.constant 0 : index
    %c0_66 = arith.constant 0 : index
    %74 = vector.load %arg5[%c0_65, %c0_66] : memref<1x512xf32, #tpu.memory_space<vmem>>, vector<1x512xf32>
    %75 = arith.addf %73, %74 : vector<1x512xf32>
    %cst_67 = arith.constant 0.000000e+00 : f32
    %76 = vector.broadcast %cst_67 : f32 to vector<1x512xf32>
    %77 = arith.maximumf %75, %76 : vector<1x512xf32>
    %78 = arith.truncf %77 : vector<1x512xf32> to vector<1x512xbf16>
    %c0_68 = arith.constant 0 : index
    %c0_69 = arith.constant 0 : index
    %79 = vector.load %arg6[%c0_68, %c0_69] : memref<512x128xbf16, #tpu.memory_space<vmem>>, vector<512x128xbf16>
    %cst_70 = arith.constant dense<0.000000e+00> : vector<1x128xf32>
    %80 = tpu.matmul %78, %79, %cst_70 {dimension_numbers = #tpu.dot_dimension_numbers<[1], [0], [0], [1], [0, 0, 1, 1], [], []>} : vector<1x512xbf16>, vector<512x128xbf16>, vector<1x128xf32> -> vector<1x128xf32>
    %c0_71 = arith.constant 0 : index
    %c0_72 = arith.constant 0 : index
    %81 = vector.load %arg7[%c0_71, %c0_72] : memref<1x128xf32, #tpu.memory_space<vmem>>, vector<1x128xf32>
    %82 = arith.addf %80, %81 : vector<1x128xf32>
    %c0_73 = arith.constant 0 : index
    %c0_74 = arith.constant 0 : index
    %c0_75 = arith.constant 0 : index
    %83 = vector.load %arg8[%c0_73, %c0_74, %c0_75] : memref<1x1x128xf32, #tpu.memory_space<vmem>>, vector<1x1x128xf32>
    %84 = vector.shape_cast %83 : vector<1x1x128xf32> to vector<1x128xf32>
    %85 = vector.shape_cast %82 : vector<1x128xf32> to vector<1x1x128xf32>
    tpu.vector_store %arg8[%c0_73, %c0_74, %c0_75], %85 {strides = array<i32>} : memref<1x1x128xf32, #tpu.memory_space<vmem>>, vector<1x1x128xf32>,
    return
  }
  func.func @transform_0(%arg0: i32) -> (i32, i32, i32) {
    %c0_i32 = arith.constant 0 : i32
    %c0_i32_0 = arith.constant 0 : i32
    %c0_i32_1 = arith.constant 0 : i32
    return %arg0, %c0_i32, %c0_i32_0 : i32, i32, i32
  }
  func.func @transform_1(%arg0: i32) -> (i32, i32) {
    %c0_i32 = arith.constant 0 : i32
    %c0_i32_0 = arith.constant 0 : i32
    %c0_i32_1 = arith.constant 0 : i32
    return %c0_i32, %c0_i32_0 : i32, i32
  }
  func.func @transform_2(%arg0: i32) -> (i32, i32) {
    %c0_i32 = arith.constant 0 : i32
    %c0_i32_0 = arith.constant 0 : i32
    %c0_i32_1 = arith.constant 0 : i32
    return %c0_i32, %c0_i32_0 : i32, i32
  }
  func.func @transform_3(%arg0: i32) -> (i32, i32) {
    %c0_i32 = arith.constant 0 : i32
    %c0_i32_0 = arith.constant 0 : i32
    %c0_i32_1 = arith.constant 0 : i32
    return %c0_i32, %c0_i32_0 : i32, i32
  }
  func.func @transform_4(%arg0: i32) -> (i32, i32) {
    %c0_i32 = arith.constant 0 : i32
    %c0_i32_0 = arith.constant 0 : i32
    %c0_i32_1 = arith.constant 0 : i32
    return %c0_i32, %c0_i32_0 : i32, i32
  }
  func.func @transform_5(%arg0: i32) -> (i32, i32) {
    %c0_i32 = arith.constant 0 : i32
    %c0_i32_0 = arith.constant 0 : i32
    %c0_i32_1 = arith.constant 0 : i32
    return %c0_i32, %c0_i32_0 : i32, i32
  }
  func.func @transform_6(%arg0: i32) -> (i32, i32) {
    %c0_i32 = arith.constant 0 : i32
    %c0_i32_0 = arith.constant 0 : i32
    %c0_i32_1 = arith.constant 0 : i32
    return %c0_i32, %c0_i32_0 : i32, i32
  }
  func.func @transform_7(%arg0: i32) -> (i32, i32, i32) {
    %c0_i32 = arith.constant 0 : i32
    %c0_i32_0 = arith.constant 0 : i32
    %c0_i32_1 = arith.constant 0 : i32
    return %arg0, %c0_i32, %c0_i32_0 : i32, i32, i32
  }
}

</mosaic_0001>

<bundles_post_ra>
// kernel: simple_cnn_forward.2
= control target key start
LH: loop header
LB: loop body
LE: loop exit
PB: predicated region body
PF: predicated region fallthrough
CT: control target
= control target key end

     0   :  { %s1463_s12 = smov 0   ;;  %s1853_s0 = inlined_call_operand.vmem [shape: bf16[2,576,32], index: 0, kind: input, shape index: {}]   ;;  %s1854_s1 = inlined_call_operand.vmem [shape: bf16[32,128], index: 1, kind: input, shape index: {}]   ;;  %s1855_s2 = inlined_call_operand.vmem [shape: f32[1,128], index: 2, kind: input, shape index: {}]   ;;  %s1856_s3 = inlined_call_operand.vmem [shape: bf16[2,144,32], index: 3, kind: output, shape index: {}]  }
   0x1 LB: > { %s1149_s13 = sadd.s32 4294967295, %s1441_s12   ;;  %p1153_p0 = scmp.ge.s32.totalorder %s1441_s12, 1  ;;  %s1441_s12 = sphi %s1463_s12, %s13_s12  }
   0x2   : > { %p137_p1 = scmp.lt.s32.totalorder %s1441_s12, 3 }
   0x4   : > { %p138_p2 = pnand %p1153_p0, %p137_p1 }
   0x5   : > { %p161_p3 = scmp.lt.s32.totalorder (!%p138_p2), %s1149_s13, 1 }
   0x6   : > { %141 = sbr.rel (%p138_p2) target bundleno = 299 (0x12b), region = 32 }
   0xb   : > { %v1397_v0 = vld [vmem:[%s1854_s1 + $0x8] sm:$0xff]   ;;  %v1398_v1 = vld [vmem:[%s1854_s1] sm:$0xff]   ;;  %s1873_s13 = smov (!%p161_p3, %s1149_s13), 1  ;;  %vm447_vm0 = vcmask 261120   ;;  %vm1075_vm1 = vcmask 257024  }
   0xc   : > { %1307 = vmatprep.subr.bf16.mxu0 %v1397_v0  ;;  %1383 = vmatprep.subr.bf16.mxu1 %v1397_v0  ;;  %s1387_s18 = smul.u32 288, %s1873_s13  ;;  %v1560_v56 = vld [vmem:[%s1855_s2] ss:$0 sm:$0xff] }
   0xd   : > { %1308 = vmatpush3.bf16.msra.mxu0 %v1397_v0  ;;  %1385 = vmatpush3.bf16.msra.mxu1 %v1397_v0  ;;  %s1388_s24 = smul.u32 72, %s1873_s13 }
   0xe   : > { %1309 = vmatprep.subr.bf16.mxu0 %v1398_v1  ;;  %1384 = vmatprep.subr.bf16.mxu1 %v1398_v1  ;;  %s1483_s21 = scalar_lea.vmem %s1853_s0, %s1387_s18 }
   0xf   : > { %v1399_v2 = vld [vmem:[%s1483_s21] sm:$0xff]   ;;  %v1400_v3 = vld [vmem:[%s1483_s21 + $0x90] sm:$0xff]   ;;  %v1401_v4 = vld [vmem:[%s1483_s21 + $0x8] sm:$0xff]   ;;  %s1703_s27 = scalar_lea.vmem %s1856_s3, %s1388_s24 }
  0x10   : > { %1311 = vmatprep.mubr.msk.bf16.mxu0 %vm447_vm0, %v1399_v2  ;;  %1347 = vmatprep.mubr.msk.bf16.mxu1 %vm447_vm0, %v1400_v3  ;;  %v1402_v5 = vld [vmem:[%s1483_s21 + $0x98] sm:$0xff]   ;;  %v1403_v6 = vld [vmem:[%s1483_s21 + $0x10] sm:$0xff]   ;;  %v1404_v7 = vld [vmem:[%s1483_s21 + $0xa0] sm:$0xff]  }
  0x11   : > { %1310 = vmatpush3.bf16.msra.mxu0 %v1398_v1  ;;  %1386 = vmatpush3.bf16.msra.mxu1 %v1398_v1  ;;  %v1405_v8 = vld [vmem:[%s1483_s21 + $0x18] sm:$0xff]   ;;  %v1406_v9 = vld [vmem:[%s1483_s21 + $0xa8] sm:$0xff]   ;;  %v1407_v10 = vld [vmem:[%s1483_s21 + $0x20] sm:$0xff]  }
  0x12   : > { %v1408_v11 = vld [vmem:[%s1483_s21 + $0xb0] sm:$0xff]   ;;  %v1409_v12 = vld [vmem:[%s1483_s21 + $0x28] sm:$0xff]   ;;  %v1410_v13 = vld [vmem:[%s1483_s21 + $0xb8] sm:$0xff]  }
  0x13   : > { %v1411_v14 = vld [vmem:[%s1483_s21 + $0x30] sm:$0xff]   ;;  %v1412_v15 = vld [vmem:[%s1483_s21 + $0xc0] sm:$0xff]   ;;  %v1413_v16 = vld [vmem:[%s1483_s21 + $0x38] sm:$0xff]  }
  0x14   : > { %1312 = vmatmul.mubr.msk.bf16.vlgmr.msra.gmra.mxu0 %vm447_vm0, %v1401_v4  ;;  %1348 = vmatmul.mubr.msk.bf16.vlgmr.msra.gmra.mxu1 %vm447_vm0, %v1402_v5  ;;  %v1414_v17 = vld [vmem:[%s1483_s21 + $0xc8] sm:$0xff]   ;;  %v1415_v18 = vld [vmem:[%s1483_s21 + $0x40] sm:$0xff]   ;;  %v1416_v19 = vld [vmem:[%s1483_s21 + $0xd0] sm:$0xff]  }
  0x15   : > { %1315 = vmatprep.mubr.msk.bf16.mxu0 %vm447_vm0, %v1403_v6  ;;  %1351 = vmatprep.mubr.msk.bf16.mxu1 %vm447_vm0, %v1404_v7  ;;  %v1417_v20 = vld [vmem:[%s1483_s21 + $0x48] sm:$0xff]   ;;  %v1418_v21 = vld [vmem:[%s1483_s21 + $0xd8] sm:$0xff]   ;;  %v1419_v22 = vld [vmem:[%s1483_s21 + $0x50] sm:$0xff]  }
  0x16   : > { %v1420_v23 = vld [vmem:[%s1483_s21 + $0xe0] sm:$0xff]   ;;  %v1421_v24 = vld [vmem:[%s1483_s21 + $0x58] sm:$0xff]   ;;  %v1422_v25 = vld [vmem:[%s1483_s21 + $0xe8] sm:$0xff]  }
  0x17   : > { %v1423_v26 = vld [vmem:[%s1483_s21 + $0x60] sm:$0xff]   ;;  %v1424_v27 = vld [vmem:[%s1483_s21 + $0xf0] sm:$0xff]   ;;  %v1425_v28 = vld [vmem:[%s1483_s21 + $0x68] sm:$0xff]  }
  0x18   : > { %v1426_v29 = vld [vmem:[%s1483_s21 + $0xf8] sm:$0xff]   ;;  %v1427_v30 = vld [vmem:[%s1483_s21 + $0x70] sm:$0xff]   ;;  %v1428_v31 = vld [vmem:[%s1483_s21 + $0x100] sm:$0xff]  }
  0x19   : > { %v1429_v32 = vld [vmem:[%s1483_s21 + $0x78] sm:$0xff]   ;;  %v1430_v33 = vld [vmem:[%s1483_s21 + $0x108] sm:$0xff]   ;;  %v1431_v34 = vld [vmem:[%s1483_s21 + $0x80] sm:$0xff]  }
  0x1a   : > { %v1432_v35 = vld [vmem:[%s1483_s21 + $0x110] sm:$0xff]   ;;  %v1433_v36 = vld [vmem:[%s1483_s21 + $0x88] sm:$0xff]   ;;  %v1434_v37 = vld [vmem:[%s1483_s21 + $0x118] sm:$0xff]  }
  0x1c   : > { %1316 = vmatmul.mubr.msk.bf16.gmra.mxu0 %vm447_vm0, %v1405_v8  ;;  %1352 = vmatmul.mubr.msk.bf16.gmra.mxu1 %vm447_vm0, %v1406_v9 }
  0x1d   : > { %1319 = vmatprep.mubr.msk.bf16.mxu0 %vm447_vm0, %v1407_v10  ;;  %1355 = vmatprep.mubr.msk.bf16.mxu1 %vm447_vm0, %v1408_v11 }
  0x24   : > { %1320 = vmatmul.mubr.msk.bf16.gmra.mxu0 %vm447_vm0, %v1409_v12  ;;  %1356 = vmatmul.mubr.msk.bf16.gmra.mxu1 %vm447_vm0, %v1410_v13 }
  0x25   : > { %1323 = vmatprep.mubr.msk.bf16.mxu0 %vm447_vm0, %v1411_v14  ;;  %1359 = vmatprep.mubr.msk.bf16.mxu1 %vm447_vm0, %v1412_v15 }
  0x2c   : > { %1324 = vmatmul.mubr.msk.bf16.gmra.mxu0 %vm447_vm0, %v1413_v16  ;;  %1360 = vmatmul.mubr.msk.bf16.gmra.mxu1 %vm447_vm0, %v1414_v17 }
  0x2d   : > { %1327 = vmatprep.mubr.msk.bf16.mxu0 %vm447_vm0, %v1415_v18  ;;  %1363 = vmatprep.mubr.msk.bf16.mxu1 %vm447_vm0, %v1416_v19 }
  0x34   : > { %1328 = vmatmul.mubr.msk.bf16.gmra.mxu0 %vm447_vm0, %v1417_v20  ;;  %1364 = vmatmul.mubr.msk.bf16.gmra.mxu1 %vm447_vm0, %v1418_v21 }
  0x35   : > { %1331 = vmatprep.mubr.msk.bf16.mxu0 %vm447_vm0, %v1419_v22  ;;  %1367 = vmatprep.mubr.msk.bf16.mxu1 %vm447_vm0, %v1420_v23 }
  0x3c   : > { %1332 = vmatmul.mubr.msk.bf16.gmra.mxu0 %vm447_vm0, %v1421_v24  ;;  %1368 = vmatmul.mubr.msk.bf16.gmra.mxu1 %vm447_vm0, %v1422_v25 }
  0x3d   : > { %1335 = vmatprep.mubr.msk.bf16.mxu0 %vm447_vm0, %v1423_v26  ;;  %1371 = vmatprep.mubr.msk.bf16.mxu1 %vm447_vm0, %v1424_v27 }
  0x44   : > { %1336 = vmatmul.mubr.msk.bf16.gmra.mxu0 %vm447_vm0, %v1425_v28  ;;  %1372 = vmatmul.mubr.msk.bf16.gmra.mxu1 %vm447_vm0, %v1426_v29 }
  0x45   : > { %1339 = vmatprep.mubr.msk.bf16.mxu0 %vm447_vm0, %v1427_v30  ;;  %1375 = vmatprep.mubr.msk.bf16.mxu1 %vm447_vm0, %v1428_v31 }
  0x4c   : > { %1340 = vmatmul.mubr.msk.bf16.gmra.mxu0 %vm447_vm0, %v1429_v32  ;;  %1376 = vmatmul.mubr.msk.bf16.gmra.mxu1 %vm447_vm0, %v1430_v33 }
  0x4d   : > { %1343 = vmatprep.mubr.msk.bf16.mxu0 %vm447_vm0, %v1431_v34  ;;  %1379 = vmatprep.mubr.msk.bf16.mxu1 %vm447_vm0, %v1432_v35 }
  0x54   : > { %1344 = vmatmul.mubr.msk.bf16.gmra.mxu0 %vm447_vm0, %v1433_v36  ;;  %1380 = vmatmul.mubr.msk.bf16.gmra.mxu1 %vm447_vm0, %v1434_v37 }
  0xd4   : > { %v1313_v38 = vpop.f32.mrf.mxu0  ;;  %v1349_v39 = vpop.f32.mrf.mxu1 }
  0xd5   : > { %v1563_v60 = vadd.f32 %v1313_v38, %v1560_v56  ;;  %v1566_v61 = vadd.f32 %v1349_v39, %v1560_v56 }
  0xd6   : > { %v590_v40 = vpop.f32.mrf.mxu0  ;;  %v734_v41 = vpop.f32.mrf.mxu1 }
  0xd7   : > { %v1569_v63 = vadd.f32 %v1560_v56, %v590_v40  ;;  %v1572_v0 = vadd.f32 %v1560_v56, %v734_v41  ;;  %v879_v8 = vmax.f32 %v1563_v60, 0.0  ;;  %v915_v9 = vmax.f32 %v1566_v61, 0.0 }
  0xd8   : > { %v1314_v42 = vpop.f32.mrf.mxu0  ;;  %v1350_v43 = vpop.f32.mrf.mxu1 }
  0xd9   : > { %v1575_v2 = vadd.f32 %v1314_v42, %v1560_v56  ;;  %v1578_v3 = vadd.f32 %v1350_v43, %v1560_v56  ;;  %v877_v13 = vmax.f32 %v1569_v63, 0.0  ;;  %v913_v14 = vmax.f32 %v1572_v0, 0.0 }
  0xda   : > { %v593_v44 = vpop.f32.mrf.mxu0  ;;  %v737_v45 = vpop.f32.mrf.mxu1 }
  0xdb   : > { %v1581_v5 = vadd.f32 %v1560_v56, %v593_v44  ;;  %v1584_v6 = vadd.f32 %v1560_v56, %v737_v45  ;;  %v880_v18 = vmax.f32 %v1575_v2, 0.0  ;;  %v916_v19 = vmax.f32 %v1578_v3, 0.0 }
  0xdc   : > { %v1317_v46 = vpop.f32.mrf.mxu0  ;;  %v1353_v47 = vpop.f32.mrf.mxu1 }
  0xdd   : > { %v1589_v10 = vadd.f32 %v1317_v46, %v1560_v56  ;;  %v1592_v11 = vadd.f32 %v1353_v47, %v1560_v56  ;;  %v878_v23 = vmax.f32 %v1581_v5, 0.0  ;;  %v914_v24 = vmax.f32 %v1584_v6, 0.0 }
  0xde   : > { %v606_v48 = vpop.f32.mrf.mxu0  ;;  %v750_v49 = vpop.f32.mrf.mxu1 }
  0xdf   : > { %v1597_v15 = vadd.f32 %v1560_v56, %v606_v48  ;;  %v1600_v16 = vadd.f32 %v1560_v56, %v750_v49  ;;  %v883_v28 = vmax.f32 %v1589_v10, 0.0  ;;  %v919_v29 = vmax.f32 %v1592_v11, 0.0 }
  0xe0   : > { %v1318_v50 = vpop.f32.mrf.mxu0  ;;  %v1354_v51 = vpop.f32.mrf.mxu1 }
  0xe1   : > { %v1605_v20 = vadd.f32 %v1318_v50, %v1560_v56  ;;  %v1608_v21 = vadd.f32 %v1354_v51, %v1560_v56  ;;  %v881_v33 = vmax.f32 %v1597_v15, 0.0  ;;  %v917_v34 = vmax.f32 %v1600_v16, 0.0 }
  0xe2   : > { %v609_v52 = vpop.f32.mrf.mxu0  ;;  %v753_v53 = vpop.f32.mrf.mxu1 }
  0xe3   : > { %v1613_v25 = vadd.f32 %v1560_v56, %v609_v52  ;;  %v1616_v26 = vadd.f32 %v1560_v56, %v753_v53 }
  0xe4   : > { %v1321_v54 = vpop.f32.mrf.mxu0  ;;  %v1357_v55 = vpop.f32.mrf.mxu1 }
  0xe5   : > { %v1621_v30 = vadd.f32 %v1321_v54, %v1560_v56  ;;  %v1624_v31 = vadd.f32 %v1357_v55, %v1560_v56  ;;  %v882_v43 = vmax.f32 %v1613_v25, 0.0  ;;  %v918_v44 = vmax.f32 %v1616_v26, 0.0 }
  0xe6   : > { %v622_v57 = vpop.f32.mrf.mxu0  ;;  %v766_v58 = vpop.f32.mrf.mxu1 }
  0xe7   : > { %v1629_v35 = vadd.f32 %v1560_v56, %v622_v57  ;;  %v1632_v36 = vadd.f32 %v1560_v56, %v766_v58 }
  0xe8   : > { %v1322_v59 = vpop.f32.mrf.mxu0  ;;  %v1358_v62 = vpop.f32.mrf.mxu1 }
  0xe9   : > { %v1637_v40 = vadd.f32 %v1322_v59, %v1560_v56  ;;  %v1640_v41 = vadd.f32 %v1358_v62, %v1560_v56  ;;  %v885_v53 = vmax.f32 %v1629_v35, 0.0  ;;  %v921_v54 = vmax.f32 %v1632_v36, 0.0 }
  0xea   : > { %v625_v1 = vpop.f32.mrf.mxu0  ;;  %v769_v4 = vpop.f32.mrf.mxu1 }
  0xeb   : > { %v1645_v45 = vadd.f32 %v1560_v56, %v625_v1  ;;  %v1648_v46 = vadd.f32 %v1560_v56, %v769_v4 }
  0xec   : > { %v1325_v7 = vpop.f32.mrf.mxu0  ;;  %v1361_v12 = vpop.f32.mrf.mxu1 }
  0xed   : > { %v1653_v50 = vadd.f32 %v1325_v7, %v1560_v56  ;;  %v1659_v55 = vadd.f32 %v1361_v12, %v1560_v56 }
  0xee   : > { %v638_v17 = vpop.f32.mrf.mxu0  ;;  %v782_v22 = vpop.f32.mrf.mxu1 }
  0xef   : > { %v1665_v63 = vadd.f32 %v1560_v56, %v638_v17  ;;  %v1670_v12 = vadd.f32 %v1560_v56, %v782_v22 }
  0xf0   : > { %v1326_v27 = vpop.f32.mrf.mxu0  ;;  %v1362_v32 = vpop.f32.mrf.mxu1 }
  0xf1   : > { %v1674_v59 = vadd.f32 %v1326_v27, %v1560_v56 }
  0xf2   : > { %v641_v37 = vpop.f32.mrf.mxu0  ;;  %v785_v42 = vpop.f32.mrf.mxu1 }
  0xf3   : > { %v1680_v38 = vadd.f32 %v1560_v56, %v641_v37  ;;  %v1687_v27 = vadd.f32 %v1560_v56, %v785_v42 }
  0xf4   : > { %v1329_v47 = vpop.f32.mrf.mxu0  ;;  %v1365_v52 = vpop.f32.mrf.mxu1 }
  0xf5   : > { %v663_v51 = vadd.f32 %v1329_v47, %v1560_v56  ;;  %v807_v57 = vadd.f32 %v1365_v52, %v1560_v56 }
  0xf6   : > { %v654_v58 = vpop.f32.mrf.mxu0  ;;  %v798_v4 = vpop.f32.mrf.mxu1 }
  0xf7   : > { %v895_v1 = vmax.f32 %v663_v51, 0.0  ;;  %v931_v49 = vmax.f32 %v807_v57, 0.0  ;;  %v1694_v7 = vadd.f32 %v1560_v56, %v798_v4  ;;  %v890_v4 = vmax.f32 %v1680_v38, 0.0 }
  0xf8   : > { %v1330_v48 = vpop.f32.mrf.mxu0  ;;  %v1366_v51 = vpop.f32.mrf.mxu1 }
  0xf9   : > { %v949_v62 = vmax.f32 %v877_v13, %v895_v1  ;;  %v666_v17 = vadd.f32 %v1330_v48, %v1560_v56  ;;  %v967_v22 = vmax.f32 %v913_v14, %v931_v49  ;;  %v810_v57 = vadd.f32 %v1366_v51, %v1560_v56 }
  0xfa   : > { %v657_v47 = vpop.f32.mrf.mxu0  ;;  %v1690_v13 = vadd.f32 %v1560_v56, %v654_v58  ;;  %v801_v1 = vpop.f32.mrf.mxu1  ;;  %v1698_v51 = vadd.f32 %v1362_v32, %v1560_v56 }
  0xfb   : > { %v896_v48 = vmax.f32 %v666_v17, 0.0  ;;  %v985_v37 = vmax.f32 %v949_v62, %v967_v22  ;;  %v932_v0 = vmax.f32 %v810_v57, 0.0 }
  0xfc   : > { %v1333_v14 = vpop.f32.mrf.mxu0  ;;  %v1369_v62 = vpop.f32.mrf.mxu1 }
  0xfd   : > { %v950_v42 = vmax.f32 %v878_v23, %v896_v48  ;;  %v679_v58 = vadd.f32 %v1333_v14, %v1560_v56  ;;  %v1251_v17 = vpack.c.bf16 %v985_v37, %v985_v37  ;;  %v968_v22 = vmax.f32 %v914_v24, %v932_v0 }
  0xfe   : > { %v823_v32 = vadd.f32 %v1369_v62, %v1560_v56  ;;  %v670_v57 = vpop.f32.mrf.mxu0  ;;  %v814_v23 = vpop.f32.mrf.mxu1  ;;  %v929_v48 = vmax.f32 %v1694_v7, 0.0  ;;  %v1720_v0 = vadd.f32 %v1560_v56, %v657_v47 }
  0xff   : > { %v899_v52 = vmax.f32 %v679_v58, 0.0  ;;  %v671_v5 = vadd.f32 %v1560_v56, %v670_v57  ;;  %1076 = vst.msk [vmem:[%s1703_s27] sm:$0xf] %vm1075_vm1, %v1251_v17  ;;  %v986_v14 = vmax.f32 %v950_v42, %v968_v22  ;;  %v815_v6 = vadd.f32 %v1560_v56, %v814_v23 }
 0x100   : > { %v935_v37 = vmax.f32 %v823_v32, 0.0  ;;  %v1334_v24 = vpop.f32.mrf.mxu0  ;;  %v1370_v39 = vpop.f32.mrf.mxu1  ;;  %v1729_v23 = vadd.f32 %v1560_v56, %v801_v1  ;;  %v894_v1 = vmax.f32 %v1720_v0, 0.0 }
 0x101   : > { %v953_v62 = vmax.f32 %v881_v33, %v899_v52  ;;  %v897_v58 = vmax.f32 %v671_v5, 0.0  ;;  %v682_v57 = vadd.f32 %v1334_v24, %v1560_v56  ;;  %v1252_v49 = vpack.c.bf16 %v986_v14, %v986_v14 }
 0x102   : > { %v971_v17 = vmax.f32 %v917_v34, %v935_v37  ;;  %v933_v42 = vmax.f32 %v815_v6, 0.0  ;;  %v826_v22 = vadd.f32 %v1370_v39, %v1560_v56  ;;  %v673_v32 = vpop.f32.mrf.mxu0  ;;  %v817_v52 = vpop.f32.mrf.mxu1 }
 0x103   : > { %v951_v47 = vmax.f32 %v879_v8, %v897_v58  ;;  %v900_v15 = vmax.f32 %v682_v57, 0.0  ;;  %v674_v33 = vadd.f32 %v1560_v56, %v673_v32  ;;  %1077 = vst.msk [vmem:[%s1703_s27 + $0x4] sm:$0xf] %vm1075_vm1, %v1252_v49  ;;  %v818_v39 = vadd.f32 %v1560_v56, %v817_v52 }
 0x104   : > { %v989_v5 = vmax.f32 %v953_v62, %v971_v17  ;;  %v969_v16 = vmax.f32 %v915_v9, %v933_v42  ;;  %v936_v34 = vmax.f32 %v826_v22, 0.0  ;;  %v1337_v14 = vpop.f32.mrf.mxu0  ;;  %v1373_v6 = vpop.f32.mrf.mxu1 }
 0x105   : > { %v954_v60 = vmax.f32 %v882_v43, %v900_v15  ;;  %v898_v8 = vmax.f32 %v674_v33, 0.0  ;;  %v695_v37 = vadd.f32 %v1337_v14, %v1560_v56  ;;  %v934_v9 = vmax.f32 %v818_v39, 0.0 }
 0x106   : > { %v1255_v24 = vpack.c.bf16 %v989_v5, %v989_v5  ;;  %v987_v49 = vmax.f32 %v951_v47, %v969_v16  ;;  %v972_v61 = vmax.f32 %v918_v44, %v936_v34  ;;  %v686_v62 = vpop.f32.mrf.mxu0  ;;  %v839_v17 = vadd.f32 %v1373_v6, %v1560_v56  ;;  %v830_v43 = vpop.f32.mrf.mxu1 }
 0x107   : > { %v952_v58 = vmax.f32 %v880_v18, %v898_v8  ;;  %v903_v57 = vmax.f32 %v695_v37, 0.0  ;;  %v687_v25 = vadd.f32 %v1560_v56, %v686_v62  ;;  %v970_v26 = vmax.f32 %v916_v19, %v934_v9 }
 0x108   : > { %1080 = vst.msk [vmem:[%s1703_s27 + $0x10] sm:$0xf] %vm1075_vm1, %v1255_v24  ;;  %v1253_v42 = vpack.c.bf16 %v987_v49, %v987_v49  ;;  %v990_v22 = vmax.f32 %v954_v60, %v972_v61  ;;  %v831_v44 = vadd.f32 %v1560_v56, %v830_v43  ;;  %v1338_v32 = vpop.f32.mrf.mxu0  ;;  %v939_v18 = vmax.f32 %v839_v17, 0.0  ;;  %v1374_v33 = vpop.f32.mrf.mxu1 }
 0x109   : > { %v957_v2 = vmax.f32 %v885_v53, %v903_v57  ;;  %v901_v47 = vmax.f32 %v687_v25, 0.0  ;;  %v698_v15 = vadd.f32 %v1338_v32, %v1560_v56  ;;  %v988_v5 = vmax.f32 %v952_v58, %v970_v26 }
 0x10a   : > { %1078 = vst.msk [vmem:[%s1703_s27 + $0x8] sm:$0xf] %vm1075_vm1, %v1253_v42  ;;  %v1256_v52 = vpack.c.bf16 %v990_v22, %v990_v22  ;;  %v937_v16 = vmax.f32 %v831_v44, 0.0  ;;  %v842_v3 = vadd.f32 %v1374_v33, %v1560_v56  ;;  %v689_v19 = vpop.f32.mrf.mxu0  ;;  %v975_v34 = vmax.f32 %v921_v54, %v939_v18  ;;  %v833_v14 = vpop.f32.mrf.mxu1 }
 0x10b   : > { %v955_v35 = vmax.f32 %v883_v28, %v901_v47  ;;  %v904_v53 = vmax.f32 %v698_v15, 0.0  ;;  %v690_v39 = vadd.f32 %v1560_v56, %v689_v19  ;;  %v1254_v60 = vpack.c.bf16 %v988_v5, %v988_v5 }
 0x10c   : > { %1081 = vst.msk [vmem:[%s1703_s27 + $0x14] sm:$0xf] %vm1075_vm1, %v1256_v52  ;;  %v973_v8 = vmax.f32 %v919_v29, %v937_v16  ;;  %v940_v37 = vmax.f32 %v842_v3, 0.0  ;;  %v834_v6 = vadd.f32 %v1560_v56, %v833_v14  ;;  %v1341_v24 = vpop.f32.mrf.mxu0  ;;  %v993_v36 = vmax.f32 %v957_v2, %v975_v34  ;;  %v1377_v61 = vpop.f32.mrf.mxu1 }
 0x10d   : > { %v1857_v54 = vmax.f32 %v1645_v45, 0.0  ;;  %v902_v49 = vmax.f32 %v690_v39, 0.0  ;;  %v711_v28 = vadd.f32 %v1341_v24, %v1560_v56  ;;  %1079 = vst.msk [vmem:[%s1703_s27 + $0xc] sm:$0xf] %vm1075_vm1, %v1254_v60  ;;  %v1858_v62 = vmax.f32 %v1648_v46, 0.0 }
 0x10e   : > { %v991_v9 = vmax.f32 %v955_v35, %v973_v8  ;;  %v938_v29 = vmax.f32 %v834_v6, 0.0  ;;  %v855_v58 = vadd.f32 %v1377_v61, %v1560_v56  ;;  %v702_v57 = vpop.f32.mrf.mxu0  ;;  %v1259_v17 = vpack.c.bf16 %v993_v36, %v993_v36  ;;  %v846_v22 = vpop.f32.mrf.mxu1 }
 0x10f   : > { %v958_v10 = vmax.f32 %v1857_v54, %v904_v53  ;;  %v976_v11 = vmax.f32 %v1858_v62, %v940_v37  ;;  %v1859_v25 = vmax.f32 %v1605_v20, 0.0  ;;  %v907_v43 = vmax.f32 %v711_v28, 0.0 }
 0x110   : > { %v703_v42 = vadd.f32 %v1560_v56, %v702_v57  ;;  %v1257_v26 = vpack.c.bf16 %v991_v9, %v991_v9  ;;  %v1860_v32 = vmax.f32 %v1608_v21, 0.0  ;;  %v943_v46 = vmax.f32 %v855_v58, 0.0  ;;  %v1342_v18 = vpop.f32.mrf.mxu0  ;;  %1084 = vst.msk [vmem:[%s1703_s27 + $0x20] sm:$0xf] %vm1075_vm1, %v1259_v17  ;;  %v1378_v5 = vpop.f32.mrf.mxu1 }
 0x111   : > { %v956_v45 = vmax.f32 %v1859_v25, %v902_v49  ;;  %v994_v44 = vmax.f32 %v958_v10, %v976_v11  ;;  %v1861_v47 = vmax.f32 %v1665_v63, 0.0  ;;  %v847_v33 = vadd.f32 %v1560_v56, %v846_v22 }
 0x112   : > { %v974_v2 = vmax.f32 %v1860_v32, %v938_v29  ;;  %v905_v20 = vmax.f32 %v703_v42, 0.0  ;;  %v714_v52 = vadd.f32 %v1342_v18, %v1560_v56  ;;  %1082 = vst.msk [vmem:[%s1703_s27 + $0x18] sm:$0xf] %vm1075_vm1, %v1257_v26  ;;  %v1862_v21 = vmax.f32 %v1670_v12, 0.0  ;;  %v705_v35 = vpop.f32.mrf.mxu0  ;;  %v849_v8 = vpop.f32.mrf.mxu1 }
 0x113   : > { %v961_v15 = vmax.f32 %v1861_v47, %v907_v43  ;;  %v1260_v16 = vpack.c.bf16 %v994_v44, %v994_v44  ;;  %v858_v34 = vadd.f32 %v1378_v5, %v1560_v56  ;;  %v1863_v63 = vmax.f32 %v1621_v30, 0.0 }
 0x114   : > { %v992_v3 = vmax.f32 %v956_v45, %v974_v2  ;;  %v979_v19 = vmax.f32 %v1862_v21, %v943_v46  ;;  %v941_v39 = vmax.f32 %v847_v33, 0.0  ;;  %v908_v14 = vmax.f32 %v714_v52, 0.0  ;;  %v1345_v36 = vpop.f32.mrf.mxu0  ;;  %v1381_v61 = vpop.f32.mrf.mxu1 }
 0x115   : > { %v959_v53 = vmax.f32 %v1863_v63, %v905_v20  ;;  %v706_v60 = vadd.f32 %v1560_v56, %v705_v35  ;;  %1085 = vst.msk [vmem:[%s1703_s27 + $0x24] sm:$0xf] %vm1075_vm1, %v1260_v16  ;;  %v944_v24 = vmax.f32 %v858_v34, 0.0  ;;  %v850_v12 = vadd.f32 %v1560_v56, %v849_v8 }
 0x116   : > { %v1258_v37 = vpack.c.bf16 %v992_v3, %v992_v3  ;;  %v997_v6 = vmax.f32 %v961_v15, %v979_v19  ;;  %v1864_v54 = vmax.f32 %v1624_v31, 0.0  ;;  %v962_v30 = vmax.f32 %v890_v4, %v908_v14  ;;  %v718_v57 = vpop.f32.mrf.mxu0  ;;  %v862_v45 = vpop.f32.mrf.mxu1 }
 0x117   : > { %v906_v49 = vmax.f32 %v706_v60, 0.0  ;;  %v727_v28 = vadd.f32 %v1345_v36, %v1560_v56  ;;  %v1865_v62 = vmax.f32 %v1687_v27, 0.0  ;;  %v942_v29 = vmax.f32 %v850_v12, 0.0 }
 0x118   : > { %v977_v10 = vmax.f32 %v1864_v54, %v941_v39  ;;  %1083 = vst.msk [vmem:[%s1703_s27 + $0x1c] sm:$0xf] %vm1075_vm1, %v1258_v37  ;;  %v1263_v9 = vpack.c.bf16 %v997_v6, %v997_v6  ;;  %v871_v58 = vadd.f32 %v1381_v61, %v1560_v56  ;;  %v1866_v17 = vmax.f32 %v1637_v40, 0.0  ;;  %v1346_v44 = vpop.f32.mrf.mxu0  ;;  %v1382_v47 = vpop.f32.mrf.mxu1 }
 0x119   : > { %v980_v11 = vmax.f32 %v1865_v62, %v944_v24  ;;  %v911_v25 = vmax.f32 %v727_v28, 0.0  ;;  %v719_v4 = vadd.f32 %v1560_v56, %v718_v57  ;;  %v1867_v42 = vmax.f32 %v1640_v41, 0.0 }
 0x11a   : > { %v995_v31 = vmax.f32 %v959_v53, %v977_v10  ;;  %v960_v38 = vmax.f32 %v1866_v17, %v906_v49  ;;  %1088 = vst.msk [vmem:[%s1703_s27 + $0x30] sm:$0xf] %vm1075_vm1, %v1263_v9  ;;  %v947_v22 = vmax.f32 %v871_v58, 0.0  ;;  %v863_v26 = vadd.f32 %v1560_v56, %v862_v45  ;;  %v721_v52 = vpop.f32.mrf.mxu0  ;;  %v865_v19 = vpop.f32.mrf.mxu1 }
 0x11b   : > { %v998_v43 = vmax.f32 %v962_v30, %v980_v11  ;;  %v978_v27 = vmax.f32 %v1867_v42, %v942_v29  ;;  %v1868_v2 = vmax.f32 %v1690_v13, 0.0  ;;  %v909_v46 = vmax.f32 %v719_v4, 0.0 }
 0x11c   : > { %v1261_v32 = vpack.c.bf16 %v995_v31, %v995_v31  ;;  %v730_v18 = vadd.f32 %v1346_v44, %v1560_v56  ;;  %v983_v33 = vmax.f32 %v929_v48, %v947_v22  ;;  %v945_v41 = vmax.f32 %v863_v26, 0.0 }
 0x11d   : > { %v965_v40 = vmax.f32 %v1868_v2, %v911_v25  ;;  %v1264_v15 = vpack.c.bf16 %v998_v43, %v998_v43  ;;  %v996_v20 = vmax.f32 %v960_v38, %v978_v27  ;;  %v1869_v5 = vmax.f32 %v1653_v50, 0.0 }
 0x11e   : > { %1086 = vst.msk [vmem:[%s1703_s27 + $0x28] sm:$0xf] %vm1075_vm1, %v1261_v32  ;;  %v912_v13 = vmax.f32 %v730_v18, 0.0  ;;  %v874_v3 = vadd.f32 %v1382_v47, %v1560_v56  ;;  %v722_v21 = vadd.f32 %v1560_v56, %v721_v52  ;;  %v1870_v48 = vmax.f32 %v1659_v55, 0.0 }
 0x11f   : > { %v963_v16 = vmax.f32 %v1869_v5, %v909_v46  ;;  %1089 = vst.msk [vmem:[%s1703_s27 + $0x34] sm:$0xf] %vm1075_vm1, %v1264_v15  ;;  %v1262_v34 = vpack.c.bf16 %v996_v20, %v996_v20  ;;  %v1001_v7 = vmax.f32 %v965_v40, %v983_v33  ;;  %v866_v63 = vadd.f32 %v1560_v56, %v865_v19 }
 0x120   : > { %v981_v35 = vmax.f32 %v1870_v48, %v945_v41  ;;  %v930_v50 = vmax.f32 %v1729_v23, 0.0  ;;  %v966_v53 = vmax.f32 %v894_v1, %v912_v13  ;;  %v948_v39 = vmax.f32 %v874_v3, 0.0 }
 0x121   : > { %v910_v14 = vmax.f32 %v722_v21, 0.0  ;;  %v928_v60 = vmax.f32 %v1698_v51, 0.0  ;;  %1087 = vst.msk [vmem:[%s1703_s27 + $0x2c] sm:$0xf] %vm1075_vm1, %v1262_v34  ;;  %v1267_v8 = vpack.c.bf16 %v1001_v7, %v1001_v7  ;;  %v946_v55 = vmax.f32 %v866_v63, 0.0 }
 0x122   : > { %v999_v37 = vmax.f32 %v963_v16, %v981_v35  ;;  %v984_v6 = vmax.f32 %v930_v50, %v948_v39  ;;  %v1871_v56 = vmax.f32 %v1674_v59, 0.0 }
 0x123   : > { %1092 = vst.msk [vmem:[%s1703_s27 + $0x40] sm:$0xf] %vm1075_vm1, %v1267_v8  ;;  %v982_v0 = vmax.f32 %v928_v60, %v946_v55 }
 0x124   : > { %v964_v24 = vmax.f32 %v1871_v56, %v910_v14  ;;  %v1265_v23 = vpack.c.bf16 %v999_v37, %v999_v37  ;;  %v1002_v1 = vmax.f32 %v966_v53, %v984_v6 }
 0x126   : > { %1090 = vst.msk [vmem:[%s1703_s27 + $0x38] sm:$0xf] %vm1075_vm1, %v1265_v23  ;;  %v1000_v12 = vmax.f32 %v964_v24, %v982_v0  ;;  %v1268_v36 = vpack.c.bf16 %v1002_v1, %v1002_v1 }
 0x128   : > { %v1266_v51 = vpack.c.bf16 %v1000_v12, %v1000_v12  ;;  %1093 = vst.msk [vmem:[%s1703_s27 + $0x44] sm:$0xf] %vm1075_vm1, %v1268_v36 }
 0x12a   : > { %1091 = vst.msk [vmem:[%s1703_s27 + $0x3c] sm:$0xf] %vm1075_vm1, %v1266_v51 }
 0x12b PF: > { %s13_s12 = sadd.s32 1, %s1441_s12  }
 0x12c   : > { %p10_p4 = scmp.ge.s32.totalorder %s13_s12, 4  }
 0x12e   :  { %12 = sbr.rel (!%p10_p4) target bundleno = 1 (0x1), region = 62 }

// kernel: simple_cnn_forward.3
= control target key start
LH: loop header
LB: loop body
LE: loop exit
PB: predicated region body
PF: predicated region fallthrough
CT: control target
= control target key end

     0   :  { %12 = vsyncpa [#allocation5], 0  ;;  %s9780_s0 = inlined_call_operand.vmem [shape: bf16[2,64,800], index: 0, kind: input, shape index: {}]   ;;  %s9781_s1 = inlined_call_operand.vmem [shape: bf16[800,128], index: 1, kind: input, shape index: {}]   ;;  %s9782_s2 = inlined_call_operand.vmem [shape: f32[1,128], index: 2, kind: input, shape index: {}]   ;;  %s9783_s3 = inlined_call_operand.vmem [shape: bf16[2048,512], index: 3, kind: input, shape index: {}]   ;;  %s9784_s4 = inlined_call_operand.vmem [shape: f32[1,512], index: 4, kind: input, shape index: {}]   ;;  %s9785_s5 = inlined_call_operand.vmem [shape: bf16[512,128], index: 5, kind: input, shape index: {}]   ;;  %s9786_s6 = inlined_call_operand.vmem [shape: f32[1,128], index: 6, kind: input, shape index: {}]   ;;  %s9787_s7 = inlined_call_operand.hbm [shape: f32[2,1,128], index: 7, kind: output, shape index: {}]  }
   0x1   :  { %14 = vsyncpa [#allocation5 + $0x1], 0  ;;  %s7668_s24 = smov 0   ;;  %s7670_s25 = smov 0  }
   0x2   :  { %s7672_s26 = smov 0   ;;  %s7674_s27 = smov 0  }
   0x3 LB: > { %s7689_s28 = sadd.s32 4294967295, %s7624_s27   ;;  %s5782_s29 = sadd.s32 4294967294, %s7624_s27   ;;  %s7624_s27 = sphi %s7674_s27, %s9795_s27   ;;  %s7620_s26 = sphi %s7672_s26, %s9794_s26   ;;  %s7616_s25 = sphi %s7670_s25, %s9793_s25   ;;  %s7612_s24 = sphi %s7668_s24, %s9792_s24  }
   0x4   : > { %s7693_s30 = sadd.s32 1, %s7624_s27   ;;  %s179_s8 = sadd.s32 1, %s7620_s26 }
   0x5   : > { %s176_s9 = ssub.s32 %s7624_s27, %s7693_s30  ;;  %p189_p0 = scmp.ne.s32.totalorder %s7620_s26, %s7616_s25 }
   0x6   : > { %p177_p1 = scmp.eq.s32.totalorder %s176_s9, 0  ;;  %p190_p2 = scmp.eq.s32.totalorder %s7689_s28, 1 }
   0x7   : > { %p195_p3 = scmp.ne.s32.totalorder %s7616_s25, %s7612_s24  ;;  %p196_p4 = scmp.eq.s32.totalorder %s5782_s29, 1 }
   0x8   : > { %s7704_s10 = scalar_select %p177_p1, %s7620_s26, %s179_s8  }
   0x9   : > { %p7706_p5 = por %p190_p2, %p189_p0  ;;  %p7710_p6 = por %p196_p4, %p195_p3 }
   0xa   : > { %p5785_p7 = scmp.ge.s32.totalorder %s7624_s27, 1  ;;  %p240_p8 = scmp.lt.s32.totalorder %s7624_s27, 3 }
   0xc   : > { %p241_p9 = pnand %p5785_p7, %p240_p8 }
   0xd   : > { %p271_p10 = scmp.lt.s32.totalorder (!%p241_p9), %s7689_s28, 1  ;;  %s269_s8 = sand.u32 (!%p241_p9), 1, %s7616_s25  }
   0xe   : > { %244 = sbr.rel (%p241_p9) target bundleno = 1220 (0x4c4), region = 48  ;;  %s6438_s15 = sshll.u32 (!%p241_p9), %s7689_s28, 4 }
   0xf   : > { %s270_s16 = scalar_lea.vmem (!%p241_p9), [#allocation4], %s269_s8  ;;  %s9745_s18 = scalar_lea.hbm (!%p241_p9), %s9787_s7, %s6438_s15 }
  0x10   : > { %s5727_s17 = sshll.u32 (!%p241_p9), %s270_s16, 4  ;;  %s5715_s20 = scalar_lea.sflag (!%p241_p9), [#allocation5], %s269_s8  ;;  %s5728_s17 = int_to_ptr.vmem [resolvable:$true] %s5727_s17 }
  0x11   : > { %s7564_s21 = scalar_lea.vmem (!%p241_p9), %s5728_s17, 16 }
  0x12   : > { %p7565_p11 = scmp.ne.s32.totalorder (!%p241_p9), %s5728_s17, %s7564_s21 }
  0x13   : > { %v6671_v0 = vld [vmem:[%s9781_s1 + $0x78] sm:$0xff]   ;;  %v6675_v4 = vld [vmem:[%s9781_s1 + $0x70] sm:$0xff]   ;;  %v6679_v8 = vld [vmem:[%s9781_s1 + $0x68] sm:$0xff]   ;;  %s272_s13 = scalar_select %p271_p10, %s7689_s28, 1  ;;  %vm856_vm0 = vcmask 261120   ;;  %vm1154_vm1 = vcmask 1040384  }
  0x14   : > { %v6672_v1 = vld [vmem:[%s9781_s1 + $0x38] sm:$0xff]   ;;  %6448 = vmatprep.subr.bf16.mxu0 %v6671_v0  ;;  %v6676_v5 = vld [vmem:[%s9781_s1 + $0x30] sm:$0xff]   ;;  %v6680_v9 = vld [vmem:[%s9781_s1 + $0x28] sm:$0xff]   ;;  %vm1155_vm2 = vsmask.f32 256  ;;  %p7566_p12 = pnand %p7565_p11, %p7706_p5  ;;  %s7627_s28 = smov [#allocation4]  }
  0x15   : > { %v6673_v2 = vld [vmem:[%s9781_s1 + $0xf8] sm:$0xff]   ;;  %6449 = vmatpush3.bf16.msra.mxu0 %v6672_v1  ;;  %v6677_v6 = vld [vmem:[%s9781_s1 + $0xf0] sm:$0xff]   ;;  %v6681_v10 = vld [vmem:[%s9781_s1 + $0xe8] sm:$0xff]   ;;  %s6630_s22 = smul.u32 224, %s272_s13  ;;  %s7568_s23 = sshll.u32 %s7627_s28, 4  ;;  %s7569_s23 = int_to_ptr.vmem [resolvable:$false] %s7568_s23 }
  0x16   : > { %v6674_v3 = vld [vmem:[%s9781_s1 + $0xb8] sm:$0xff]   ;;  %6488 = vmatprep.subr.bf16.mxu1 %v6673_v2  ;;  %6450 = vmatprep.subr.bf16.mxu0 %v6675_v4  ;;  %v6678_v7 = vld [vmem:[%s9781_s1 + $0xb0] sm:$0xff]   ;;  %v6682_v11 = vld [vmem:[%s9781_s1 + $0xa8] sm:$0xff]   ;;  %p7567_p13 = pneg %p7566_p12  ;;  %s7570_s29 = scalar_lea.vmem %s7569_s23, 32 }
  0x17   : > { %6489 = vmatpush3.bf16.msra.mxu1 %v6674_v3  ;;  %v6683_v12 = vld [vmem:[%s9781_s1 + $0x60] sm:$0xff]   ;;  %v6687_v16 = vld [vmem:[%s9781_s1 + $0x58] sm:$0xff]   ;;  %v6691_v20 = vld [vmem:[%s9781_s1 + $0x50] sm:$0xff]   ;;  %s7808_s19 = scalar_lea.vmem %s9780_s0, %s6630_s22  ;;  %p7571_p0 = scmp.lt.s32.totalorder %s5728_s17, %s7569_s23 }
  0x18   : > { %6490 = vmatprep.subr.bf16.mxu1 %v6677_v6  ;;  %v6684_v13 = vld [vmem:[%s9781_s1 + $0x20] sm:$0xff]   ;;  %v6688_v17 = vld [vmem:[%s9781_s1 + $0x18] sm:$0xff]   ;;  %v6692_v21 = vld [vmem:[%s9781_s1 + $0x10] sm:$0xff]   ;;  %p7572_p1 = scmp.lt.s32.totalorder %s7570_s29, %s7564_s21 }
  0x19   : > { %6451 = vmatpush3.bf16.msra.mxu0 %v6676_v5  ;;  %v6685_v14 = vld [vmem:[%s9781_s1 + $0xe0] sm:$0xff]   ;;  %v6689_v18 = vld [vmem:[%s9781_s1 + $0xd8] sm:$0xff]   ;;  %v6693_v22 = vld [vmem:[%s9781_s1 + $0xd0] sm:$0xff]  }
  0x1a   : > { %6452 = vmatprep.subr.bf16.mxu0 %v6679_v8  ;;  %v6686_v15 = vld [vmem:[%s9781_s1 + $0xa0] sm:$0xff]   ;;  %v6690_v19 = vld [vmem:[%s9781_s1 + $0x98] sm:$0xff]   ;;  %v6694_v23 = vld [vmem:[%s9781_s1 + $0x90] sm:$0xff]   ;;  %p7573_p2 = por %p7572_p1, %p7571_p0 }
  0x1b   : > { %6491 = vmatpush3.bf16.msra.mxu1 %v6678_v7  ;;  %v6695_v24 = vld [vmem:[%s9781_s1 + $0x48] sm:$0xff]   ;;  %v6699_v28 = vld [vmem:[%s9781_s1 + $0x40] sm:$0xff]   ;;  %v6706_v34 = vld [vmem:[%s9781_s1 + $0x178] sm:$0xff]  }
  0x1c   : > { %6492 = vmatprep.subr.bf16.mxu1 %v6681_v10  ;;  %v6696_v25 = vld [vmem:[%s9781_s1 + $0x8] sm:$0xff]   ;;  %v6700_v29 = vld [vmem:[%s9781_s1] sm:$0xff]   ;;  %v6710_v37 = vld [vmem:[%s9781_s1 + $0x138] sm:$0xff]   ;;  %p7574_p3 = pnand %p7573_p2, %p7567_p13 }
  0x1d   : > { %6453 = vmatpush3.bf16.msra.mxu0 %v6680_v9  ;;  %v6697_v26 = vld [vmem:[%s9781_s1 + $0xc8] sm:$0xff]   ;;  %v6701_v30 = vld [vmem:[%s9781_s1 + $0xc0] sm:$0xff]   ;;  %v6711_v38 = vld [vmem:[%s9781_s1 + $0x170] sm:$0xff]  }
  0x1e   : > { %6454 = vmatprep.subr.bf16.mxu0 %v6683_v12  ;;  %v6698_v27 = vld [vmem:[%s9781_s1 + $0x88] sm:$0xff]   ;;  %v6702_v31 = vld [vmem:[%s7808_s19] ss:$28 sps:$4 sm:$0xff]   ;;  %v6712_v39 = vld [vmem:[%s9781_s1 + $0x130] sm:$0xff]  }
  0x1f   : > { %6493 = vmatpush3.bf16.msra.mxu1 %v6682_v11  ;;  %v6704_v32 = vld [vmem:[%s7808_s19 + $0x4] ss:$28 sps:$4 sm:$0xff]   ;;  %v6709_v36 = vld [vmem:[%s7808_s19 + $0xc] ss:$28 sps:$4 sm:$0xff]   ;;  %v6713_v40 = vld [vmem:[%s7808_s19 + $0x3c] ss:$28 sps:$4 sm:$0xff]  }
  0x20   : > { %6494 = vmatprep.subr.bf16.mxu1 %v6685_v14  ;;  %v6705_v33 = vld [vmem:[%s9781_s1 + $0x80] sm:$0xff]   ;;  %901 = vmatprep.mubr.bf16.mxu0 %v6704_v32  ;;  %v6715_v41 = vld [vmem:[%s7808_s19 + $0x38] ss:$28 sps:$4 sm:$0xff]   ;;  %v6716_v42 = vld [vmem:[%s9781_s1 + $0x168] sm:$0xff]  }
  0x21   : > { %6455 = vmatpush3.bf16.msra.mxu0 %v6684_v13  ;;  %v6707_v35 = vld [vmem:[%s7808_s19 + $0x8] ss:$28 sps:$4 sm:$0xff]   ;;  %966 = vmatprep.mubr.bf16.mxu1 %v6709_v36  ;;  %v6720_v45 = vld [vmem:[%s7808_s19 + $0x40] ss:$28 sps:$4 sm:$0xff]   ;;  %v6723_v48 = vld [vmem:[%s7808_s19 + $0x74] ss:$28 sps:$4 sm:$0xff]  }
  0x22   : > { %6456 = vmatprep.subr.bf16.mxu0 %v6687_v16  ;;  %v6717_v43 = vld [vmem:[%s7808_s19 + $0x44] ss:$28 sps:$4 sm:$0xff]   ;;  %v6719_v44 = vld [vmem:[%s9781_s1 + $0x128] sm:$0xff]   ;;  %v6726_v50 = vld [vmem:[%s9781_s1 + $0x158] sm:$0xff]  }
  0x23   : > { %6495 = vmatpush3.bf16.msra.mxu1 %v6686_v15  ;;  %v6721_v46 = vld [vmem:[%s9781_s1 + $0x160] sm:$0xff]   ;;  %v6725_v49 = vld [vmem:[%s7808_s19 + $0x70] ss:$28 sps:$4 sm:$0xff]   ;;  %v6727_v51 = vld [vmem:[%s7808_s19 + $0x7c] ss:$28 sps:$4 sm:$0xff]  }
  0x24   : > { %6496 = vmatprep.subr.bf16.mxu1 %v6689_v18  ;;  %v6722_v47 = vld [vmem:[%s9781_s1 + $0x120] sm:$0xff]   ;;  %v6729_v52 = vld [vmem:[%s9781_s1 + $0x118] sm:$0xff]   ;;  %v6731_v54 = vld [vmem:[%s9781_s1 + $0x150] sm:$0xff]  }
  0x25   : > { %6457 = vmatpush3.bf16.msra.mxu0 %v6688_v17  ;;  %v6730_v53 = vld [vmem:[%s7808_s19 + $0x78] ss:$28 sps:$4 sm:$0xff]   ;;  %v6732_v55 = vld [vmem:[%s9781_s1 + $0x188] sm:$0xff]   ;;  %v6742_v63 = vld [vmem:[%s9781_s1 + $0x140] sm:$0xff]  }
  0x26   : > { %6458 = vmatprep.subr.bf16.mxu0 %v6691_v20  ;;  %v6733_v56 = vld [vmem:[%s9781_s1 + $0x110] sm:$0xff]   ;;  %v6734_v57 = vld [vmem:[%s7808_s19 + $0xac] ss:$28 sps:$4 sm:$0xff]   ;;  %v6743_v0 = vld [vmem:[%s9781_s1 + $0x100] sm:$0xff]  }
  0x27   : > { %6497 = vmatpush3.bf16.msra.mxu1 %v6690_v19  ;;  %v6736_v58 = vld [vmem:[%s7808_s19 + $0xa8] ss:$28 sps:$4 sm:$0xff]   ;;  %v6738_v60 = vld [vmem:[%s7808_s19 + $0xb4] ss:$28 sps:$4 sm:$0xff]   ;;  %v6757_v10 = vld [vmem:[%s7808_s19 + $0xc0] ss:$28 sps:$4 sm:$0xff]  }
  0x28   : > { %6498 = vmatprep.subr.bf16.mxu1 %v6693_v22  ;;  %v6737_v59 = vld [vmem:[%s9781_s1 + $0x148] sm:$0xff]   ;;  %v6746_v1 = vld [vmem:[%s7808_s19 + $0x14] ss:$28 sps:$4 sm:$0xff]   ;;  %v6747_v2 = vld [vmem:[%s9781_s1 + $0x180] sm:$0xff]  }
  0x29   : > { %6459 = vmatpush3.bf16.msra.mxu0 %v6692_v21  ;;  %v6740_v61 = vld [vmem:[%s9781_s1 + $0x108] sm:$0xff]   ;;  %v6748_v3 = vld [vmem:[%s7808_s19 + $0x18] ss:$28 sps:$4 sm:$0xff]   ;;  %v6753_v9 = vld [vmem:[%s7808_s19 + $0x84] ss:$28 sps:$4 sm:$0xff]  }
  0x2a   : > { %6460 = vmatprep.subr.bf16.mxu0 %v6695_v24  ;;  %v6741_v62 = vld [vmem:[%s7808_s19 + $0xb0] ss:$28 sps:$4 sm:$0xff]   ;;  %v6756_v7 = vld [vmem:[%s7808_s19 + $0x88] ss:$28 sps:$4 sm:$0xff]   ;;  %v6755_v11 = vld [vmem:[%s7808_s19 + $0x80] ss:$28 sps:$4 sm:$0xff]  }
  0x2b   : > { %6499 = vmatpush3.bf16.msra.mxu1 %v6694_v23  ;;  %v6744_v4 = vld [vmem:[%s7808_s19 + $0x10] ss:$28 sps:$4 sm:$0xff]   ;;  %v6752_v8 = vld [vmem:[%s7808_s19 + $0x48] ss:$28 sps:$4 sm:$0xff]   ;;  %v6758_v12 = vld [vmem:[%s7808_s19 + $0xbc] ss:$28 sps:$4 sm:$0xff]  }
  0x2c   : > { %6500 = vmatprep.subr.bf16.mxu1 %v6697_v26  ;;  %v6749_v5 = vld [vmem:[%s7808_s19 + $0x50] ss:$28 sps:$4 sm:$0xff]   ;;  %v6760_v13 = vld [vmem:[%s7808_s19 + $0xb8] ss:$28 sps:$4 sm:$0xff]   ;;  %vm8120_vm3 = vmand %vm1154_vm1, %vm1155_vm2 }
  0x2d   : > { %6461 = vmatpush3.bf16.msra.mxu0 %v6696_v25  ;;  %v6750_v6 = vld [vmem:[%s7808_s19 + $0x4c] ss:$28 sps:$4 sm:$0xff]   ;;  %v6763_v14 = vld [vmem:[%s9783_s3 + $0xe4] ss:$16 sps:$4 sm:$0xff]   ;;  %v6761_v15 = vld [vmem:[%s9783_s3 + $0xe0] ss:$16 sps:$4 sm:$0xff]  }
  0x2e   : > { %6462 = vmatprep.subr.bf16.mxu0 %v6699_v28  ;;  %v6766_v16 = vld [vmem:[%s9783_s3 + $0x2e4] ss:$16 sps:$4 sm:$0xff]   ;;  %v6764_v17 = vld [vmem:[%s9783_s3 + $0x2e0] ss:$16 sps:$4 sm:$0xff]  }
  0x2f   : > { %6501 = vmatpush3.bf16.msra.mxu1 %v6698_v27  ;;  %v6769_v18 = vld [vmem:[%s9783_s3 + $0xc4] ss:$16 sps:$4 sm:$0xff]   ;;  %v6767_v19 = vld [vmem:[%s9783_s3 + $0xc0] ss:$16 sps:$4 sm:$0xff]  }
  0x30   : > { %6502 = vmatprep.subr.bf16.mxu1 %v6701_v30  ;;  %v6772_v20 = vld [vmem:[%s9783_s3 + $0x2c4] ss:$16 sps:$4 sm:$0xff]   ;;  %v6770_v21 = vld [vmem:[%s9783_s3 + $0x2c0] ss:$16 sps:$4 sm:$0xff]  }
  0x31   : > { %6463 = vmatpush3.bf16.msra.mxu0 %v6700_v29  ;;  %v6775_v22 = vld [vmem:[%s9783_s3 + $0xa4] ss:$16 sps:$4 sm:$0xff]   ;;  %v6773_v23 = vld [vmem:[%s9783_s3 + $0xa0] ss:$16 sps:$4 sm:$0xff]  }
  0x32   : > { %6528 = vmatprep.subr.bf16.mxu0 %v6706_v34  ;;  %v6778_v24 = vld [vmem:[%s9783_s3 + $0x2a4] ss:$16 sps:$4 sm:$0xff]   ;;  %v6776_v25 = vld [vmem:[%s9783_s3 + $0x2a0] ss:$16 sps:$4 sm:$0xff]  }
  0x33   : > { %6503 = vmatpush3.bf16.msra.mxu1 %v6705_v33  ;;  %v6781_v26 = vld [vmem:[%s9783_s3 + $0x84] ss:$16 sps:$4 sm:$0xff]   ;;  %v6779_v27 = vld [vmem:[%s9783_s3 + $0x80] ss:$16 sps:$4 sm:$0xff]  }
  0x34   : > { %902 = vmatmul.mubr.bf16.vlgmr.msra.gmra.mxu0 %v6702_v31  ;;  %6618 = vmatprep.subr.bf16.mxu1 %v6732_v55  ;;  %v6784_v28 = vld [vmem:[%s9783_s3 + $0x284] ss:$16 sps:$4 sm:$0xff]   ;;  %v6782_v29 = vld [vmem:[%s9783_s3 + $0x280] ss:$16 sps:$4 sm:$0xff]  }
  0x35   : > { %6529 = vmatpush3.bf16.msra.mxu0 %v6710_v37  ;;  %909 = vmatprep.mubr.bf16.mxu0 %v6713_v40  ;;  %v6787_v30 = vld [vmem:[%s9783_s3 + $0x64] ss:$16 sps:$4 sm:$0xff]   ;;  %v6785_v31 = vld [vmem:[%s9783_s3 + $0x60] ss:$16 sps:$4 sm:$0xff]  }
  0x36   : > { %967 = vmatmul.mubr.bf16.vlgmr.msra.gmra.mxu1 %v6707_v35  ;;  %6530 = vmatprep.subr.bf16.mxu0 %v6711_v38  ;;  %v6790_v32 = vld [vmem:[%s9783_s3 + $0x264] ss:$16 sps:$4 sm:$0xff]   ;;  %v6788_v33 = vld [vmem:[%s9783_s3 + $0x260] ss:$16 sps:$4 sm:$0xff]  }
  0x37   : > { %974 = vmatprep.mubr.bf16.mxu1 %v6717_v43  ;;  %6619 = vmatpush3.bf16.msra.mxu1 %v6732_v55  ;;  %v6793_v34 = vld [vmem:[%s9783_s3 + $0x44] ss:$16 sps:$4 sm:$0xff]   ;;  %v6791_v35 = vld [vmem:[%s9783_s3 + $0x40] ss:$16 sps:$4 sm:$0xff]  }
  0x38   : > { %6620 = vmatprep.subr.bf16.mxu1 %v6747_v2  ;;  %v6796_v36 = vld [vmem:[%s9783_s3 + $0x244] ss:$16 sps:$4 sm:$0xff]   ;;  %v6794_v37 = vld [vmem:[%s9783_s3 + $0x240] ss:$16 sps:$4 sm:$0xff]  }
  0x39   : > { %6531 = vmatpush3.bf16.msra.mxu0 %v6712_v39  ;;  %v6799_v38 = vld [vmem:[%s9783_s3 + $0x24] ss:$16 sps:$4 sm:$0xff]   ;;  %v6797_v39 = vld [vmem:[%s9783_s3 + $0x20] ss:$16 sps:$4 sm:$0xff]  }
  0x3a   : > { %6532 = vmatprep.subr.bf16.mxu0 %v6716_v42  ;;  %v6802_v40 = vld [vmem:[%s9783_s3 + $0x224] ss:$16 sps:$4 sm:$0xff]   ;;  %v6803_v43 = vld [vmem:[%s9783_s3] ss:$16 sps:$4 sm:$0xff]  }
  0x3b   : > { %6621 = vmatpush3.bf16.msra.mxu1 %v6747_v2  ;;  %v6805_v42 = vld [vmem:[%s9783_s3 + $0x4] ss:$16 sps:$4 sm:$0xff]   ;;  %v6821_v55 = vld [vmem:[%s9783_s3 + $0x1a0] ss:$16 sps:$4 sm:$0xff]  }
  0x3c   : > { %910 = vmatmul.mubr.bf16.gmra.mxu0 %v6715_v41  ;;  %4753 = vmatprep.subr.bf16.mxu1 %v6766_v16  ;;  %v6800_v41 = vld [vmem:[%s9783_s3 + $0x220] ss:$16 sps:$4 sm:$0xff]   ;;  %v6841_v2 = vld [vmem:[%s9783_s3 + $0x144] ss:$16 sps:$4 sm:$0xff]  }
  0x3d   : > { %6533 = vmatpush3.bf16.msra.mxu0 %v6719_v44  ;;  %917 = vmatprep.mubr.bf16.mxu0 %v6723_v48  ;;  %v6808_v44 = vld [vmem:[%s9783_s3 + $0x204] ss:$16 sps:$4 sm:$0xff]  }
  0x3e   : > { %975 = vmatmul.mubr.bf16.gmra.mxu1 %v6720_v45  ;;  %6534 = vmatprep.subr.bf16.mxu0 %v6721_v46  ;;  %v6806_v45 = vld [vmem:[%s9783_s3 + $0x200] ss:$16 sps:$4 sm:$0xff]   ;;  %v6811_v46 = vld [vmem:[%s9783_s3 + $0x1e4] ss:$16 sps:$4 sm:$0xff]  }
  0x3f   : > { %982 = vmatprep.mubr.bf16.mxu1 %v6727_v51  ;;  %v6814_v48 = vld [vmem:[%s9783_s3 + $0x3e4] ss:$16 sps:$4 sm:$0xff]   ;;  %v6815_v51 = vld [vmem:[%s9783_s3 + $0x1c0] ss:$16 sps:$4 sm:$0xff]  }
  0x41   : > { %6535 = vmatpush3.bf16.msra.mxu0 %v6722_v47  ;;  %v6809_v47 = vld [vmem:[%s9783_s3 + $0x1e0] ss:$16 sps:$4 sm:$0xff]  }
  0x42   : > { %6536 = vmatprep.subr.bf16.mxu0 %v6726_v50  ;;  %v6817_v50 = vld [vmem:[%s9783_s3 + $0x1c4] ss:$16 sps:$4 sm:$0xff]  }
  0x44   : > { %918 = vmatmul.mubr.bf16.gmra.mxu0 %v6725_v49  ;;  %v6812_v49 = vld [vmem:[%s9783_s3 + $0x3e0] ss:$16 sps:$4 sm:$0xff]  }
  0x45   : > { %6537 = vmatpush3.bf16.msra.mxu0 %v6729_v52  ;;  %925 = vmatprep.mubr.bf16.mxu0 %v6734_v57  ;;  %v6820_v52 = vld [vmem:[%s9783_s3 + $0x3c4] ss:$16 sps:$4 sm:$0xff]   ;;  %v6824_v57 = vld [vmem:[%s9783_s3 + $0x3a0] ss:$16 sps:$4 sm:$0xff]  }
  0x46   : > { %983 = vmatmul.mubr.bf16.gmra.mxu1 %v6730_v53  ;;  %6538 = vmatprep.subr.bf16.mxu0 %v6731_v54  ;;  %v6818_v53 = vld [vmem:[%s9783_s3 + $0x3c0] ss:$16 sps:$4 sm:$0xff]   ;;  %v6823_v54 = vld [vmem:[%s9783_s3 + $0x1a4] ss:$16 sps:$4 sm:$0xff]  }
  0x47   : > { %990 = vmatprep.mubr.bf16.mxu1 %v6738_v60  ;;  %v6832_v60 = vld [vmem:[%s9783_s3 + $0x384] ss:$16 sps:$4 sm:$0xff]  }
  0x49   : > { %6539 = vmatpush3.bf16.msra.mxu0 %v6733_v56  ;;  %v6826_v56 = vld [vmem:[%s9783_s3 + $0x3a4] ss:$16 sps:$4 sm:$0xff]  }
  0x4a   : > { %6540 = vmatprep.subr.bf16.mxu0 %v6737_v59  ;;  %v6827_v59 = vld [vmem:[%s9783_s3 + $0x180] ss:$16 sps:$4 sm:$0xff]  }
  0x4c   : > { %926 = vmatmul.mubr.bf16.gmra.mxu0 %v6736_v58  ;;  %v6829_v58 = vld [vmem:[%s9783_s3 + $0x184] ss:$16 sps:$4 sm:$0xff]  }
  0x4d   : > { %6541 = vmatpush3.bf16.msra.mxu0 %v6740_v61  ;;  %1031 = vmatprep.mubr.bf16.mxu0 %v6746_v1  ;;  %v6830_v61 = vld [vmem:[%s9783_s3 + $0x380] ss:$16 sps:$4 sm:$0xff]  }
  0x4e   : > { %991 = vmatmul.mubr.bf16.gmra.mxu1 %v6741_v62  ;;  %6542 = vmatprep.subr.bf16.mxu0 %v6742_v63  ;;  %v6833_v62 = vld [vmem:[%s9783_s3 + $0x160] ss:$16 sps:$4 sm:$0xff]   ;;  %v6835_v63 = vld [vmem:[%s9783_s3 + $0x164] ss:$16 sps:$4 sm:$0xff]  }
  0x4f   : > { %6622 = vmatprep.mubr.msk.bf16.mxu1 %vm856_vm0, %v6748_v3  ;;  %v6836_v1 = vld [vmem:[%s9783_s3 + $0x360] ss:$16 sps:$4 sm:$0xff]   ;;  %v6844_v3 = vld [vmem:[%s9783_s3 + $0x344] ss:$16 sps:$4 sm:$0xff]  }
  0x51   : > { %6543 = vmatpush3.bf16.msra.mxu0 %v6743_v0  ;;  %v6838_v0 = vld [vmem:[%s9783_s3 + $0x364] ss:$16 sps:$4 sm:$0xff]  }
  0x52   : > { %4712 = vmatprep.subr.bf16.mxu0 %v6763_v14  ;;  %v6859_v14 = vld [vmem:[%s9783_s3 + $0x4e4] ss:$16 sps:$4 sm:$0xff]  }
  0x54   : > { %1032 = vmatmul.mubr.bf16.vlgmr.msra.gmra.mxu0 %v6744_v4  ;;  %v6839_v4 = vld [vmem:[%s9783_s3 + $0x140] ss:$16 sps:$4 sm:$0xff]  }
  0x55   : > { %1039 = vmatprep.mubr.bf16.mxu0 %v6750_v6  ;;  %4713 = vmatpush1.bf16.msra.mxu0 %v6761_v15  ;;  %v6842_v6 = vld [vmem:[%s9783_s3 + $0x340] ss:$16 sps:$4 sm:$0xff]   ;;  %v6863_v15 = vld [vmem:[%s9783_s3 + $0x6e4] ss:$16 sps:$4 sm:$0xff]  }
  0x56   : > { %6623 = vmatmul.mubr.msk.bf16.vlgmr.msra.gmra.mxu1 %vm856_vm0, %v6749_v5  ;;  %4714 = vmatprep.subr.bf16.mxu0 %v6769_v18  ;;  %v6847_v5 = vld [vmem:[%s9783_s3 + $0x124] ss:$16 sps:$4 sm:$0xff]  }
  0x57   : > { %6626 = vmatprep.mubr.msk.bf16.mxu1 %vm856_vm0, %v6756_v7  ;;  %4754 = vmatpush1.bf16.msra.mxu1 %v6764_v17  ;;  %v6850_v7 = vld [vmem:[%s9783_s3 + $0x324] ss:$16 sps:$4 sm:$0xff]  }
  0x58   : > { %4755 = vmatprep.subr.bf16.mxu1 %v6772_v20 }
  0x59   : > { %4715 = vmatpush1.bf16.msra.mxu0 %v6767_v19 }
  0x5a   : > { %4716 = vmatprep.subr.bf16.mxu0 %v6775_v22 }
  0x5b   : > { %4756 = vmatpush1.bf16.msra.mxu1 %v6770_v21 }
  0x5c   : > { %1040 = vmatmul.mubr.bf16.gmra.mxu0 %v6752_v8  ;;  %4757 = vmatprep.subr.bf16.mxu1 %v6778_v24  ;;  %v6845_v8 = vld [vmem:[%s9783_s3 + $0x120] ss:$16 sps:$4 sm:$0xff]  }
  0x5d   : > { %1047 = vmatprep.mubr.bf16.mxu0 %v6753_v9  ;;  %4717 = vmatpush1.bf16.msra.mxu0 %v6773_v23  ;;  %v6848_v9 = vld [vmem:[%s9783_s3 + $0x320] ss:$16 sps:$4 sm:$0xff]  }
  0x5e   : > { %6627 = vmatmul.mubr.msk.bf16.gmra.mxu1 %vm856_vm0, %v6757_v10  ;;  %4718 = vmatprep.subr.bf16.mxu0 %v6781_v26  ;;  %v6853_v10 = vld [vmem:[%s9783_s3 + $0x104] ss:$16 sps:$4 sm:$0xff]  }
  0x5f   : > { %4758 = vmatpush1.bf16.msra.mxu1 %v6776_v25 }
  0x60   : > { %4759 = vmatprep.subr.bf16.mxu1 %v6784_v28 }
  0x61   : > { %4719 = vmatpush1.bf16.msra.mxu0 %v6779_v27 }
  0x62   : > { %4720 = vmatprep.subr.bf16.mxu0 %v6787_v30 }
  0x63   : > { %4760 = vmatpush1.bf16.msra.mxu1 %v6782_v29 }
  0x64   : > { %1048 = vmatmul.mubr.bf16.gmra.mxu0 %v6755_v11  ;;  %4761 = vmatprep.subr.bf16.mxu1 %v6790_v32  ;;  %v6856_v11 = vld [vmem:[%s9783_s3 + $0x304] ss:$16 sps:$4 sm:$0xff]  }
  0x65   : > { %1055 = vmatprep.mubr.bf16.mxu0 %v6758_v12  ;;  %4721 = vmatpush1.bf16.msra.mxu0 %v6785_v31  ;;  %v6851_v12 = vld [vmem:[%s9783_s3 + $0x100] ss:$16 sps:$4 sm:$0xff]  }
  0x66   : > { %4722 = vmatprep.subr.bf16.mxu0 %v6793_v34 }
  0x67   : > { %4762 = vmatpush1.bf16.msra.mxu1 %v6788_v33 }
  0x68   : > { %4763 = vmatprep.subr.bf16.mxu1 %v6796_v36 }
  0x69   : > { %4723 = vmatpush1.bf16.msra.mxu0 %v6791_v35 }
  0x6a   : > { %4724 = vmatprep.subr.bf16.mxu0 %v6799_v38 }
  0x6b   : > { %4764 = vmatpush1.bf16.msra.mxu1 %v6794_v37 }
  0x6c   : > { %1056 = vmatmul.mubr.bf16.gmra.mxu0 %v6760_v13  ;;  %4765 = vmatprep.subr.bf16.mxu1 %v6802_v40  ;;  %v6854_v13 = vld [vmem:[%s9783_s3 + $0x300] ss:$16 sps:$4 sm:$0xff]  }
  0x6d   : > { %4725 = vmatpush1.bf16.msra.mxu0 %v6797_v39 }
  0x6e   : > { %4726 = vmatprep.subr.bf16.mxu0 %v6805_v42 }
  0x6f   : > { %4766 = vmatpush1.bf16.msra.mxu1 %v6800_v41 }
  0x70   : > { %4767 = vmatprep.subr.bf16.mxu1 %v6808_v44 }
  0x71   : > { %4727 = vmatpush1.bf16.msra.mxu0 %v6803_v43 }
  0x72   : > { %4728 = vmatprep.subr.bf16.mxu0 %v6811_v46 }
  0x73   : > { %4768 = vmatpush1.bf16.msra.mxu1 %v6806_v45 }
  0x74   : > { %4769 = vmatprep.subr.bf16.mxu1 %v6814_v48 }
  0x75   : > { %4729 = vmatpush2.bf16.msra.mxu0 %v6809_v47 }
  0x76   : > { %4730 = vmatprep.subr.bf16.mxu0 %v6817_v50 }
  0x77   : > { %4770 = vmatpush2.bf16.msra.mxu1 %v6812_v49 }
  0x78   : > { %4771 = vmatprep.subr.bf16.mxu1 %v6820_v52 }
  0x79   : > { %4731 = vmatpush2.bf16.msra.mxu0 %v6815_v51 }
  0x7a   : > { %4732 = vmatprep.subr.bf16.mxu0 %v6823_v54 }
  0x7b   : > { %4772 = vmatpush2.bf16.msra.mxu1 %v6818_v53 }
  0x7c   : > { %4773 = vmatprep.subr.bf16.mxu1 %v6826_v56 }
  0x7d   : > { %4733 = vmatpush2.bf16.msra.mxu0 %v6821_v55 }
  0x7e   : > { %4734 = vmatprep.subr.bf16.mxu0 %v6829_v58  ;;  %v5787_v58 = vld [vmem:[%s9782_s2] ss:$0 sm:$0xff] }
  0x7f   : > { %4774 = vmatpush2.bf16.msra.mxu1 %v6824_v57 }
  0x80   : > { %4775 = vmatprep.subr.bf16.mxu1 %v6832_v60 }
  0x81   : > { %4735 = vmatpush2.bf16.msra.mxu0 %v6827_v59 }
  0x82   : > { %4736 = vmatprep.subr.bf16.mxu0 %v6835_v63 }
  0x83   : > { %4776 = vmatpush2.bf16.msra.mxu1 %v6830_v61 }
  0x84   : > { %4777 = vmatprep.subr.bf16.mxu1 %v6838_v0 }
  0x85   : > { %4737 = vmatpush2.bf16.msra.mxu0 %v6833_v62 }
  0x86   : > { %4738 = vmatprep.subr.bf16.mxu0 %v6841_v2 }
  0x87   : > { %4778 = vmatpush2.bf16.msra.mxu1 %v6836_v1 }
  0x88   : > { %4779 = vmatprep.subr.bf16.mxu1 %v6844_v3 }
  0x89   : > { %4739 = vmatpush2.bf16.msra.mxu0 %v6839_v4 }
  0x8a   : > { %4740 = vmatprep.subr.bf16.mxu0 %v6847_v5 }
  0x8b   : > { %4780 = vmatpush2.bf16.msra.mxu1 %v6842_v6 }
  0x8c   : > { %4781 = vmatprep.subr.bf16.mxu1 %v6850_v7 }
  0x8d   : > { %4741 = vmatpush2.bf16.msra.mxu0 %v6845_v8 }
  0x8e   : > { %4742 = vmatprep.subr.bf16.mxu0 %v6853_v10 }
  0x8f   : > { %4782 = vmatpush2.bf16.msra.mxu1 %v6848_v9 }
  0x90   : > { %4783 = vmatprep.subr.bf16.mxu1 %v6856_v11 }
  0x91   : > { %4743 = vmatpush2.bf16.msra.mxu0 %v6851_v12 }
  0x92   : > { %4794 = vmatprep.subr.bf16.mxu0 %v6859_v14 }
  0x93   : > { %4784 = vmatpush2.bf16.msra.mxu1 %v6854_v13 }
  0x94   : > { %4835 = vmatprep.subr.bf16.mxu1 %v6863_v15 }
  0xf4   : > { %v6464_v16 = vpop.f32.mrf.mxu0 }
  0xf6   : > { %v6465_v17 = vpop.f32.mrf.mxu0  ;;  %v6504_v18 = vpop.f32.mrf.mxu1 }
  0xf7   : > { %v6466_v59 = vadd.f32 %v6465_v17, %v6464_v16 }
  0xf8   : > { %v6467_v19 = vpop.f32.mrf.mxu0  ;;  %v6505_v20 = vpop.f32.mrf.mxu1 }
  0xf9   : > { %v904_v4 = vadd.f32 %v6466_v59, %v5787_v58  ;;  %v6506_v7 = vadd.f32 %v6505_v20, %v6504_v18 }
  0xfa   : > { %v6468_v21 = vpop.f32.mrf.mxu0  ;;  %v6507_v22 = vpop.f32.mrf.mxu1 }
  0xfb   : > { %v6469_v61 = vadd.f32 %v6468_v21, %v6467_v19 }
  0xfc   : > { %v6470_v23 = vpop.f32.mrf.mxu0  ;;  %v6508_v24 = vpop.f32.mrf.mxu1 }
  0xfd   : > { %v907_v8 = vadd.f32 %v6469_v61, %v5787_v58  ;;  %v6509_v9 = vadd.f32 %v6508_v24, %v6507_v22  ;;  %v969_v22 = vadd.f32 %v6506_v7, %v904_v4 }
  0xfe   : > { %v6471_v25 = vpop.f32.mrf.mxu0  ;;  %v6510_v26 = vpop.f32.mrf.mxu1 }
  0xff   : > { %v6472_v62 = vadd.f32 %v6471_v25, %v6470_v23  ;;  %v972_v24 = vadd.f32 %v6509_v9, %v907_v8 }
 0x100   : > { %v6473_v27 = vpop.f32.mrf.mxu0  ;;  %v6511_v28 = vpop.f32.mrf.mxu1 }
 0x101   : > { %v912_v11 = vadd.f32 %v6472_v62, %v5787_v58  ;;  %v6512_v12 = vadd.f32 %v6511_v28, %v6510_v26 }
 0x102   : > { %v6474_v29 = vpop.f32.mrf.mxu0  ;;  %v6513_v30 = vpop.f32.mrf.mxu1 }
 0x103   : > { %v6475_v63 = vadd.f32 %v6474_v29, %v6473_v27 }
 0x104   : > { %v6476_v31 = vpop.f32.mrf.mxu0  ;;  %v6514_v32 = vpop.f32.mrf.mxu1 }
 0x105   : > { %v915_v13 = vadd.f32 %v6475_v63, %v5787_v58  ;;  %v6515_v14 = vadd.f32 %v6514_v32, %v6513_v30 }
 0x106   : > { %v6477_v33 = vpop.f32.mrf.mxu0  ;;  %v6516_v34 = vpop.f32.mrf.mxu1 }
 0x107   : > { %v6478_v2 = vadd.f32 %v6477_v33, %v6476_v31  ;;  %v980_v26 = vadd.f32 %v6515_v14, %v915_v13 }
 0x108   : > { %v6479_v35 = vpop.f32.mrf.mxu0  ;;  %v6517_v36 = vpop.f32.mrf.mxu1 }
 0x109   : > { %v920_v16 = vadd.f32 %v6478_v2, %v5787_v58  ;;  %v6518_v17 = vadd.f32 %v6517_v36, %v6516_v34 }
 0x10a   : > { %v6480_v37 = vpop.f32.mrf.mxu0  ;;  %v6519_v38 = vpop.f32.mrf.mxu1 }
 0x10b   : > { %v6481_v3 = vadd.f32 %v6480_v37, %v6479_v35  ;;  %v977_v37 = vadd.f32 %v6512_v12, %v912_v11  ;;  %v985_v30 = vadd.f32 %v6518_v17, %v920_v16 }
 0x10c   : > { %v6482_v39 = vpop.f32.mrf.mxu0  ;;  %v6520_v40 = vpop.f32.mrf.mxu1 }
 0x10d   : > { %v923_v19 = vadd.f32 %v6481_v3, %v5787_v58  ;;  %v6521_v21 = vadd.f32 %v6520_v40, %v6519_v38 }
 0x10e   : > { %v6483_v41 = vpop.f32.mrf.mxu0  ;;  %v6522_v42 = vpop.f32.mrf.mxu1 }
 0x10f   : > { %v6484_v10 = vadd.f32 %v6483_v41, %v6482_v39  ;;  %v988_v32 = vadd.f32 %v6521_v21, %v923_v19 }
 0x110   : > { %v6485_v43 = vpop.f32.mrf.mxu0  ;;  %v6523_v44 = vpop.f32.mrf.mxu1 }
 0x111   : > { %v928_v33 = vadd.f32 %v6484_v10, %v5787_v58  ;;  %v6524_v35 = vadd.f32 %v6523_v44, %v6522_v42 }
 0x112   : > { %v6486_v45 = vpop.f32.mrf.mxu0  ;;  %v6525_v46 = vpop.f32.mrf.mxu1 }
 0x113   : > { %v6487_v23 = vadd.f32 %v6486_v45, %v6485_v43 }
 0x114   : > { %v6544_v47 = vpop.f32.mrf.mxu0  ;;  %v6526_v48 = vpop.f32.mrf.mxu1 }
 0x115   : > { %v931_v36 = vadd.f32 %v6487_v23, %v5787_v58  ;;  %v6527_v38 = vadd.f32 %v6526_v48, %v6525_v46 }
 0x116   : > { %v6545_v49 = vpop.f32.mrf.mxu0  ;;  %v8103_v51 = vpop.f32.mrf.mxu1 }
 0x117   : > { %v6546_v25 = vadd.f32 %v6545_v49, %v6544_v47  ;;  %v993_v47 = vadd.f32 %v6524_v35, %v928_v33 }
 0x118   : > { %v6547_v50 = vpop.f32.mrf.mxu0  ;;  %v8105_v53 = vpop.f32.mrf.mxu1 }
 0x119   : > { %v1034_v40 = vadd.f32 %v6546_v25, %v969_v22 }
 0x11a   : > { %v6548_v52 = vpop.f32.mrf.mxu0  ;;  %v8107_v56 = vpop.f32.mrf.mxu1 }
 0x11b   : > { %v6549_v39 = vadd.f32 %v6548_v52, %v6547_v50  ;;  %v1099_v61 = vadd.f32 %v8105_v53, %v1034_v40  ;;  %v1229_v40 = vld [vmem:[#allocation3 + $0x3] sm:$0x1] }
 0x11c   : > { %v6550_v54 = vpop.f32.mrf.mxu0  ;;  %v1101_v0 = vpop.f32.mrf.mxu1 }
 0x11e   : > { %v6551_v55 = vpop.f32.mrf.mxu0  ;;  %v6628_v6 = vpop.f32.mrf.mxu1 }
 0x11f   : > { %v6552_v27 = vadd.f32 %v6551_v55, %v6550_v54  ;;  %v1037_v55 = vadd.f32 %v6549_v39, %v972_v24 }
 0x120   : > { %v6553_v57 = vpop.f32.mrf.mxu0  ;;  %v1114_v31 = vpop.f32.mrf.mxu1 }
 0x121   : > { %v1042_v41 = vadd.f32 %v6552_v27, %v977_v37 }
 0x122   : > { %v6554_v60 = vpop.f32.mrf.mxu0  ;;  %v6629_v43 = vpop.f32.mrf.mxu1 }
 0x123   : > { %v6555_v18 = vadd.f32 %v6554_v60, %v6553_v57  ;;  %v996_v60 = vadd.f32 %v6527_v38, %v931_v36  ;;  %v1107_v50 = vadd.f32 %v8103_v51, %v1042_v41 }
 0x124   : > { %v6556_v1 = vpop.f32.mrf.mxu0  ;;  %v1117_v52 = vpop.f32.mrf.mxu1 }
 0x125   : > { %v1045_v49 = vadd.f32 %v6555_v18, %v980_v26  ;;  %v1131_v7 = vmax.f32 %v1107_v50, 0.0  ;;  %v1182_v18 = vld [vmem:[#allocation3 + $0x1] sm:$0x1]  ;;  %v1203_v26 = vld [vmem:[#allocation3 + $0x2] sm:$0x1] }
 0x126   : > { %v6557_v5 = vpop.f32.mrf.mxu0 }
 0x127   : > { %v6558_v20 = vadd.f32 %v6557_v5, %v6556_v1  ;;  %v1110_v46 = vadd.f32 %v8107_v56, %v1045_v49  ;;  %v1102_v1 = vadd.f32 %v1101_v0, %v1037_v55  ;;  %v1129_v5 = vmax.f32 %v1099_v61, 0.0  ;;  %v1298_v55 = vld [vmem:[#allocation3 + $0x6] sm:$0x1] }
 0x128   : > { %v6559_v15 = vpop.f32.mrf.mxu0  ;;  %v1172_v0 = vlaneseq }
 0x129   : > { %v1050_v42 = vadd.f32 %v6558_v20, %v985_v30  ;;  %v1132_v8 = vmax.f32 %v1110_v46, 0.0  ;;  %v1130_v11 = vmax.f32 %v1102_v1, 0.0  ;;  %v1137_v13 = vmax.f32 %v1129_v5, %v1131_v7  ;;  %v1375_v5 = vld [vmem:[#allocation3 + $0xa] sm:$0x1]  ;;  %v1422_v7 = vld [vmem:[#allocation3 + $0xc] sm:$0x1] }
 0x12a   : > { %v6560_v29 = vpop.f32.mrf.mxu0  ;;  %v8115_v23 = vshrl.u32 %v1172_v0, 7 }
 0x12b   : > { %v6561_v34 = vadd.f32 %v6560_v29, %v6559_v15  ;;  %v1115_v48 = vadd.f32 %v1114_v31, %v1050_v42  ;;  %v1138_v14 = vmax.f32 %v1130_v11, %v1132_v8  ;;  %v1157_v29 = vld [vmem:[#allocation3] sm:$0x1]  ;;  %v1329_v31 = vld [vmem:[#allocation3 + $0x8] sm:$0x1] }
 0x12c   : > { %v6562_v28 = vpop.f32.mrf.mxu0 }
 0x12d   : > { %v1053_v59 = vadd.f32 %v6561_v34, %v988_v32  ;;  %v1133_v9 = vmax.f32 %v1115_v48, 0.0  ;;  %v1250_v32 = vld [vmem:[#allocation3 + $0x4] sm:$0x1] }
 0x12e   : > { %v6563_v45 = vpop.f32.mrf.mxu0 }
 0x12f   : > { %v6564_v44 = vadd.f32 %v6563_v45, %v6562_v28  ;;  %v1118_v3 = vadd.f32 %v1117_v52, %v1053_v59 }
 0x130   : > { %v6565_v54 = vpop.f32.mrf.mxu0 }
 0x131   : > { %v1058_v57 = vadd.f32 %v6564_v44, %v993_v47  ;;  %v1134_v12 = vmax.f32 %v1118_v3, 0.0  ;;  %v1276_v47 = vld [vmem:[#allocation3 + $0x5] sm:$0x1] }
 0x132   : > { %v6566_v58 = vpop.f32.mrf.mxu0 }
 0x133   : > { %v1123_v62 = vadd.f32 %v6628_v6, %v1058_v57  ;;  %v6567_v63 = vadd.f32 %v6566_v58, %v6565_v54  ;;  %v7626_v6 = vmov 1966171168   ;;  %v1354_v57 = vld [vmem:[#allocation3 + $0x9] sm:$0x1] }
 0x134   : > { %v1170_v17 = vunpack.c.l.s4 %v7626_v6 }
 0x135   : > { %v1135_v2 = vmax.f32 %v1123_v62, 0.0  ;;  %v1061_v4 = vadd.f32 %v6567_v63, %v996_v60 }
 0x136   : > { %v1171_v21 = vunpack.c.0.s8 %v1170_v17  ;;  %v1470_v17 = vld [vmem:[#allocation3 + $0xe] sm:$0x1] }
 0x137   : > { %v1126_v10 = vadd.f32 %v6629_v43, %v1061_v4  ;;  %v1139_v53 = vmax.f32 %v1133_v9, %v1135_v2 }
 0x138   : > { %v8118_v25 = vsub.s32 %v1171_v21, %v8115_v23 }
 0x139   : > { %v1136_v51 = vmax.f32 %v1126_v10, 0.0  ;;  %v1141_v56 = vmax.f32 %v1137_v13, %v1139_v53  ;;  %v1325_v10 = vld [vmem:[#allocation3 + $0x7] sm:$0x1]  ;;  %v1401_v53 = vld [vmem:[#allocation3 + $0xb] sm:$0x1] }
 0x13b   : > { %v1140_v15 = vmax.f32 %v1134_v12, %v1136_v51 }
 0x13d   : > { %v1142_v16 = vmax.f32 %v1138_v14, %v1140_v15  ;;  %v1448_v15 = vld [vmem:[#allocation3 + $0xd] sm:$0x1] }
 0x13f   : > { %v6446_v19 = vpack.c.bf16 %v1142_v16, %v1141_v56 }
 0x141   : > { %6447 = vst [vmem:[#allocation2] sm:$0xff] %v6446_v19  }
 0x148   : > { %v1153_v33 = vld [vmem:[#allocation2] sm:$0x1]  ;;  %v5874_v22 = vld.sshfl [vmem:[#allocation2] sm:$0x10 pattern:$0x75316420] }
 0x149   : > { %v5872_v35 = vld.sshfl [vmem:[#allocation2] sm:$0x1 pattern:$0x75316420]  ;;  %v1328_v24 = vld [vmem:[#allocation2 + $0x4] sm:$0x1]  ;;  %v1158_v37 = vsel %vm8120_vm3, %v1153_v33, %v1157_v29  ;;  %v1194_v28 = vcombine.high %v5874_v22, %v5874_v22 }
 0x14a   : > { %v1175_v20 = vrot.slane %v5872_v35, %v8118_v25  ;;  %v5877_v30 = vld.sshfl [vmem:[#allocation2] sm:$0x2 pattern:$0x75316420]  ;;  %1159 = vst [vmem:[#allocation3] sm:$0x1] %v1158_v37  ;;  %v1330_v39 = vsel %vm8120_vm3, %v1328_v24, %v1329_v31 }
 0x14b   : > { %v1247_v36 = vrot.slane %v5877_v30, %v8118_v25  ;;  %v5880_v38 = vld.sshfl [vmem:[#allocation2] sm:$0x20 pattern:$0x75316420]  ;;  %1331 = vst [vmem:[#allocation3 + $0x8] sm:$0x1] %v1330_v39  ;;  %v1201_v41 = vrot.slane %v1194_v28, %v8118_v25 }
 0x14c   : > { %v1177_v34 = vshrl.u32 %v1175_v20, 16  ;;  %v1288_v43 = vcombine.high %v5880_v38, %v5880_v38  ;;  %v5883_v45 = vld.sshfl [vmem:[#allocation2 + $0x4] sm:$0x1 pattern:$0x75316420] }
 0x14d   : > { %v1248_v49 = vcombine.high %v1247_v36, %v1247_v36  ;;  %v1347_v42 = vrot.slane %v5883_v45, %v8118_v25  ;;  %v5885_v44 = vld.sshfl [vmem:[#allocation2 + $0x4] sm:$0x10 pattern:$0x75316420]  ;;  %v1224_v59 = vshrl.u32 %v1201_v41, 16  ;;  %v1204_v52 = vsel %vm8120_vm3, %v1201_v41, %v1203_v26 }
 0x14e   : > { %v1183_v54 = vsel %vm8120_vm3, %v1177_v34, %v1182_v18  ;;  %v1295_v60 = vrot.slane %v1288_v43, %v8118_v25  ;;  %v1366_v61 = vcombine.high %v5885_v44, %v5885_v44  ;;  %v5888_v50 = vld.sshfl [vmem:[#allocation2 + $0x4] sm:$0x2 pattern:$0x75316420]  ;;  %1205 = vst [vmem:[#allocation3 + $0x2] sm:$0x1] %v1204_v52 }
 0x14f   : > { %1184 = vst [vmem:[#allocation3 + $0x1] sm:$0x1] %v1183_v54  ;;  %v1271_v58 = vshrl.u32 %v1248_v49, 16  ;;  %v1349_v46 = vshrl.u32 %v1347_v42, 16  ;;  %v1419_v48 = vrot.slane %v5888_v50, %v8118_v25  ;;  %v1251_v63 = vsel %vm8120_vm3, %v1248_v49, %v1250_v32  ;;  %v1497_v31 = vld [vmem:[#allocation3 + $0xf] sm:$0x1] }
 0x150   : > { %v5891_v62 = vld.sshfl [vmem:[#allocation2 + $0x4] sm:$0x20 pattern:$0x75316420]  ;;  %v1296_v1 = vcombine.high %v1295_v60, %v1295_v60  ;;  %v1373_v2 = vrot.slane %v1366_v61, %v8118_v25  ;;  %v1230_v4 = vsel %vm8120_vm3, %v1224_v59, %v1229_v40  ;;  %1252 = vst [vmem:[#allocation3 + $0x4] sm:$0x1] %v1251_v63 }
 0x151   : > { %v1460_v3 = vcombine.high %v5891_v62, %v5891_v62  ;;  %v1420_v8 = vcombine.high %v1419_v48, %v1419_v48  ;;  %1231 = vst [vmem:[#allocation3 + $0x3] sm:$0x1] %v1230_v4  ;;  %v1277_v9 = vsel %vm8120_vm3, %v1271_v58, %v1276_v47  ;;  %v1355_v11 = vsel %vm8120_vm3, %v1349_v46, %v1354_v57  ;;  %v6857_v26 = vld [vmem:[%s9783_s3 + $0x4e0] ss:$16 sps:$4 sm:$0xff]   ;;  %v6866_v36 = vld [vmem:[%s9783_s3 + $0x4c4] ss:$16 sps:$4 sm:$0xff]  }
 0x152   : > { %v1396_v12 = vshrl.u32 %v1373_v2, 16  ;;  %1278 = vst [vmem:[#allocation3 + $0x5] sm:$0x1] %v1277_v9  ;;  %v1299_v13 = vsel %vm8120_vm3, %v1296_v1, %v1298_v55  ;;  %v1320_v14 = vshrl.u32 %v1296_v1, 16  ;;  %1356 = vst [vmem:[#allocation3 + $0x9] sm:$0x1] %v1355_v11  ;;  %v1376_v16 = vsel %vm8120_vm3, %v1373_v2, %v1375_v5 }
 0x153   : > { %v1467_v51 = vrot.slane %v1460_v3, %v8118_v25  ;;  %v1443_v56 = vshrl.u32 %v1420_v8, 16  ;;  %1300 = vst [vmem:[#allocation3 + $0x6] sm:$0x1] %v1299_v13  ;;  %v1423_v6 = vsel %vm8120_vm3, %v1420_v8, %v1422_v7  ;;  %1377 = vst [vmem:[#allocation3 + $0xa] sm:$0x1] %v1376_v16 }
 0x154   : > { %v1326_v19 = vsel %vm8120_vm3, %v1320_v14, %v1325_v10  ;;  %v1402_v21 = vsel %vm8120_vm3, %v1396_v12, %v1401_v53  ;;  %1424 = vst [vmem:[#allocation3 + $0xc] sm:$0x1] %v1423_v6  ;;  %v6861_v34 = vld [vmem:[%s9783_s3 + $0x6e0] ss:$16 sps:$4 sm:$0xff]   ;;  %v6869_v49 = vld [vmem:[%s9783_s3 + $0x6c4] ss:$16 sps:$4 sm:$0xff]  }
 0x155   : > { %v1468_v0 = vcombine.high %v1467_v51, %v1467_v51  ;;  %1327 = vst [vmem:[#allocation3 + $0x7] sm:$0x1] %v1326_v19  ;;  %1403 = vst [vmem:[#allocation3 + $0xb] sm:$0x1] %v1402_v21  ;;  %v1449_v29 = vsel %vm8120_vm3, %v1443_v56, %v1448_v15  ;;  %v6864_v54 = vld [vmem:[%s9783_s3 + $0x4c0] ss:$16 sps:$4 sm:$0xff]  }
 0x156   : > { %1450 = vst [vmem:[#allocation3 + $0xd] sm:$0x1] %v1449_v29  ;;  %v6872_v57 = vld [vmem:[%s9783_s3 + $0x4a4] ss:$16 sps:$4 sm:$0xff]   ;;  %v6867_v59 = vld [vmem:[%s9783_s3 + $0x6c0] ss:$16 sps:$4 sm:$0xff]  }
 0x157   : > { %v1471_v33 = vsel %vm8120_vm3, %v1468_v0, %v1470_v17  ;;  %v1492_v35 = vshrl.u32 %v1468_v0, 16  ;;  %v6875_v61 = vld [vmem:[%s9783_s3 + $0x6a4] ss:$16 sps:$4 sm:$0xff]   ;;  %v6870_v50 = vld [vmem:[%s9783_s3 + $0x4a0] ss:$16 sps:$4 sm:$0xff]  }
 0x158   : > { %1472 = vst [vmem:[#allocation3 + $0xe] sm:$0x1] %v1471_v33  ;;  %v6878_v52 = vld [vmem:[%s9783_s3 + $0x484] ss:$16 sps:$4 sm:$0xff]   ;;  %v6873_v58 = vld [vmem:[%s9783_s3 + $0x6a0] ss:$16 sps:$4 sm:$0xff]  }
 0x159   : > { %v1498_v18 = vsel %vm8120_vm3, %v1492_v35, %v1497_v31  ;;  %v6881_v46 = vld [vmem:[%s9783_s3 + $0x684] ss:$16 sps:$4 sm:$0xff]   ;;  %v6876_v48 = vld [vmem:[%s9783_s3 + $0x480] ss:$16 sps:$4 sm:$0xff]  }
 0x15a   : > { %1499 = vst [vmem:[#allocation3 + $0xf] sm:$0x1] %v1498_v18  ;;  %v6884_v62 = vld [vmem:[%s9783_s3 + $0x464] ss:$16 sps:$4 sm:$0xff]   ;;  %v6879_v63 = vld [vmem:[%s9783_s3 + $0x680] ss:$16 sps:$4 sm:$0xff]  }
 0x15b   : > { %v6887_v1 = vld [vmem:[%s9783_s3 + $0x664] ss:$16 sps:$4 sm:$0xff]   ;;  %v6882_v2 = vld [vmem:[%s9783_s3 + $0x460] ss:$16 sps:$4 sm:$0xff]  }
 0x15c   : > { %v1500_v20 = vld [vmem:[#allocation3] sm:$0xff]  ;;  %v6890_v3 = vld [vmem:[%s9783_s3 + $0x444] ss:$16 sps:$4 sm:$0xff]   ;;  %v6885_v4 = vld [vmem:[%s9783_s3 + $0x660] ss:$16 sps:$4 sm:$0xff]  }
 0x15d   : > { %v2024_v22 = vrot.slane %v1500_v20, %v8118_v25  ;;  %v2017_v24 = vcombine.high %v1500_v20, %v1500_v20  ;;  %v6893_v5 = vld [vmem:[%s9783_s3 + $0x644] ss:$16 sps:$4 sm:$0xff]   ;;  %v6888_v7 = vld [vmem:[%s9783_s3 + $0x440] ss:$16 sps:$4 sm:$0xff]  }
 0x15e   : > { %v6896_v8 = vld [vmem:[%s9783_s3 + $0x424] ss:$16 sps:$4 sm:$0xff]   ;;  %v6891_v9 = vld [vmem:[%s9783_s3 + $0x640] ss:$16 sps:$4 sm:$0xff]  }
 0x15f   : > { %v2032_v37 = vcombine.high %v2024_v22, %v2024_v22  ;;  %v2031_v28 = vrot.slane %v2017_v24, %v8118_v25  ;;  %v8170_v30 = vrot.slane %v2024_v22, %v8118_v25  ;;  %v6899_v10 = vld [vmem:[%s9783_s3 + $0x624] ss:$16 sps:$4 sm:$0xff]   ;;  %v6894_v11 = vld [vmem:[%s9783_s3 + $0x420] ss:$16 sps:$4 sm:$0xff]  }
 0x160   : > { %v6902_v53 = vld [vmem:[%s9783_s3 + $0x404] ss:$16 sps:$4 sm:$0xff]   ;;  %v6897_v12 = vld [vmem:[%s9783_s3 + $0x620] ss:$16 sps:$4 sm:$0xff]  }
 0x161   : > { %v1501_v32 = vld [vmem:[#allocation3 + $0x8] sm:$0xff]  ;;  %v8173_v39 = vrot.slane %v2032_v37, %v8118_v25  ;;  %v2033_v27 = vcombine.high %v2031_v28, %v2031_v28  ;;  %v8182_v38 = vrot.slane %v2031_v28, %v8118_v25  ;;  %v8198_v47 = vcombine.high %v8170_v30, %v8170_v30 }
 0x162   : > { %v8185_v40 = vrot.slane %v1501_v32, %v8118_v25  ;;  %v2066_v41 = vcombine.high %v1501_v32, %v1501_v32  ;;  %v6905_v51 = vld [vmem:[%s9783_s3 + $0x604] ss:$16 sps:$4 sm:$0xff]   ;;  %v6900_v13 = vld [vmem:[%s9783_s3 + $0x400] ss:$16 sps:$4 sm:$0xff]  }
 0x163   : > { %4744 = vmatprep.mubr.bf16.mxu0 %v8173_v39  ;;  %v8190_v43 = vcombine.high %v8173_v39, %v8173_v39  ;;  %v8193_v45 = vrot.slane %v2033_v27, %v8118_v25  ;;  %v6908_v14 = vld [vmem:[%s9783_s3 + $0x5e4] ss:$16 sps:$4 sm:$0xff]   ;;  %v6903_v15 = vld [vmem:[%s9783_s3 + $0x600] ss:$16 sps:$4 sm:$0xff]  }
 0x164   : > { %4745 = vmatmul.mubr.bf16.vlgmr.msra.gmra.mxu0 %v8170_v30  ;;  %v8205_v42 = vrot.slane %v8185_v40, %v8118_v25  ;;  %v8208_v44 = vrot.slane %v2066_v41, %v8118_v25  ;;  %v6911_v56 = vld [vmem:[%s9783_s3 + $0x7e4] ss:$16 sps:$4 sm:$0xff]   ;;  %v6906_v16 = vld [vmem:[%s9783_s3 + $0x5e0] ss:$16 sps:$4 sm:$0xff]  }
 0x165   : > { %4795 = vmatpush1.bf16.msra.mxu0 %v6857_v26  ;;  %4785 = vmatprep.mubr.bf16.mxu1 %v8190_v43  ;;  %v8216_v55 = vcombine.high %v8193_v45, %v8193_v45  ;;  %v6914_v6 = vld [vmem:[%s9783_s3 + $0x5c4] ss:$16 sps:$4 sm:$0xff]   ;;  %v6909_v17 = vld [vmem:[%s9783_s3 + $0x7e0] ss:$16 sps:$4 sm:$0xff]  }
 0x166   : > { %4826 = vmatprep.mubr.bf16.mxu0 %v8193_v45  ;;  %4786 = vmatmul.mubr.bf16.vlgmr.msra.gmra.mxu1 %v8198_v47  ;;  %v8228_v60 = vrot.slane %v8208_v44, %v8118_v25  ;;  %v6917_v0 = vld [vmem:[%s9783_s3 + $0x7c4] ss:$16 sps:$4 sm:$0xff]   ;;  %v6912_v19 = vld [vmem:[%s9783_s3 + $0x5c0] ss:$16 sps:$4 sm:$0xff]  }
 0x167   : > { %4836 = vmatpush1.bf16.msra.mxu1 %v6861_v34  ;;  %4796 = vmatprep.subr.bf16.mxu0 %v6866_v36  ;;  %v6920_v21 = vld [vmem:[%s9783_s3 + $0x5a4] ss:$16 sps:$4 sm:$0xff]   ;;  %v6915_v29 = vld [vmem:[%s9783_s3 + $0x7c0] ss:$16 sps:$4 sm:$0xff]  }
 0x168   : > { %4867 = vmatprep.mubr.bf16.mxu1 %v8216_v55  ;;  %4837 = vmatprep.subr.bf16.mxu1 %v6869_v49  ;;  %v6923_v31 = vld [vmem:[%s9783_s3 + $0x7a4] ss:$16 sps:$4 sm:$0xff]   ;;  %v6918_v33 = vld [vmem:[%s9783_s3 + $0x5a0] ss:$16 sps:$4 sm:$0xff]  }
 0x169   : > { %4797 = vmatpush1.bf16.msra.mxu0 %v6864_v54  ;;  %v6926_v35 = vld [vmem:[%s9783_s3 + $0x584] ss:$16 sps:$4 sm:$0xff]   ;;  %v6921_v18 = vld [vmem:[%s9783_s3 + $0x7a0] ss:$16 sps:$4 sm:$0xff]  }
 0x16a   : > { %4798 = vmatprep.subr.bf16.mxu0 %v6872_v57  ;;  %v6929_v20 = vld [vmem:[%s9783_s3 + $0x784] ss:$16 sps:$4 sm:$0xff]   ;;  %v6924_v22 = vld [vmem:[%s9783_s3 + $0x580] ss:$16 sps:$4 sm:$0xff]  }
 0x16b   : > { %4838 = vmatpush1.bf16.msra.mxu1 %v6867_v59  ;;  %v6932_v24 = vld [vmem:[%s9783_s3 + $0x564] ss:$16 sps:$4 sm:$0xff]   ;;  %v6927_v37 = vld [vmem:[%s9783_s3 + $0x780] ss:$16 sps:$4 sm:$0xff]  }
 0x16c   : > { %4839 = vmatprep.subr.bf16.mxu1 %v6875_v61  ;;  %v6935_v26 = vld [vmem:[%s9783_s3 + $0x764] ss:$16 sps:$4 sm:$0xff]   ;;  %v6930_v28 = vld [vmem:[%s9783_s3 + $0x560] ss:$16 sps:$4 sm:$0xff]  }
 0x16d   : > { %4799 = vmatpush1.bf16.msra.mxu0 %v6870_v50  ;;  %v6938_v32 = vld [vmem:[%s9783_s3 + $0x544] ss:$16 sps:$4 sm:$0xff]   ;;  %v6933_v27 = vld [vmem:[%s9783_s3 + $0x760] ss:$16 sps:$4 sm:$0xff]  }
 0x16e   : > { %4800 = vmatprep.subr.bf16.mxu0 %v6878_v52  ;;  %v6941_v34 = vld [vmem:[%s9783_s3 + $0x744] ss:$16 sps:$4 sm:$0xff]   ;;  %v6936_v36 = vld [vmem:[%s9783_s3 + $0x540] ss:$16 sps:$4 sm:$0xff]  }
 0x16f   : > { %4840 = vmatpush1.bf16.msra.mxu1 %v6873_v58  ;;  %v6944_v41 = vld [vmem:[%s9783_s3 + $0x524] ss:$16 sps:$4 sm:$0xff]   ;;  %v6939_v49 = vld [vmem:[%s9783_s3 + $0x740] ss:$16 sps:$4 sm:$0xff]   ;;  %v2081_v58 = vcombine.high %v8185_v40, %v8185_v40 }
 0x170   : > { %4841 = vmatprep.subr.bf16.mxu1 %v6881_v46  ;;  %v6947_v54 = vld [vmem:[%s9783_s3 + $0x724] ss:$16 sps:$4 sm:$0xff]   ;;  %v6942_v57 = vld [vmem:[%s9783_s3 + $0x520] ss:$16 sps:$4 sm:$0xff]  }
 0x171   : > { %4801 = vmatpush1.bf16.msra.mxu0 %v6876_v48  ;;  %v6950_v59 = vld [vmem:[%s9783_s3 + $0x504] ss:$16 sps:$4 sm:$0xff]   ;;  %v6945_v61 = vld [vmem:[%s9783_s3 + $0x720] ss:$16 sps:$4 sm:$0xff]  }
 0x172   : > { %4802 = vmatprep.subr.bf16.mxu0 %v6884_v62  ;;  %v6953_v50 = vld [vmem:[%s9783_s3 + $0x704] ss:$16 sps:$4 sm:$0xff]   ;;  %v6948_v52 = vld [vmem:[%s9783_s3 + $0x500] ss:$16 sps:$4 sm:$0xff]  }
 0x173   : > { %4842 = vmatpush1.bf16.msra.mxu1 %v6879_v63  ;;  %v6956_v46 = vld [vmem:[%s9783_s3 + $0x8e4] ss:$16 sps:$4 sm:$0xff]   ;;  %v6951_v48 = vld [vmem:[%s9783_s3 + $0x700] ss:$16 sps:$4 sm:$0xff]   ;;  %v8408_v63 = vrot.slane %v2081_v58, %v8118_v25 }
 0x174   : > { %4843 = vmatprep.subr.bf16.mxu1 %v6887_v1  ;;  %v6959_v62 = vld [vmem:[%s9783_s3 + $0xae4] ss:$16 sps:$4 sm:$0xff]   ;;  %v6954_v40 = vld [vmem:[%s9783_s3 + $0x8e0] ss:$16 sps:$4 sm:$0xff]  }
 0x175   : > { %4803 = vmatpush1.bf16.msra.mxu0 %v6882_v2  ;;  %v6962_v1 = vld [vmem:[%s9783_s3 + $0x8c4] ss:$16 sps:$4 sm:$0xff]   ;;  %v6957_v2 = vld [vmem:[%s9783_s3 + $0xae0] ss:$16 sps:$4 sm:$0xff]  }
 0x176   : > { %4804 = vmatprep.subr.bf16.mxu0 %v6890_v3  ;;  %v8419_v3 = vcombine.high %v8182_v38, %v8182_v38  ;;  %v7028_v58 = vld [vmem:[%s9783_s3 + $0x964] ss:$16 sps:$4 sm:$0xff]  }
 0x177   : > { %4844 = vmatpush1.bf16.msra.mxu1 %v6885_v4  ;;  %v6965_v4 = vld [vmem:[%s9783_s3 + $0xac4] ss:$16 sps:$4 sm:$0xff]  }
 0x178   : > { %4845 = vmatprep.subr.bf16.mxu1 %v6893_v5  ;;  %v8427_v5 = vcombine.high %v8408_v63, %v8408_v63 }
 0x179   : > { %4805 = vmatpush1.bf16.msra.mxu0 %v6888_v7  ;;  %v6960_v7 = vld [vmem:[%s9783_s3 + $0x8c0] ss:$16 sps:$4 sm:$0xff]  }
 0x17a   : > { %4806 = vmatprep.subr.bf16.mxu0 %v6896_v8  ;;  %v6968_v8 = vld [vmem:[%s9783_s3 + $0x8a4] ss:$16 sps:$4 sm:$0xff]  }
 0x17b   : > { %4846 = vmatpush1.bf16.msra.mxu1 %v6891_v9  ;;  %v6963_v9 = vld [vmem:[%s9783_s3 + $0xac0] ss:$16 sps:$4 sm:$0xff]  }
 0x17c   : > { %4847 = vmatprep.subr.bf16.mxu1 %v6899_v10  ;;  %v6971_v10 = vld [vmem:[%s9783_s3 + $0xaa4] ss:$16 sps:$4 sm:$0xff]  }
 0x17d   : > { %4807 = vmatpush1.bf16.msra.mxu0 %v6894_v11  ;;  %v6966_v11 = vld [vmem:[%s9783_s3 + $0x8a0] ss:$16 sps:$4 sm:$0xff]  }
 0x17e   : > { %4808 = vmatprep.subr.bf16.mxu0 %v6902_v53  ;;  %v6974_v53 = vld [vmem:[%s9783_s3 + $0x884] ss:$16 sps:$4 sm:$0xff]  }
 0x17f   : > { %4848 = vmatpush1.bf16.msra.mxu1 %v6897_v12  ;;  %v6969_v12 = vld [vmem:[%s9783_s3 + $0xaa0] ss:$16 sps:$4 sm:$0xff]  }
 0x180   : > { %4849 = vmatprep.subr.bf16.mxu1 %v6905_v51  ;;  %v6977_v51 = vld [vmem:[%s9783_s3 + $0xa84] ss:$16 sps:$4 sm:$0xff]  }
 0x181   : > { %4809 = vmatpush1.bf16.msra.mxu0 %v6900_v13  ;;  %v6972_v13 = vld [vmem:[%s9783_s3 + $0x880] ss:$16 sps:$4 sm:$0xff]  }
 0x182   : > { %4810 = vmatprep.subr.bf16.mxu0 %v6908_v14  ;;  %v6980_v14 = vld [vmem:[%s9783_s3 + $0x864] ss:$16 sps:$4 sm:$0xff]  }
 0x183   : > { %4850 = vmatpush1.bf16.msra.mxu1 %v6903_v15  ;;  %v6975_v15 = vld [vmem:[%s9783_s3 + $0xa80] ss:$16 sps:$4 sm:$0xff]  }
 0x184   : > { %4851 = vmatprep.subr.bf16.mxu1 %v6911_v56  ;;  %v6983_v56 = vld [vmem:[%s9783_s3 + $0xa64] ss:$16 sps:$4 sm:$0xff]  }
 0x185   : > { %4811 = vmatpush2.bf16.msra.mxu0 %v6906_v16  ;;  %v6978_v16 = vld [vmem:[%s9783_s3 + $0x860] ss:$16 sps:$4 sm:$0xff]  }
 0x186   : > { %4812 = vmatprep.subr.bf16.mxu0 %v6914_v6  ;;  %v6986_v6 = vld [vmem:[%s9783_s3 + $0x844] ss:$16 sps:$4 sm:$0xff]  }
 0x187   : > { %4852 = vmatpush2.bf16.msra.mxu1 %v6909_v17  ;;  %v6981_v17 = vld [vmem:[%s9783_s3 + $0xa60] ss:$16 sps:$4 sm:$0xff]  }
 0x188   : > { %4853 = vmatprep.subr.bf16.mxu1 %v6917_v0  ;;  %v6989_v0 = vld [vmem:[%s9783_s3 + $0xa44] ss:$16 sps:$4 sm:$0xff]  }
 0x189   : > { %4813 = vmatpush2.bf16.msra.mxu0 %v6912_v19  ;;  %v6984_v19 = vld [vmem:[%s9783_s3 + $0x840] ss:$16 sps:$4 sm:$0xff]  }
 0x18a   : > { %4814 = vmatprep.subr.bf16.mxu0 %v6920_v21  ;;  %v6992_v21 = vld [vmem:[%s9783_s3 + $0x824] ss:$16 sps:$4 sm:$0xff]  }
 0x18b   : > { %4854 = vmatpush2.bf16.msra.mxu1 %v6915_v29  ;;  %v6987_v29 = vld [vmem:[%s9783_s3 + $0xa40] ss:$16 sps:$4 sm:$0xff]  }
 0x18c   : > { %4855 = vmatprep.subr.bf16.mxu1 %v6923_v31  ;;  %v6995_v31 = vld [vmem:[%s9783_s3 + $0xa24] ss:$16 sps:$4 sm:$0xff]  }
 0x18d   : > { %4815 = vmatpush2.bf16.msra.mxu0 %v6918_v33  ;;  %v6990_v33 = vld [vmem:[%s9783_s3 + $0x820] ss:$16 sps:$4 sm:$0xff]  }
 0x18e   : > { %4816 = vmatprep.subr.bf16.mxu0 %v6926_v35  ;;  %v6998_v35 = vld [vmem:[%s9783_s3 + $0x804] ss:$16 sps:$4 sm:$0xff]  }
 0x18f   : > { %4856 = vmatpush2.bf16.msra.mxu1 %v6921_v18  ;;  %v6993_v18 = vld [vmem:[%s9783_s3 + $0xa20] ss:$16 sps:$4 sm:$0xff]  }
 0x190   : > { %4857 = vmatprep.subr.bf16.mxu1 %v6929_v20  ;;  %v7001_v20 = vld [vmem:[%s9783_s3 + $0xa04] ss:$16 sps:$4 sm:$0xff]  }
 0x191   : > { %4817 = vmatpush2.bf16.msra.mxu0 %v6924_v22  ;;  %v6996_v22 = vld [vmem:[%s9783_s3 + $0x800] ss:$16 sps:$4 sm:$0xff]  }
 0x192   : > { %4818 = vmatprep.subr.bf16.mxu0 %v6932_v24  ;;  %v7004_v24 = vld [vmem:[%s9783_s3 + $0x9e4] ss:$16 sps:$4 sm:$0xff]  }
 0x193   : > { %4858 = vmatpush2.bf16.msra.mxu1 %v6927_v37  ;;  %v6999_v37 = vld [vmem:[%s9783_s3 + $0xa00] ss:$16 sps:$4 sm:$0xff]  }
 0x194   : > { %4859 = vmatprep.subr.bf16.mxu1 %v6935_v26  ;;  %v7007_v26 = vld [vmem:[%s9783_s3 + $0xbe4] ss:$16 sps:$4 sm:$0xff]  }
 0x195   : > { %4819 = vmatpush2.bf16.msra.mxu0 %v6930_v28  ;;  %v7002_v28 = vld [vmem:[%s9783_s3 + $0x9e0] ss:$16 sps:$4 sm:$0xff]  }
 0x196   : > { %4820 = vmatprep.subr.bf16.mxu0 %v6938_v32  ;;  %v7010_v32 = vld [vmem:[%s9783_s3 + $0x9c4] ss:$16 sps:$4 sm:$0xff]  }
 0x197   : > { %4860 = vmatpush2.bf16.msra.mxu1 %v6933_v27  ;;  %v7005_v27 = vld [vmem:[%s9783_s3 + $0xbe0] ss:$16 sps:$4 sm:$0xff]  }
 0x198   : > { %4861 = vmatprep.subr.bf16.mxu1 %v6941_v34  ;;  %v7013_v34 = vld [vmem:[%s9783_s3 + $0xbc4] ss:$16 sps:$4 sm:$0xff]  }
 0x199   : > { %4821 = vmatpush2.bf16.msra.mxu0 %v6936_v36  ;;  %v7008_v36 = vld [vmem:[%s9783_s3 + $0x9c0] ss:$16 sps:$4 sm:$0xff]  }
 0x19a   : > { %4822 = vmatprep.subr.bf16.mxu0 %v6944_v41  ;;  %v7016_v41 = vld [vmem:[%s9783_s3 + $0x9a4] ss:$16 sps:$4 sm:$0xff]  }
 0x19b   : > { %4862 = vmatpush2.bf16.msra.mxu1 %v6939_v49  ;;  %v7011_v49 = vld [vmem:[%s9783_s3 + $0xbc0] ss:$16 sps:$4 sm:$0xff]  }
 0x19c   : > { %4863 = vmatprep.subr.bf16.mxu1 %v6947_v54  ;;  %v7019_v54 = vld [vmem:[%s9783_s3 + $0xba4] ss:$16 sps:$4 sm:$0xff]  }
 0x19d   : > { %4823 = vmatpush2.bf16.msra.mxu0 %v6942_v57  ;;  %v7014_v57 = vld [vmem:[%s9783_s3 + $0x9a0] ss:$16 sps:$4 sm:$0xff]  }
 0x19e   : > { %4824 = vmatprep.subr.bf16.mxu0 %v6950_v59  ;;  %v7022_v59 = vld [vmem:[%s9783_s3 + $0x984] ss:$16 sps:$4 sm:$0xff]  }
 0x19f   : > { %4864 = vmatpush2.bf16.msra.mxu1 %v6945_v61  ;;  %v7017_v61 = vld [vmem:[%s9783_s3 + $0xba0] ss:$16 sps:$4 sm:$0xff]  }
 0x1a0   : > { %4865 = vmatprep.subr.bf16.mxu1 %v6953_v50  ;;  %v7025_v50 = vld [vmem:[%s9783_s3 + $0xb84] ss:$16 sps:$4 sm:$0xff]  }
 0x1a1   : > { %4825 = vmatpush2.bf16.msra.mxu0 %v6948_v52  ;;  %v7020_v52 = vld [vmem:[%s9783_s3 + $0x980] ss:$16 sps:$4 sm:$0xff]  }
 0x1a2   : > { %4876 = vmatprep.subr.bf16.mxu0 %v6956_v46  ;;  %v7023_v46 = vld [vmem:[%s9783_s3 + $0xb80] ss:$16 sps:$4 sm:$0xff]  }
 0x1a3   : > { %4866 = vmatpush2.bf16.msra.mxu1 %v6951_v48  ;;  %v7031_v48 = vld [vmem:[%s9783_s3 + $0xb64] ss:$16 sps:$4 sm:$0xff]  }
 0x1a4   : > { %4827 = vmatmul.mubr.bf16.vlgmr.msra.gmra.mxu0 %v8182_v38  ;;  %4917 = vmatprep.subr.bf16.mxu1 %v6959_v62  ;;  %v7026_v62 = vld [vmem:[%s9783_s3 + $0x960] ss:$16 sps:$4 sm:$0xff]  }
 0x1a5   : > { %4877 = vmatpush1.bf16.msra.mxu0 %v6954_v40  ;;  %4908 = vmatprep.mubr.bf16.mxu0 %v8408_v63  ;;  %v7034_v40 = vld [vmem:[%s9783_s3 + $0x944] ss:$16 sps:$4 sm:$0xff]  }
 0x1a6   : > { %4868 = vmatmul.mubr.bf16.vlgmr.msra.gmra.mxu1 %v8419_v3  ;;  %4878 = vmatprep.subr.bf16.mxu0 %v6962_v1  ;;  %v7029_v1 = vld [vmem:[%s9783_s3 + $0xb60] ss:$16 sps:$4 sm:$0xff]  }
 0x1a7   : > { %4918 = vmatpush1.bf16.msra.mxu1 %v6957_v2  ;;  %4949 = vmatprep.mubr.bf16.mxu1 %v8427_v5  ;;  %v7037_v2 = vld [vmem:[%s9783_s3 + $0xb44] ss:$16 sps:$4 sm:$0xff]  }
 0x1a8   : > { %4919 = vmatprep.subr.bf16.mxu1 %v6965_v4  ;;  %v7032_v4 = vld [vmem:[%s9783_s3 + $0x940] ss:$16 sps:$4 sm:$0xff]  }
 0x1a9   : > { %4879 = vmatpush1.bf16.msra.mxu0 %v6960_v7  ;;  %v7040_v7 = vld [vmem:[%s9783_s3 + $0x924] ss:$16 sps:$4 sm:$0xff]  }
 0x1aa   : > { %4880 = vmatprep.subr.bf16.mxu0 %v6968_v8  ;;  %v7035_v8 = vld [vmem:[%s9783_s3 + $0xb40] ss:$16 sps:$4 sm:$0xff]  }
 0x1ab   : > { %4920 = vmatpush1.bf16.msra.mxu1 %v6963_v9  ;;  %v7043_v9 = vld [vmem:[%s9783_s3 + $0xb24] ss:$16 sps:$4 sm:$0xff]  }
 0x1ac   : > { %4921 = vmatprep.subr.bf16.mxu1 %v6971_v10  ;;  %v7038_v10 = vld [vmem:[%s9783_s3 + $0x920] ss:$16 sps:$4 sm:$0xff]  }
 0x1ad   : > { %4881 = vmatpush1.bf16.msra.mxu0 %v6966_v11  ;;  %v7046_v11 = vld [vmem:[%s9783_s3 + $0x904] ss:$16 sps:$4 sm:$0xff]  }
 0x1ae   : > { %4882 = vmatprep.subr.bf16.mxu0 %v6974_v53  ;;  %v7041_v53 = vld [vmem:[%s9783_s3 + $0xb20] ss:$16 sps:$4 sm:$0xff]  }
 0x1af   : > { %4922 = vmatpush1.bf16.msra.mxu1 %v6969_v12  ;;  %v7049_v12 = vld [vmem:[%s9783_s3 + $0xb04] ss:$16 sps:$4 sm:$0xff]  }
 0x1b0   : > { %4923 = vmatprep.subr.bf16.mxu1 %v6977_v51  ;;  %v7044_v51 = vld [vmem:[%s9783_s3 + $0x900] ss:$16 sps:$4 sm:$0xff]  }
 0x1b1   : > { %4883 = vmatpush1.bf16.msra.mxu0 %v6972_v13  ;;  %v2082_v13 = vcombine.high %v8208_v44, %v8208_v44  ;;  %v7050_v44 = vld [vmem:[%s9783_s3 + $0xce0] ss:$16 sps:$4 sm:$0xff]  }
 0x1b2   : > { %4884 = vmatprep.subr.bf16.mxu0 %v6980_v14  ;;  %v7052_v14 = vld [vmem:[%s9783_s3 + $0xce4] ss:$16 sps:$4 sm:$0xff]  }
 0x1b3   : > { %4924 = vmatpush1.bf16.msra.mxu1 %v6975_v15  ;;  %v7047_v15 = vld [vmem:[%s9783_s3 + $0xb00] ss:$16 sps:$4 sm:$0xff]  }
 0x1b4   : > { %4925 = vmatprep.subr.bf16.mxu1 %v6983_v56  ;;  %v7056_v56 = vld [vmem:[%s9783_s3 + $0xee4] ss:$16 sps:$4 sm:$0xff]  }
 0x1b5   : > { %4885 = vmatpush1.bf16.msra.mxu0 %v6978_v16  ;;  %v8617_v16 = vrot.slane %v2082_v13, %v8118_v25  ;;  %v7062_v25 = vld [vmem:[%s9783_s3 + $0xec4] ss:$16 sps:$4 sm:$0xff]   ;;  %v7117_v13 = vld [vmem:[%s9783_s3 + $0xd80] ss:$16 sps:$4 sm:$0xff]  }
 0x1b6   : > { %4886 = vmatprep.subr.bf16.mxu0 %v6986_v6  ;;  %v7059_v6 = vld [vmem:[%s9783_s3 + $0xcc4] ss:$16 sps:$4 sm:$0xff]  }
 0x1b7   : > { %4926 = vmatpush1.bf16.msra.mxu1 %v6981_v17  ;;  %v7054_v17 = vld [vmem:[%s9783_s3 + $0xee0] ss:$16 sps:$4 sm:$0xff]  }
 0x1b8   : > { %4927 = vmatprep.subr.bf16.mxu1 %v6989_v0  ;;  %v8628_v0 = vcombine.high %v8205_v42, %v8205_v42 }
 0x1b9   : > { %4887 = vmatpush1.bf16.msra.mxu0 %v6984_v19  ;;  %v8636_v19 = vcombine.high %v8617_v16, %v8617_v16 }
 0x1ba   : > { %4888 = vmatprep.subr.bf16.mxu0 %v6992_v21  ;;  %v7057_v21 = vld [vmem:[%s9783_s3 + $0xcc0] ss:$16 sps:$4 sm:$0xff]  }
 0x1bb   : > { %4928 = vmatpush1.bf16.msra.mxu1 %v6987_v29  ;;  %v7065_v29 = vld [vmem:[%s9783_s3 + $0xca4] ss:$16 sps:$4 sm:$0xff]  }
 0x1bc   : > { %4929 = vmatprep.subr.bf16.mxu1 %v6995_v31  ;;  %v7060_v31 = vld [vmem:[%s9783_s3 + $0xec0] ss:$16 sps:$4 sm:$0xff]  }
 0x1bd   : > { %4889 = vmatpush1.bf16.msra.mxu0 %v6990_v33  ;;  %v7068_v33 = vld [vmem:[%s9783_s3 + $0xea4] ss:$16 sps:$4 sm:$0xff]  }
 0x1be   : > { %4890 = vmatprep.subr.bf16.mxu0 %v6998_v35  ;;  %v7063_v35 = vld [vmem:[%s9783_s3 + $0xca0] ss:$16 sps:$4 sm:$0xff]  }
 0x1bf   : > { %4930 = vmatpush1.bf16.msra.mxu1 %v6993_v18  ;;  %v7071_v18 = vld [vmem:[%s9783_s3 + $0xc84] ss:$16 sps:$4 sm:$0xff]  }
 0x1c0   : > { %4931 = vmatprep.subr.bf16.mxu1 %v7001_v20  ;;  %v7066_v20 = vld [vmem:[%s9783_s3 + $0xea0] ss:$16 sps:$4 sm:$0xff]  }
 0x1c1   : > { %4891 = vmatpush1.bf16.msra.mxu0 %v6996_v22  ;;  %v7074_v22 = vld [vmem:[%s9783_s3 + $0xe84] ss:$16 sps:$4 sm:$0xff]  }
 0x1c2   : > { %4892 = vmatprep.subr.bf16.mxu0 %v7004_v24  ;;  %v7069_v24 = vld [vmem:[%s9783_s3 + $0xc80] ss:$16 sps:$4 sm:$0xff]  }
 0x1c3   : > { %4932 = vmatpush1.bf16.msra.mxu1 %v6999_v37  ;;  %v7077_v37 = vld [vmem:[%s9783_s3 + $0xc64] ss:$16 sps:$4 sm:$0xff]  }
 0x1c4   : > { %4933 = vmatprep.subr.bf16.mxu1 %v7007_v26  ;;  %v7072_v26 = vld [vmem:[%s9783_s3 + $0xe80] ss:$16 sps:$4 sm:$0xff]  }
 0x1c5   : > { %4893 = vmatpush2.bf16.msra.mxu0 %v7002_v28  ;;  %v7080_v28 = vld [vmem:[%s9783_s3 + $0xe64] ss:$16 sps:$4 sm:$0xff]  }
 0x1c6   : > { %4894 = vmatprep.subr.bf16.mxu0 %v7010_v32  ;;  %v7075_v32 = vld [vmem:[%s9783_s3 + $0xc60] ss:$16 sps:$4 sm:$0xff]  }
 0x1c7   : > { %4934 = vmatpush2.bf16.msra.mxu1 %v7005_v27  ;;  %v7083_v27 = vld [vmem:[%s9783_s3 + $0xc44] ss:$16 sps:$4 sm:$0xff]  }
 0x1c8   : > { %4935 = vmatprep.subr.bf16.mxu1 %v7013_v34  ;;  %v7078_v34 = vld [vmem:[%s9783_s3 + $0xe60] ss:$16 sps:$4 sm:$0xff]  }
 0x1c9   : > { %4895 = vmatpush2.bf16.msra.mxu0 %v7008_v36  ;;  %v7086_v36 = vld [vmem:[%s9783_s3 + $0xe44] ss:$16 sps:$4 sm:$0xff]  }
 0x1ca   : > { %4896 = vmatprep.subr.bf16.mxu0 %v7016_v41  ;;  %v7081_v41 = vld [vmem:[%s9783_s3 + $0xc40] ss:$16 sps:$4 sm:$0xff]  }
 0x1cb   : > { %4936 = vmatpush2.bf16.msra.mxu1 %v7011_v49  ;;  %v7089_v49 = vld [vmem:[%s9783_s3 + $0xc24] ss:$16 sps:$4 sm:$0xff]  }
 0x1cc   : > { %4937 = vmatprep.subr.bf16.mxu1 %v7019_v54  ;;  %v7084_v54 = vld [vmem:[%s9783_s3 + $0xe40] ss:$16 sps:$4 sm:$0xff]  }
 0x1cd   : > { %4897 = vmatpush2.bf16.msra.mxu0 %v7014_v57  ;;  %v7092_v57 = vld [vmem:[%s9783_s3 + $0xe24] ss:$16 sps:$4 sm:$0xff]  }
 0x1ce   : > { %4898 = vmatprep.subr.bf16.mxu0 %v7022_v59  ;;  %v7087_v59 = vld [vmem:[%s9783_s3 + $0xc20] ss:$16 sps:$4 sm:$0xff]  }
 0x1cf   : > { %4938 = vmatpush2.bf16.msra.mxu1 %v7017_v61  ;;  %v7095_v61 = vld [vmem:[%s9783_s3 + $0xc04] ss:$16 sps:$4 sm:$0xff]  }
 0x1d0   : > { %4939 = vmatprep.subr.bf16.mxu1 %v7025_v50  ;;  %v7090_v50 = vld [vmem:[%s9783_s3 + $0xe20] ss:$16 sps:$4 sm:$0xff]  }
 0x1d1   : > { %4899 = vmatpush2.bf16.msra.mxu0 %v7020_v52  ;;  %v7098_v52 = vld [vmem:[%s9783_s3 + $0xe04] ss:$16 sps:$4 sm:$0xff]  }
 0x1d2   : > { %4900 = vmatprep.subr.bf16.mxu0 %v7028_v58  ;;  %v7093_v58 = vld [vmem:[%s9783_s3 + $0xc00] ss:$16 sps:$4 sm:$0xff]  }
 0x1d3   : > { %4940 = vmatpush2.bf16.msra.mxu1 %v7023_v46  ;;  %v7101_v46 = vld [vmem:[%s9783_s3 + $0xde4] ss:$16 sps:$4 sm:$0xff]  }
 0x1d4   : > { %4941 = vmatprep.subr.bf16.mxu1 %v7031_v48  ;;  %v7096_v48 = vld [vmem:[%s9783_s3 + $0xe00] ss:$16 sps:$4 sm:$0xff]  }
 0x1d5   : > { %4901 = vmatpush2.bf16.msra.mxu0 %v7026_v62  ;;  %v7104_v62 = vld [vmem:[%s9783_s3 + $0xfe4] ss:$16 sps:$4 sm:$0xff]  }
 0x1d6   : > { %4902 = vmatprep.subr.bf16.mxu0 %v7034_v40  ;;  %v7099_v40 = vld [vmem:[%s9783_s3 + $0xde0] ss:$16 sps:$4 sm:$0xff]  }
 0x1d7   : > { %4942 = vmatpush2.bf16.msra.mxu1 %v7029_v1  ;;  %v7107_v1 = vld [vmem:[%s9783_s3 + $0xdc4] ss:$16 sps:$4 sm:$0xff]  }
 0x1d8   : > { %4943 = vmatprep.subr.bf16.mxu1 %v7037_v2  ;;  %v7102_v2 = vld [vmem:[%s9783_s3 + $0xfe0] ss:$16 sps:$4 sm:$0xff]  }
 0x1d9   : > { %4903 = vmatpush2.bf16.msra.mxu0 %v7032_v4  ;;  %v7110_v4 = vld [vmem:[%s9783_s3 + $0xfc4] ss:$16 sps:$4 sm:$0xff]  }
 0x1da   : > { %4904 = vmatprep.subr.bf16.mxu0 %v7040_v7  ;;  %v7105_v7 = vld [vmem:[%s9783_s3 + $0xdc0] ss:$16 sps:$4 sm:$0xff]  }
 0x1db   : > { %4944 = vmatpush2.bf16.msra.mxu1 %v7035_v8  ;;  %v7113_v8 = vld [vmem:[%s9783_s3 + $0xda4] ss:$16 sps:$4 sm:$0xff]  }
 0x1dc   : > { %4945 = vmatprep.subr.bf16.mxu1 %v7043_v9  ;;  %v7108_v9 = vld [vmem:[%s9783_s3 + $0xfc0] ss:$16 sps:$4 sm:$0xff]  }
 0x1dd   : > { %4905 = vmatpush2.bf16.msra.mxu0 %v7038_v10  ;;  %v7116_v10 = vld [vmem:[%s9783_s3 + $0xfa4] ss:$16 sps:$4 sm:$0xff]  }
 0x1de   : > { %4906 = vmatprep.subr.bf16.mxu0 %v7046_v11  ;;  %v7111_v11 = vld [vmem:[%s9783_s3 + $0xda0] ss:$16 sps:$4 sm:$0xff]  }
 0x1df   : > { %4946 = vmatpush2.bf16.msra.mxu1 %v7041_v53  ;;  %v7119_v53 = vld [vmem:[%s9783_s3 + $0xd84] ss:$16 sps:$4 sm:$0xff]  }
 0x1e0   : > { %4947 = vmatprep.subr.bf16.mxu1 %v7049_v12  ;;  %v7114_v12 = vld [vmem:[%s9783_s3 + $0xfa0] ss:$16 sps:$4 sm:$0xff]  }
 0x1e1   : > { %4907 = vmatpush2.bf16.msra.mxu0 %v7044_v51  ;;  %v7122_v51 = vld [vmem:[%s9783_s3 + $0xf84] ss:$16 sps:$4 sm:$0xff]  }
 0x1e2   : > { %4958 = vmatprep.subr.bf16.mxu0 %v7052_v14  ;;  %v7125_v14 = vld [vmem:[%s9783_s3 + $0xd64] ss:$16 sps:$4 sm:$0xff]  }
 0x1e3   : > { %4948 = vmatpush2.bf16.msra.mxu1 %v7047_v15  ;;  %v7120_v15 = vld [vmem:[%s9783_s3 + $0xf80] ss:$16 sps:$4 sm:$0xff]  }
 0x1e4   : > { %4909 = vmatmul.mubr.bf16.vlgmr.msra.gmra.mxu0 %v8205_v42  ;;  %4999 = vmatprep.subr.bf16.mxu1 %v7056_v56  ;;  %v7128_v56 = vld [vmem:[%s9783_s3 + $0xf64] ss:$16 sps:$4 sm:$0xff]  }
 0x1e5   : > { %4959 = vmatpush1.bf16.msra.mxu0 %v7050_v44  ;;  %4990 = vmatprep.mubr.bf16.mxu0 %v8617_v16  ;;  %v7123_v44 = vld [vmem:[%s9783_s3 + $0xd60] ss:$16 sps:$4 sm:$0xff]  }
 0x1e6   : > { %4950 = vmatmul.mubr.bf16.vlgmr.msra.gmra.mxu1 %v8628_v0  ;;  %4960 = vmatprep.subr.bf16.mxu0 %v7059_v6  ;;  %v7131_v6 = vld [vmem:[%s9783_s3 + $0xd44] ss:$16 sps:$4 sm:$0xff]  }
 0x1e7   : > { %5000 = vmatpush1.bf16.msra.mxu1 %v7054_v17  ;;  %5031 = vmatprep.mubr.bf16.mxu1 %v8636_v19  ;;  %v7126_v17 = vld [vmem:[%s9783_s3 + $0xf60] ss:$16 sps:$4 sm:$0xff]  }
 0x1e8   : > { %5001 = vmatprep.subr.bf16.mxu1 %v7062_v25  ;;  %v7134_v25 = vld [vmem:[%s9783_s3 + $0xf44] ss:$16 sps:$4 sm:$0xff]  }
 0x1e9   : > { %4961 = vmatpush1.bf16.msra.mxu0 %v7057_v21  ;;  %v7129_v21 = vld [vmem:[%s9783_s3 + $0xd40] ss:$16 sps:$4 sm:$0xff]  }
 0x1ea   : > { %4962 = vmatprep.subr.bf16.mxu0 %v7065_v29  ;;  %v7137_v29 = vld [vmem:[%s9783_s3 + $0xd24] ss:$16 sps:$4 sm:$0xff]  }
 0x1eb   : > { %5002 = vmatpush1.bf16.msra.mxu1 %v7060_v31  ;;  %v7132_v31 = vld [vmem:[%s9783_s3 + $0xf40] ss:$16 sps:$4 sm:$0xff]  }
 0x1ec   : > { %5003 = vmatprep.subr.bf16.mxu1 %v7068_v33  ;;  %v7140_v33 = vld [vmem:[%s9783_s3 + $0xf24] ss:$16 sps:$4 sm:$0xff]  }
 0x1ed   : > { %4963 = vmatpush1.bf16.msra.mxu0 %v7063_v35  ;;  %v7135_v35 = vld [vmem:[%s9783_s3 + $0xd20] ss:$16 sps:$4 sm:$0xff]  }
 0x1ee   : > { %4964 = vmatprep.subr.bf16.mxu0 %v7071_v18  ;;  %v7143_v18 = vld [vmem:[%s9783_s3 + $0xd04] ss:$16 sps:$4 sm:$0xff]  }
 0x1ef   : > { %5004 = vmatpush1.bf16.msra.mxu1 %v7066_v20  ;;  %v7138_v20 = vld [vmem:[%s9783_s3 + $0xf20] ss:$16 sps:$4 sm:$0xff]  }
 0x1f0   : > { %5005 = vmatprep.subr.bf16.mxu1 %v7074_v22  ;;  %v7146_v22 = vld [vmem:[%s9783_s3 + $0xf04] ss:$16 sps:$4 sm:$0xff]  }
 0x1f1   : > { %4965 = vmatpush1.bf16.msra.mxu0 %v7069_v24  ;;  %v7141_v24 = vld [vmem:[%s9783_s3 + $0xd00] ss:$16 sps:$4 sm:$0xff]  }
 0x1f2   : > { %4966 = vmatprep.subr.bf16.mxu0 %v7077_v37  ;;  %v4694_v37 = vsub.s32 0, %v8115_v23 }
 0x1f3   : > { %5006 = vmatpush1.bf16.msra.mxu1 %v7072_v26  ;;  %v7149_v26 = vld [vmem:[%s9783_s3 + $0xec] ss:$16 sps:$4 sm:$0xff]  }
 0x1f4   : > { %5007 = vmatprep.subr.bf16.mxu1 %v7080_v28  ;;  %v2014_v28 = vld [vmem:[%s9784_s4] sm:$0xf] }
 0x1f5   : > { %4967 = vmatpush1.bf16.msra.mxu0 %v7075_v32  ;;  %v7144_v32 = vld [vmem:[%s9783_s3 + $0xf00] ss:$16 sps:$4 sm:$0xff]  }
 0x1f6   : > { %4968 = vmatprep.subr.bf16.mxu0 %v7083_v27  ;;  %v4698_v27 = vsub.s32 1, %v8115_v23 }
 0x1f7   : > { %5008 = vmatpush1.bf16.msra.mxu1 %v7078_v34  ;;  %v7152_v34 = vld [vmem:[%s9783_s3 + $0x2ec] ss:$16 sps:$4 sm:$0xff]  }
 0x1f8   : > { %5009 = vmatprep.subr.bf16.mxu1 %v7086_v36  ;;  %v7147_v36 = vld [vmem:[%s9783_s3 + $0xe8] ss:$16 sps:$4 sm:$0xff]  }
 0x1f9   : > { %4969 = vmatpush1.bf16.msra.mxu0 %v7081_v41  ;;  %v4695_v41 = vrot.slane %v2014_v28, %v4694_v37  ;;  %v7197_v37 = vld [vmem:[%s9783_s3 + $0x1ec] ss:$16 sps:$4 sm:$0xff]  }
 0x1fa   : > { %4970 = vmatprep.subr.bf16.mxu0 %v7089_v49  ;;  %v7155_v49 = vld [vmem:[%s9783_s3 + $0xcc] ss:$16 sps:$4 sm:$0xff]  }
 0x1fb   : > { %5010 = vmatpush1.bf16.msra.mxu1 %v7084_v54  ;;  %v7150_v54 = vld [vmem:[%s9783_s3 + $0x2e8] ss:$16 sps:$4 sm:$0xff]  }
 0x1fc   : > { %5011 = vmatprep.subr.bf16.mxu1 %v7092_v57  ;;  %v4699_v57 = vrot.slane %v2014_v28, %v4698_v27  ;;  %v7200_v28 = vld [vmem:[%s9783_s3 + $0x3ec] ss:$16 sps:$4 sm:$0xff]  }
 0x1fd   : > { %4971 = vmatpush1.bf16.msra.mxu0 %v7087_v59  ;;  %v7203_v27 = vld [vmem:[%s9783_s3 + $0x1cc] ss:$16 sps:$4 sm:$0xff]  }
 0x1fe   : > { %4972 = vmatprep.subr.bf16.mxu0 %v7095_v61  ;;  %v8837_v61 = vcombine.high %v8228_v60, %v8228_v60 }
 0x1ff   : > { %5012 = vmatpush1.bf16.msra.mxu1 %v7090_v50  ;;  %v7158_v50 = vld [vmem:[%s9783_s3 + $0x2cc] ss:$16 sps:$4 sm:$0xff]  }
 0x200   : > { %5013 = vmatprep.subr.bf16.mxu1 %v7098_v52 }
 0x201   : > { %4973 = vmatpush1.bf16.msra.mxu0 %v7093_v58  ;;  %v7153_v58 = vld [vmem:[%s9783_s3 + $0xc8] ss:$16 sps:$4 sm:$0xff]  }
 0x202   : > { %4974 = vmatprep.subr.bf16.mxu0 %v7101_v46 }
 0x203   : > { %5014 = vmatpush1.bf16.msra.mxu1 %v7096_v48 }
 0x204   : > { %5015 = vmatprep.subr.bf16.mxu1 %v7104_v62  ;;  %v7161_v62 = vld [vmem:[%s9783_s3 + $0xac] ss:$16 sps:$4 sm:$0xff]  }
 0x205   : > { %4975 = vmatpush2.bf16.msra.mxu0 %v7099_v40 }
 0x206   : > { %4976 = vmatprep.subr.bf16.mxu0 %v7107_v1 }
 0x207   : > { %5016 = vmatpush2.bf16.msra.mxu1 %v7102_v2 }
 0x208   : > { %5017 = vmatprep.subr.bf16.mxu1 %v7110_v4 }
 0x209   : > { %4977 = vmatpush2.bf16.msra.mxu0 %v7105_v7  ;;  %v7164_v7 = vld [vmem:[%s9783_s3 + $0x2ac] ss:$16 sps:$4 sm:$0xff]  }
 0x20a   : > { %4978 = vmatprep.subr.bf16.mxu0 %v7113_v8 }
 0x20b   : > { %5018 = vmatpush2.bf16.msra.mxu1 %v7108_v9  ;;  %v7159_v9 = vld [vmem:[%s9783_s3 + $0xa8] ss:$16 sps:$4 sm:$0xff]  }
 0x20c   : > { %5019 = vmatprep.subr.bf16.mxu1 %v7116_v10 }
 0x20d   : > { %4979 = vmatpush2.bf16.msra.mxu0 %v7111_v11  ;;  %v7167_v11 = vld [vmem:[%s9783_s3 + $0x8c] ss:$16 sps:$4 sm:$0xff]  }
 0x20e   : > { %4980 = vmatprep.subr.bf16.mxu0 %v7119_v53  ;;  %v7162_v53 = vld [vmem:[%s9783_s3 + $0x2a8] ss:$16 sps:$4 sm:$0xff]  }
 0x20f   : > { %5020 = vmatpush2.bf16.msra.mxu1 %v7114_v12 }
 0x210   : > { %5021 = vmatprep.subr.bf16.mxu1 %v7122_v51  ;;  %v7170_v51 = vld [vmem:[%s9783_s3 + $0x28c] ss:$16 sps:$4 sm:$0xff]  }
 0x211   : > { %4981 = vmatpush2.bf16.msra.mxu0 %v7117_v13  ;;  %v7165_v13 = vld [vmem:[%s9783_s3 + $0x88] ss:$16 sps:$4 sm:$0xff]  }
 0x212   : > { %4982 = vmatprep.subr.bf16.mxu0 %v7125_v14  ;;  %v7173_v14 = vld [vmem:[%s9783_s3 + $0x6c] ss:$16 sps:$4 sm:$0xff]  }
 0x213   : > { %5022 = vmatpush2.bf16.msra.mxu1 %v7120_v15  ;;  %v7168_v15 = vld [vmem:[%s9783_s3 + $0x288] ss:$16 sps:$4 sm:$0xff]  }
 0x214   : > { %5023 = vmatprep.subr.bf16.mxu1 %v7128_v56  ;;  %v7176_v56 = vld [vmem:[%s9783_s3 + $0x26c] ss:$16 sps:$4 sm:$0xff]  }
 0x215   : > { %4983 = vmatpush2.bf16.msra.mxu0 %v7123_v44  ;;  %v7171_v44 = vld [vmem:[%s9783_s3 + $0x68] ss:$16 sps:$4 sm:$0xff]  }
 0x216   : > { %4984 = vmatprep.subr.bf16.mxu0 %v7131_v6  ;;  %v7179_v6 = vld [vmem:[%s9783_s3 + $0x4c] ss:$16 sps:$4 sm:$0xff]  }
 0x217   : > { %5024 = vmatpush2.bf16.msra.mxu1 %v7126_v17  ;;  %v7174_v17 = vld [vmem:[%s9783_s3 + $0x268] ss:$16 sps:$4 sm:$0xff]  }
 0x218   : > { %5025 = vmatprep.subr.bf16.mxu1 %v7134_v25  ;;  %v7182_v25 = vld [vmem:[%s9783_s3 + $0x24c] ss:$16 sps:$4 sm:$0xff]  }
 0x219   : > { %4985 = vmatpush2.bf16.msra.mxu0 %v7129_v21  ;;  %v7177_v21 = vld [vmem:[%s9783_s3 + $0x48] ss:$16 sps:$4 sm:$0xff]  }
 0x21a   : > { %4986 = vmatprep.subr.bf16.mxu0 %v7137_v29  ;;  %v7185_v29 = vld [vmem:[%s9783_s3 + $0x2c] ss:$16 sps:$4 sm:$0xff]  }
 0x21b   : > { %5026 = vmatpush2.bf16.msra.mxu1 %v7132_v31  ;;  %v7180_v31 = vld [vmem:[%s9783_s3 + $0x248] ss:$16 sps:$4 sm:$0xff]  }
 0x21c   : > { %5027 = vmatprep.subr.bf16.mxu1 %v7140_v33  ;;  %v7188_v33 = vld [vmem:[%s9783_s3 + $0x22c] ss:$16 sps:$4 sm:$0xff]  }
 0x21d   : > { %4987 = vmatpush2.bf16.msra.mxu0 %v7135_v35  ;;  %v7183_v35 = vld [vmem:[%s9783_s3 + $0x28] ss:$16 sps:$4 sm:$0xff]  }
 0x21e   : > { %4988 = vmatprep.subr.bf16.mxu0 %v7143_v18  ;;  %v7191_v18 = vld [vmem:[%s9783_s3 + $0xc] ss:$16 sps:$4 sm:$0xff]  }
 0x21f   : > { %5028 = vmatpush2.bf16.msra.mxu1 %v7138_v20  ;;  %v7186_v20 = vld [vmem:[%s9783_s3 + $0x228] ss:$16 sps:$4 sm:$0xff]  }
 0x220   : > { %5029 = vmatprep.subr.bf16.mxu1 %v7146_v22  ;;  %v7194_v22 = vld [vmem:[%s9783_s3 + $0x20c] ss:$16 sps:$4 sm:$0xff]  }
 0x221   : > { %4989 = vmatpush2.bf16.msra.mxu0 %v7141_v24  ;;  %v7189_v24 = vld [vmem:[%s9783_s3 + $0x8] ss:$16 sps:$4 sm:$0xff]  }
 0x222   : > { %5040 = vmatprep.subr.bf16.mxu0 %v7149_v26  ;;  %v7192_v26 = vld [vmem:[%s9783_s3 + $0x208] ss:$16 sps:$4 sm:$0xff]  }
 0x223   : > { %5030 = vmatpush2.bf16.msra.mxu1 %v7144_v32  ;;  %v7195_v32 = vld [vmem:[%s9783_s3 + $0x1e8] ss:$16 sps:$4 sm:$0xff]  }
 0x224   : > { %4991 = vmatmul.mubr.bf16.vlgmr.msra.gmra.mxu0 %v8228_v60  ;;  %v4746_v59 = vpop.f32.mrf.mxu0  ;;  %5081 = vmatprep.subr.bf16.mxu1 %v7152_v34  ;;  %v7198_v34 = vld [vmem:[%s9783_s3 + $0x3e8] ss:$16 sps:$4 sm:$0xff]  }
 0x225   : > { %v4747_v52 = vadd.f32 %v4746_v59, %v4695_v41  ;;  %5041 = vmatpush1.bf16.msra.mxu0 %v7147_v36  ;;  %5072 = vmatprep.mubr.bf16.mxu0 %v8173_v39  ;;  %v7156_v39 = vld [vmem:[%s9783_s3 + $0x2c8] ss:$16 sps:$4 sm:$0xff]   ;;  %v7206_v36 = vld [vmem:[%s9783_s3 + $0x3cc] ss:$16 sps:$4 sm:$0xff]  }
 0x226   : > { %5032 = vmatmul.mubr.bf16.vlgmr.msra.gmra.mxu1 %v8837_v61  ;;  %v4748_v46 = vpop.f32.mrf.mxu0  ;;  %v4787_v48 = vpop.f32.mrf.mxu1  ;;  %5042 = vmatprep.subr.bf16.mxu0 %v7155_v49  ;;  %v7201_v41 = vld [vmem:[%s9783_s3 + $0x1c8] ss:$16 sps:$4 sm:$0xff]   ;;  %v7209_v49 = vld [vmem:[%s9783_s3 + $0x1ac] ss:$16 sps:$4 sm:$0xff]  }
 0x227   : > { %v4749_v40 = vadd.f32 %v4748_v46, %v4699_v57  ;;  %v8850_v1 = vadd.f32 %v4787_v48, %v4747_v52  ;;  %5082 = vmatpush1.bf16.msra.mxu1 %v7150_v54  ;;  %5113 = vmatprep.mubr.bf16.mxu1 %v8190_v43  ;;  %v7204_v54 = vld [vmem:[%s9783_s3 + $0x3c8] ss:$16 sps:$4 sm:$0xff]   ;;  %v7212_v57 = vld [vmem:[%s9783_s3 + $0x3ac] ss:$16 sps:$4 sm:$0xff]  }
 0x228   : > { %v4750_v2 = vpop.f32.mrf.mxu0  ;;  %v4789_v4 = vpop.f32.mrf.mxu1  ;;  %5083 = vmatprep.subr.bf16.mxu1 %v7158_v50  ;;  %v7207_v59 = vld [vmem:[%s9783_s3 + $0x1a8] ss:$16 sps:$4 sm:$0xff]   ;;  %v7215_v50 = vld [vmem:[%s9783_s3 + $0x18c] ss:$16 sps:$4 sm:$0xff]  }
 0x229   : > { %v8859_v8 = vadd.f32 %v4789_v4, %v4749_v40  ;;  %5043 = vmatpush1.bf16.msra.mxu0 %v7153_v58  ;;  %v7210_v52 = vld [vmem:[%s9783_s3 + $0x3a8] ss:$16 sps:$4 sm:$0xff]   ;;  %v7218_v58 = vld [vmem:[%s9783_s3 + $0x38c] ss:$16 sps:$4 sm:$0xff]  }
 0x22a   : > { %v4751_v10 = vpop.f32.mrf.mxu0  ;;  %v4791_v43 = vpop.f32.mrf.mxu1  ;;  %5044 = vmatprep.subr.bf16.mxu0 %v7161_v62  ;;  %v7213_v46 = vld [vmem:[%s9783_s3 + $0x188] ss:$16 sps:$4 sm:$0xff]   ;;  %v7221_v48 = vld [vmem:[%s9783_s3 + $0x16c] ss:$16 sps:$4 sm:$0xff]  }
 0x22b   : > { %5084 = vmatpush1.bf16.msra.mxu1 %v7156_v39  ;;  %v7216_v62 = vld [vmem:[%s9783_s3 + $0x388] ss:$16 sps:$4 sm:$0xff]   ;;  %v7224_v40 = vld [vmem:[%s9783_s3 + $0x36c] ss:$16 sps:$4 sm:$0xff]  }
 0x22c   : > { %v4792_v12 = vpop.f32.mrf.mxu1  ;;  %5085 = vmatprep.subr.bf16.mxu1 %v7164_v7  ;;  %v7219_v39 = vld [vmem:[%s9783_s3 + $0x168] ss:$16 sps:$4 sm:$0xff]   ;;  %v7227_v2 = vld [vmem:[%s9783_s3 + $0x14c] ss:$16 sps:$4 sm:$0xff]  }
 0x22d   : > { %5045 = vmatpush1.bf16.msra.mxu0 %v7159_v9  ;;  %v7222_v4 = vld [vmem:[%s9783_s3 + $0x368] ss:$16 sps:$4 sm:$0xff]   ;;  %v7230_v7 = vld [vmem:[%s9783_s3 + $0x34c] ss:$16 sps:$4 sm:$0xff]  }
 0x22e   : > { %5046 = vmatprep.subr.bf16.mxu0 %v7167_v11  ;;  %v7225_v9 = vld [vmem:[%s9783_s3 + $0x148] ss:$16 sps:$4 sm:$0xff]   ;;  %v7233_v10 = vld [vmem:[%s9783_s3 + $0x12c] ss:$16 sps:$4 sm:$0xff]  }
 0x22f   : > { %5086 = vmatpush1.bf16.msra.mxu1 %v7162_v53  ;;  %v7228_v43 = vld [vmem:[%s9783_s3 + $0x348] ss:$16 sps:$4 sm:$0xff]   ;;  %v7236_v11 = vld [vmem:[%s9783_s3 + $0x32c] ss:$16 sps:$4 sm:$0xff]  }
 0x230   : > { %5087 = vmatprep.subr.bf16.mxu1 %v7170_v51  ;;  %v7231_v53 = vld [vmem:[%s9783_s3 + $0x128] ss:$16 sps:$4 sm:$0xff]   ;;  %v7239_v12 = vld [vmem:[%s9783_s3 + $0x10c] ss:$16 sps:$4 sm:$0xff]  }
 0x231   : > { %5047 = vmatpush1.bf16.msra.mxu0 %v7165_v13  ;;  %v7234_v51 = vld [vmem:[%s9783_s3 + $0x328] ss:$16 sps:$4 sm:$0xff]   ;;  %v7242_v13 = vld [vmem:[%s9783_s3 + $0x30c] ss:$16 sps:$4 sm:$0xff]  }
 0x232   : > { %5048 = vmatprep.subr.bf16.mxu0 %v7173_v14  ;;  %v7237_v14 = vld [vmem:[%s9783_s3 + $0x108] ss:$16 sps:$4 sm:$0xff]  }
 0x233   : > { %5088 = vmatpush1.bf16.msra.mxu1 %v7168_v15  ;;  %v7245_v15 = vld [vmem:[%s9783_s3 + $0x4ec] ss:$16 sps:$4 sm:$0xff]  }
 0x234   : > { %5089 = vmatprep.subr.bf16.mxu1 %v7176_v56  ;;  %v7240_v56 = vld [vmem:[%s9783_s3 + $0x308] ss:$16 sps:$4 sm:$0xff]  }
 0x235   : > { %5049 = vmatpush1.bf16.msra.mxu0 %v7171_v44  ;;  %v7248_v44 = vld [vmem:[%s9783_s3 + $0x6ec] ss:$16 sps:$4 sm:$0xff]  }
 0x236   : > { %5050 = vmatprep.subr.bf16.mxu0 %v7179_v6  ;;  %v7243_v6 = vld [vmem:[%s9783_s3 + $0x4e8] ss:$16 sps:$4 sm:$0xff]  }
 0x237   : > { %5090 = vmatpush1.bf16.msra.mxu1 %v7174_v17  ;;  %v7251_v17 = vld [vmem:[%s9783_s3 + $0x4cc] ss:$16 sps:$4 sm:$0xff]  }
 0x238   : > { %5091 = vmatprep.subr.bf16.mxu1 %v7182_v25  ;;  %v7246_v25 = vld [vmem:[%s9783_s3 + $0x6e8] ss:$16 sps:$4 sm:$0xff]  }
 0x239   : > { %5051 = vmatpush1.bf16.msra.mxu0 %v7177_v21 }
 0x23a   : > { %5052 = vmatprep.subr.bf16.mxu0 %v7185_v29  ;;  %v7254_v29 = vld [vmem:[%s9783_s3 + $0x6cc] ss:$16 sps:$4 sm:$0xff]  }
 0x23b   : > { %5092 = vmatpush1.bf16.msra.mxu1 %v7180_v31 }
 0x23c   : > { %5093 = vmatprep.subr.bf16.mxu1 %v7188_v33  ;;  %v7249_v33 = vld [vmem:[%s9783_s3 + $0x4c8] ss:$16 sps:$4 sm:$0xff]  }
 0x23d   : > { %5053 = vmatpush1.bf16.msra.mxu0 %v7183_v35 }
 0x23e   : > { %5054 = vmatprep.subr.bf16.mxu0 %v7191_v18 }
 0x23f   : > { %5094 = vmatpush1.bf16.msra.mxu1 %v7186_v20 }
 0x240   : > { %5095 = vmatprep.subr.bf16.mxu1 %v7194_v22 }
 0x241   : > { %5055 = vmatpush1.bf16.msra.mxu0 %v7189_v24 }
 0x242   : > { %5056 = vmatprep.subr.bf16.mxu0 %v7197_v37 }
 0x243   : > { %5096 = vmatpush1.bf16.msra.mxu1 %v7192_v26 }
 0x244   : > { %5097 = vmatprep.subr.bf16.mxu1 %v7200_v28  ;;  %v7263_v28 = vld [vmem:[%s9783_s3 + $0x48c] ss:$16 sps:$4 sm:$0xff]  }
 0x245   : > { %5057 = vmatpush2.bf16.msra.mxu0 %v7195_v32  ;;  %v7258_v32 = vld [vmem:[%s9783_s3 + $0x6a8] ss:$16 sps:$4 sm:$0xff]  }
 0x246   : > { %5058 = vmatprep.subr.bf16.mxu0 %v7203_v27 }
 0x247   : > { %5098 = vmatpush2.bf16.msra.mxu1 %v7198_v34  ;;  %v7266_v34 = vld [vmem:[%s9783_s3 + $0x68c] ss:$16 sps:$4 sm:$0xff]  }
 0x248   : > { %5099 = vmatprep.subr.bf16.mxu1 %v7206_v36  ;;  %v7261_v36 = vld [vmem:[%s9783_s3 + $0x488] ss:$16 sps:$4 sm:$0xff]  }
 0x249   : > { %5059 = vmatpush2.bf16.msra.mxu0 %v7201_v41  ;;  %v7269_v41 = vld [vmem:[%s9783_s3 + $0x46c] ss:$16 sps:$4 sm:$0xff]  }
 0x24a   : > { %5060 = vmatprep.subr.bf16.mxu0 %v7209_v49  ;;  %v7264_v49 = vld [vmem:[%s9783_s3 + $0x688] ss:$16 sps:$4 sm:$0xff]  }
 0x24b   : > { %5100 = vmatpush2.bf16.msra.mxu1 %v7204_v54  ;;  %v7272_v54 = vld [vmem:[%s9783_s3 + $0x66c] ss:$16 sps:$4 sm:$0xff]  }
 0x24c   : > { %5101 = vmatprep.subr.bf16.mxu1 %v7212_v57  ;;  %v7267_v57 = vld [vmem:[%s9783_s3 + $0x468] ss:$16 sps:$4 sm:$0xff]  }
 0x24d   : > { %5061 = vmatpush2.bf16.msra.mxu0 %v7207_v59  ;;  %v7275_v59 = vld [vmem:[%s9783_s3 + $0x44c] ss:$16 sps:$4 sm:$0xff]  }
 0x24e   : > { %5062 = vmatprep.subr.bf16.mxu0 %v7215_v50  ;;  %v7270_v50 = vld [vmem:[%s9783_s3 + $0x668] ss:$16 sps:$4 sm:$0xff]  }
 0x24f   : > { %5102 = vmatpush2.bf16.msra.mxu1 %v7210_v52  ;;  %v7278_v52 = vld [vmem:[%s9783_s3 + $0x64c] ss:$16 sps:$4 sm:$0xff]  }
 0x250   : > { %5103 = vmatprep.subr.bf16.mxu1 %v7218_v58  ;;  %v7273_v58 = vld [vmem:[%s9783_s3 + $0x448] ss:$16 sps:$4 sm:$0xff]  }
 0x251   : > { %5063 = vmatpush2.bf16.msra.mxu0 %v7213_v46  ;;  %v7281_v46 = vld [vmem:[%s9783_s3 + $0x42c] ss:$16 sps:$4 sm:$0xff]  }
 0x252   : > { %5064 = vmatprep.subr.bf16.mxu0 %v7221_v48  ;;  %v7276_v48 = vld [vmem:[%s9783_s3 + $0x648] ss:$16 sps:$4 sm:$0xff]  }
 0x253   : > { %5104 = vmatpush2.bf16.msra.mxu1 %v7216_v62  ;;  %v7284_v62 = vld [vmem:[%s9783_s3 + $0x62c] ss:$16 sps:$4 sm:$0xff]  }
 0x254   : > { %5105 = vmatprep.subr.bf16.mxu1 %v7224_v40  ;;  %v7279_v40 = vld [vmem:[%s9783_s3 + $0x428] ss:$16 sps:$4 sm:$0xff]  }
 0x255   : > { %5065 = vmatpush2.bf16.msra.mxu0 %v7219_v39  ;;  %v7287_v39 = vld [vmem:[%s9783_s3 + $0x40c] ss:$16 sps:$4 sm:$0xff]  }
 0x256   : > { %5066 = vmatprep.subr.bf16.mxu0 %v7227_v2  ;;  %v7282_v2 = vld [vmem:[%s9783_s3 + $0x628] ss:$16 sps:$4 sm:$0xff]  }
 0x257   : > { %5106 = vmatpush2.bf16.msra.mxu1 %v7222_v4  ;;  %v7290_v4 = vld [vmem:[%s9783_s3 + $0x60c] ss:$16 sps:$4 sm:$0xff]  }
 0x258   : > { %5107 = vmatprep.subr.bf16.mxu1 %v7230_v7  ;;  %v7285_v7 = vld [vmem:[%s9783_s3 + $0x408] ss:$16 sps:$4 sm:$0xff]  }
 0x259   : > { %5067 = vmatpush2.bf16.msra.mxu0 %v7225_v9  ;;  %v7293_v9 = vld [vmem:[%s9783_s3 + $0x5ec] ss:$16 sps:$4 sm:$0xff]  }
 0x25a   : > { %5068 = vmatprep.subr.bf16.mxu0 %v7233_v10  ;;  %v7288_v10 = vld [vmem:[%s9783_s3 + $0x608] ss:$16 sps:$4 sm:$0xff]  }
 0x25b   : > { %5108 = vmatpush2.bf16.msra.mxu1 %v7228_v43  ;;  %v7296_v43 = vld [vmem:[%s9783_s3 + $0x7ec] ss:$16 sps:$4 sm:$0xff]  }
 0x25c   : > { %5109 = vmatprep.subr.bf16.mxu1 %v7236_v11  ;;  %v7291_v11 = vld [vmem:[%s9783_s3 + $0x5e8] ss:$16 sps:$4 sm:$0xff]  }
 0x25d   : > { %5069 = vmatpush2.bf16.msra.mxu0 %v7231_v53  ;;  %v7299_v53 = vld [vmem:[%s9783_s3 + $0x5cc] ss:$16 sps:$4 sm:$0xff]  }
 0x25e   : > { %5070 = vmatprep.subr.bf16.mxu0 %v7239_v12  ;;  %v7294_v12 = vld [vmem:[%s9783_s3 + $0x7e8] ss:$16 sps:$4 sm:$0xff]  }
 0x25f   : > { %5110 = vmatpush2.bf16.msra.mxu1 %v7234_v51  ;;  %v7302_v51 = vld [vmem:[%s9783_s3 + $0x7cc] ss:$16 sps:$4 sm:$0xff]  }
 0x260   : > { %5111 = vmatprep.subr.bf16.mxu1 %v7242_v13  ;;  %v7297_v13 = vld [vmem:[%s9783_s3 + $0x5c8] ss:$16 sps:$4 sm:$0xff]  }
 0x261   : > { %5071 = vmatpush2.bf16.msra.mxu0 %v7237_v14  ;;  %v7305_v14 = vld [vmem:[%s9783_s3 + $0x5ac] ss:$16 sps:$4 sm:$0xff]  }
 0x262   : > { %5122 = vmatprep.subr.bf16.mxu0 %v7245_v15  ;;  %v7300_v15 = vld [vmem:[%s9783_s3 + $0x7c8] ss:$16 sps:$4 sm:$0xff]  }
 0x263   : > { %5112 = vmatpush2.bf16.msra.mxu1 %v7240_v56  ;;  %v7308_v56 = vld [vmem:[%s9783_s3 + $0x7ac] ss:$16 sps:$4 sm:$0xff]  }
 0x264   : > { %v4828_v21 = vpop.f32.mrf.mxu0  ;;  %5073 = vmatmul.mubr.bf16.vlgmr.msra.gmra.mxu0 %v8170_v30  ;;  %5163 = vmatprep.subr.bf16.mxu1 %v7248_v44  ;;  %v7257_v30 = vld [vmem:[%s9783_s3 + $0x4ac] ss:$16 sps:$4 sm:$0xff]   ;;  %v7303_v44 = vld [vmem:[%s9783_s3 + $0x5a8] ss:$16 sps:$4 sm:$0xff]  }
 0x265   : > { %v4829_v31 = vadd.f32 %v4828_v21, %v8850_v1  ;;  %5123 = vmatpush1.bf16.msra.mxu0 %v7243_v6  ;;  %5154 = vmatprep.mubr.bf16.mxu0 %v8193_v45  ;;  %v7252_v45 = vld [vmem:[%s9783_s3 + $0x6c8] ss:$16 sps:$4 sm:$0xff]   ;;  %v7311_v6 = vld [vmem:[%s9783_s3 + $0x58c] ss:$16 sps:$4 sm:$0xff]  }
 0x266   : > { %v4830_v35 = vpop.f32.mrf.mxu0  ;;  %v4869_v18 = vpop.f32.mrf.mxu1  ;;  %5114 = vmatmul.mubr.bf16.vlgmr.msra.gmra.mxu1 %v8198_v47  ;;  %5124 = vmatprep.subr.bf16.mxu0 %v7251_v17  ;;  %v7260_v47 = vld [vmem:[%s9783_s3 + $0x6ac] ss:$16 sps:$4 sm:$0xff]   ;;  %v7306_v17 = vld [vmem:[%s9783_s3 + $0x7a8] ss:$16 sps:$4 sm:$0xff]  }
 0x267   : > { %v4831_v20 = vadd.f32 %v4830_v35, %v8859_v8  ;;  %v9052_v22 = vadd.f32 %v4869_v18, %v4829_v31  ;;  %5164 = vmatpush1.bf16.msra.mxu1 %v7246_v25  ;;  %5195 = vmatprep.mubr.bf16.mxu1 %v8216_v55  ;;  %v7255_v8 = vld [vmem:[%s9783_s3 + $0x4a8] ss:$16 sps:$4 sm:$0xff]   ;;  %v7314_v25 = vld [vmem:[%s9783_s3 + $0x78c] ss:$16 sps:$4 sm:$0xff]  }
 0x268   : > { %v4832_v1 = vpop.f32.mrf.mxu0  ;;  %v4871_v24 = vpop.f32.mrf.mxu1  ;;  %5165 = vmatprep.subr.bf16.mxu1 %v7254_v29  ;;  %v7309_v21 = vld [vmem:[%s9783_s3 + $0x588] ss:$16 sps:$4 sm:$0xff]   ;;  %v7317_v29 = vld [vmem:[%s9783_s3 + $0x56c] ss:$16 sps:$4 sm:$0xff]  }
 0x269   : > { %v9061_v37 = vadd.f32 %v4871_v24, %v4831_v20  ;;  %5125 = vmatpush1.bf16.msra.mxu0 %v7249_v33  ;;  %v7312_v31 = vld [vmem:[%s9783_s3 + $0x788] ss:$16 sps:$4 sm:$0xff]   ;;  %v7320_v33 = vld [vmem:[%s9783_s3 + $0x76c] ss:$16 sps:$4 sm:$0xff]  }
 0x26a   : > { %v4833_v26 = vpop.f32.mrf.mxu0  ;;  %v4873_v55 = vpop.f32.mrf.mxu1  ;;  %5126 = vmatprep.subr.bf16.mxu0 %v7257_v30  ;;  %v7315_v35 = vld [vmem:[%s9783_s3 + $0x568] ss:$16 sps:$4 sm:$0xff]   ;;  %v7323_v18 = vld [vmem:[%s9783_s3 + $0x54c] ss:$16 sps:$4 sm:$0xff]  }
 0x26b   : > { %5166 = vmatpush1.bf16.msra.mxu1 %v7252_v45  ;;  %v7318_v30 = vld [vmem:[%s9783_s3 + $0x768] ss:$16 sps:$4 sm:$0xff]   ;;  %v7326_v20 = vld [vmem:[%s9783_s3 + $0x74c] ss:$16 sps:$4 sm:$0xff]  }
 0x26c   : > { %v4874_v27 = vpop.f32.mrf.mxu1  ;;  %5167 = vmatprep.subr.bf16.mxu1 %v7260_v47  ;;  %v7321_v45 = vld [vmem:[%s9783_s3 + $0x548] ss:$16 sps:$4 sm:$0xff]   ;;  %v7329_v1 = vld [vmem:[%s9783_s3 + $0x52c] ss:$16 sps:$4 sm:$0xff]  }
 0x26d   : > { %5127 = vmatpush1.bf16.msra.mxu0 %v7255_v8  ;;  %v7324_v24 = vld [vmem:[%s9783_s3 + $0x748] ss:$16 sps:$4 sm:$0xff]   ;;  %v7332_v47 = vld [vmem:[%s9783_s3 + $0x72c] ss:$16 sps:$4 sm:$0xff]  }
 0x26e   : > { %5128 = vmatprep.subr.bf16.mxu0 %v7263_v28  ;;  %v7327_v8 = vld [vmem:[%s9783_s3 + $0x528] ss:$16 sps:$4 sm:$0xff]   ;;  %v7335_v26 = vld [vmem:[%s9783_s3 + $0x50c] ss:$16 sps:$4 sm:$0xff]  }
 0x26f   : > { %5168 = vmatpush1.bf16.msra.mxu1 %v7258_v32  ;;  %v7330_v55 = vld [vmem:[%s9783_s3 + $0x728] ss:$16 sps:$4 sm:$0xff]   ;;  %v7338_v28 = vld [vmem:[%s9783_s3 + $0x70c] ss:$16 sps:$4 sm:$0xff]  }
 0x270   : > { %5169 = vmatprep.subr.bf16.mxu1 %v7266_v34  ;;  %v7333_v32 = vld [vmem:[%s9783_s3 + $0x508] ss:$16 sps:$4 sm:$0xff]   ;;  %v7341_v27 = vld [vmem:[%s9783_s3 + $0x8ec] ss:$16 sps:$4 sm:$0xff]  }
 0x271   : > { %5129 = vmatpush1.bf16.msra.mxu0 %v7261_v36  ;;  %v7336_v34 = vld [vmem:[%s9783_s3 + $0x708] ss:$16 sps:$4 sm:$0xff]   ;;  %v7344_v36 = vld [vmem:[%s9783_s3 + $0xaec] ss:$16 sps:$4 sm:$0xff]  }
 0x272   : > { %5130 = vmatprep.subr.bf16.mxu0 %v7269_v41  ;;  %v7339_v41 = vld [vmem:[%s9783_s3 + $0x8e8] ss:$16 sps:$4 sm:$0xff]  }
 0x273   : > { %5170 = vmatpush1.bf16.msra.mxu1 %v7264_v49  ;;  %v7347_v49 = vld [vmem:[%s9783_s3 + $0x8cc] ss:$16 sps:$4 sm:$0xff]  }
 0x274   : > { %5171 = vmatprep.subr.bf16.mxu1 %v7272_v54  ;;  %v7342_v54 = vld [vmem:[%s9783_s3 + $0xae8] ss:$16 sps:$4 sm:$0xff]  }
 0x275   : > { %5131 = vmatpush1.bf16.msra.mxu0 %v7267_v57 }
 0x276   : > { %5132 = vmatprep.subr.bf16.mxu0 %v7275_v59  ;;  %v7350_v59 = vld [vmem:[%s9783_s3 + $0xacc] ss:$16 sps:$4 sm:$0xff]  }
 0x277   : > { %5172 = vmatpush1.bf16.msra.mxu1 %v7270_v50 }
 0x278   : > { %5173 = vmatprep.subr.bf16.mxu1 %v7278_v52  ;;  %v7345_v52 = vld [vmem:[%s9783_s3 + $0x8c8] ss:$16 sps:$4 sm:$0xff]  }
 0x279   : > { %5133 = vmatpush1.bf16.msra.mxu0 %v7273_v58 }
 0x27a   : > { %5134 = vmatprep.subr.bf16.mxu0 %v7281_v46 }
 0x27b   : > { %5174 = vmatpush1.bf16.msra.mxu1 %v7276_v48 }
 0x27c   : > { %5175 = vmatprep.subr.bf16.mxu1 %v7284_v62 }
 0x27d   : > { %5135 = vmatpush1.bf16.msra.mxu0 %v7279_v40 }
 0x27e   : > { %5136 = vmatprep.subr.bf16.mxu0 %v7287_v39 }
 0x27f   : > { %5176 = vmatpush1.bf16.msra.mxu1 %v7282_v2 }
 0x280   : > { %5177 = vmatprep.subr.bf16.mxu1 %v7290_v4  ;;  %v7359_v4 = vld [vmem:[%s9783_s3 + $0x88c] ss:$16 sps:$4 sm:$0xff]  }
 0x281   : > { %5137 = vmatpush1.bf16.msra.mxu0 %v7285_v7  ;;  %v7354_v7 = vld [vmem:[%s9783_s3 + $0xaa8] ss:$16 sps:$4 sm:$0xff]  }
 0x282   : > { %5138 = vmatprep.subr.bf16.mxu0 %v7293_v9 }
 0x283   : > { %5178 = vmatpush1.bf16.msra.mxu1 %v7288_v10  ;;  %v7362_v10 = vld [vmem:[%s9783_s3 + $0xa8c] ss:$16 sps:$4 sm:$0xff]  }
 0x284   : > { %5179 = vmatprep.subr.bf16.mxu1 %v7296_v43  ;;  %v7357_v43 = vld [vmem:[%s9783_s3 + $0x888] ss:$16 sps:$4 sm:$0xff]  }
 0x285   : > { %5139 = vmatpush2.bf16.msra.mxu0 %v7291_v11  ;;  %v7365_v11 = vld [vmem:[%s9783_s3 + $0x86c] ss:$16 sps:$4 sm:$0xff]  }
 0x286   : > { %5140 = vmatprep.subr.bf16.mxu0 %v7299_v53  ;;  %v7360_v53 = vld [vmem:[%s9783_s3 + $0xa88] ss:$16 sps:$4 sm:$0xff]  }
 0x287   : > { %5180 = vmatpush2.bf16.msra.mxu1 %v7294_v12  ;;  %v7368_v12 = vld [vmem:[%s9783_s3 + $0xa6c] ss:$16 sps:$4 sm:$0xff]  }
 0x288   : > { %5181 = vmatprep.subr.bf16.mxu1 %v7302_v51  ;;  %v7363_v51 = vld [vmem:[%s9783_s3 + $0x868] ss:$16 sps:$4 sm:$0xff]  }
 0x289   : > { %5141 = vmatpush2.bf16.msra.mxu0 %v7297_v13  ;;  %v7371_v13 = vld [vmem:[%s9783_s3 + $0x84c] ss:$16 sps:$4 sm:$0xff]  }
 0x28a   : > { %5142 = vmatprep.subr.bf16.mxu0 %v7305_v14  ;;  %v7366_v14 = vld [vmem:[%s9783_s3 + $0xa68] ss:$16 sps:$4 sm:$0xff]  }
 0x28b   : > { %5182 = vmatpush2.bf16.msra.mxu1 %v7300_v15  ;;  %v7374_v15 = vld [vmem:[%s9783_s3 + $0xa4c] ss:$16 sps:$4 sm:$0xff]  }
 0x28c   : > { %5183 = vmatprep.subr.bf16.mxu1 %v7308_v56  ;;  %v7369_v56 = vld [vmem:[%s9783_s3 + $0x848] ss:$16 sps:$4 sm:$0xff]  }
 0x28d   : > { %5143 = vmatpush2.bf16.msra.mxu0 %v7303_v44  ;;  %v7377_v44 = vld [vmem:[%s9783_s3 + $0x82c] ss:$16 sps:$4 sm:$0xff]  }
 0x28e   : > { %5144 = vmatprep.subr.bf16.mxu0 %v7311_v6  ;;  %v7372_v6 = vld [vmem:[%s9783_s3 + $0xa48] ss:$16 sps:$4 sm:$0xff]  }
 0x28f   : > { %5184 = vmatpush2.bf16.msra.mxu1 %v7306_v17  ;;  %v7380_v17 = vld [vmem:[%s9783_s3 + $0xa2c] ss:$16 sps:$4 sm:$0xff]  }
 0x290   : > { %5185 = vmatprep.subr.bf16.mxu1 %v7314_v25  ;;  %v7375_v25 = vld [vmem:[%s9783_s3 + $0x828] ss:$16 sps:$4 sm:$0xff]  }
 0x291   : > { %5145 = vmatpush2.bf16.msra.mxu0 %v7309_v21  ;;  %v7383_v21 = vld [vmem:[%s9783_s3 + $0x80c] ss:$16 sps:$4 sm:$0xff]  }
 0x292   : > { %5146 = vmatprep.subr.bf16.mxu0 %v7317_v29  ;;  %v7378_v29 = vld [vmem:[%s9783_s3 + $0xa28] ss:$16 sps:$4 sm:$0xff]  }
 0x293   : > { %5186 = vmatpush2.bf16.msra.mxu1 %v7312_v31  ;;  %v7386_v31 = vld [vmem:[%s9783_s3 + $0xa0c] ss:$16 sps:$4 sm:$0xff]  }
 0x294   : > { %5187 = vmatprep.subr.bf16.mxu1 %v7320_v33  ;;  %v7381_v33 = vld [vmem:[%s9783_s3 + $0x808] ss:$16 sps:$4 sm:$0xff]  }
 0x295   : > { %5147 = vmatpush2.bf16.msra.mxu0 %v7315_v35  ;;  %v7389_v35 = vld [vmem:[%s9783_s3 + $0x9ec] ss:$16 sps:$4 sm:$0xff]  }
 0x296   : > { %5148 = vmatprep.subr.bf16.mxu0 %v7323_v18  ;;  %v7384_v18 = vld [vmem:[%s9783_s3 + $0xa08] ss:$16 sps:$4 sm:$0xff]  }
 0x297   : > { %5188 = vmatpush2.bf16.msra.mxu1 %v7318_v30  ;;  %v7392_v30 = vld [vmem:[%s9783_s3 + $0xbec] ss:$16 sps:$4 sm:$0xff]  }
 0x298   : > { %5189 = vmatprep.subr.bf16.mxu1 %v7326_v20  ;;  %v7387_v20 = vld [vmem:[%s9783_s3 + $0x9e8] ss:$16 sps:$4 sm:$0xff]  }
 0x299   : > { %5149 = vmatpush2.bf16.msra.mxu0 %v7321_v45  ;;  %v7395_v45 = vld [vmem:[%s9783_s3 + $0x9cc] ss:$16 sps:$4 sm:$0xff]  }
 0x29a   : > { %5150 = vmatprep.subr.bf16.mxu0 %v7329_v1  ;;  %v7390_v1 = vld [vmem:[%s9783_s3 + $0xbe8] ss:$16 sps:$4 sm:$0xff]  }
 0x29b   : > { %5190 = vmatpush2.bf16.msra.mxu1 %v7324_v24  ;;  %v7398_v24 = vld [vmem:[%s9783_s3 + $0xbcc] ss:$16 sps:$4 sm:$0xff]  }
 0x29c   : > { %5191 = vmatprep.subr.bf16.mxu1 %v7332_v47  ;;  %v7393_v47 = vld [vmem:[%s9783_s3 + $0x9c8] ss:$16 sps:$4 sm:$0xff]  }
 0x29d   : > { %5151 = vmatpush2.bf16.msra.mxu0 %v7327_v8  ;;  %v7401_v8 = vld [vmem:[%s9783_s3 + $0x9ac] ss:$16 sps:$4 sm:$0xff]  }
 0x29e   : > { %5152 = vmatprep.subr.bf16.mxu0 %v7335_v26  ;;  %v7396_v26 = vld [vmem:[%s9783_s3 + $0xbc8] ss:$16 sps:$4 sm:$0xff]  }
 0x29f   : > { %5192 = vmatpush2.bf16.msra.mxu1 %v7330_v55  ;;  %v7404_v55 = vld [vmem:[%s9783_s3 + $0xbac] ss:$16 sps:$4 sm:$0xff]  }
 0x2a0   : > { %5193 = vmatprep.subr.bf16.mxu1 %v7338_v28  ;;  %v7399_v28 = vld [vmem:[%s9783_s3 + $0x9a8] ss:$16 sps:$4 sm:$0xff]  }
 0x2a1   : > { %5153 = vmatpush2.bf16.msra.mxu0 %v7333_v32  ;;  %v7407_v32 = vld [vmem:[%s9783_s3 + $0x98c] ss:$16 sps:$4 sm:$0xff]  }
 0x2a2   : > { %5204 = vmatprep.subr.bf16.mxu0 %v7341_v27  ;;  %v7402_v27 = vld [vmem:[%s9783_s3 + $0xba8] ss:$16 sps:$4 sm:$0xff]  }
 0x2a3   : > { %5194 = vmatpush2.bf16.msra.mxu1 %v7336_v34  ;;  %v7410_v34 = vld [vmem:[%s9783_s3 + $0xb8c] ss:$16 sps:$4 sm:$0xff]  }
 0x2a4   : > { %v4910_v57 = vpop.f32.mrf.mxu0  ;;  %5155 = vmatmul.mubr.bf16.vlgmr.msra.gmra.mxu0 %v8182_v38  ;;  %5245 = vmatprep.subr.bf16.mxu1 %v7344_v36  ;;  %v7353_v38 = vld [vmem:[%s9783_s3 + $0x8ac] ss:$16 sps:$4 sm:$0xff]   ;;  %v7405_v36 = vld [vmem:[%s9783_s3 + $0x988] ss:$16 sps:$4 sm:$0xff]  }
 0x2a5   : > { %v4911_v50 = vadd.f32 %v4910_v57, %v9052_v22  ;;  %5205 = vmatpush1.bf16.msra.mxu0 %v7339_v41  ;;  %5236 = vmatprep.mubr.bf16.mxu0 %v8408_v63  ;;  %v7348_v63 = vld [vmem:[%s9783_s3 + $0xac8] ss:$16 sps:$4 sm:$0xff]   ;;  %v7413_v41 = vld [vmem:[%s9783_s3 + $0x96c] ss:$16 sps:$4 sm:$0xff]  }
 0x2a6   : > { %v4912_v58 = vpop.f32.mrf.mxu0  ;;  %v4951_v46 = vpop.f32.mrf.mxu1  ;;  %5196 = vmatmul.mubr.bf16.vlgmr.msra.gmra.mxu1 %v8419_v3  ;;  %5206 = vmatprep.subr.bf16.mxu0 %v7347_v49  ;;  %v7356_v3 = vld [vmem:[%s9783_s3 + $0xaac] ss:$16 sps:$4 sm:$0xff]   ;;  %v7408_v49 = vld [vmem:[%s9783_s3 + $0xb88] ss:$16 sps:$4 sm:$0xff]  }
 0x2a7   : > { %v4913_v48 = vadd.f32 %v4912_v58, %v9061_v37  ;;  %v9254_v62 = vadd.f32 %v4951_v46, %v4911_v50  ;;  %5246 = vmatpush1.bf16.msra.mxu1 %v7342_v54  ;;  %5277 = vmatprep.mubr.bf16.mxu1 %v8427_v5  ;;  %v7351_v37 = vld [vmem:[%s9783_s3 + $0x8a8] ss:$16 sps:$4 sm:$0xff]   ;;  %v7416_v54 = vld [vmem:[%s9783_s3 + $0xb6c] ss:$16 sps:$4 sm:$0xff]  }
 0x2a8   : > { %v4914_v22 = vpop.f32.mrf.mxu0  ;;  %v4953_v40 = vpop.f32.mrf.mxu1  ;;  %5247 = vmatprep.subr.bf16.mxu1 %v7350_v59  ;;  %v7411_v57 = vld [vmem:[%s9783_s3 + $0x968] ss:$16 sps:$4 sm:$0xff]   ;;  %v7419_v59 = vld [vmem:[%s9783_s3 + $0x94c] ss:$16 sps:$4 sm:$0xff]  }
 0x2a9   : > { %v9263_v39 = vadd.f32 %v4953_v40, %v4913_v48  ;;  %5207 = vmatpush1.bf16.msra.mxu0 %v7345_v52  ;;  %v7414_v50 = vld [vmem:[%s9783_s3 + $0xb68] ss:$16 sps:$4 sm:$0xff]   ;;  %v7422_v52 = vld [vmem:[%s9783_s3 + $0xb4c] ss:$16 sps:$4 sm:$0xff]  }
 0x2aa   : > { %v4915_v2 = vpop.f32.mrf.mxu0  ;;  %v4955_v5 = vpop.f32.mrf.mxu1  ;;  %5208 = vmatprep.subr.bf16.mxu0 %v7353_v38  ;;  %v7417_v58 = vld [vmem:[%s9783_s3 + $0x948] ss:$16 sps:$4 sm:$0xff]   ;;  %v7425_v46 = vld [vmem:[%s9783_s3 + $0x92c] ss:$16 sps:$4 sm:$0xff]  }
 0x2ab   : > { %5248 = vmatpush1.bf16.msra.mxu1 %v7348_v63  ;;  %v7420_v38 = vld [vmem:[%s9783_s3 + $0xb48] ss:$16 sps:$4 sm:$0xff]   ;;  %v7428_v48 = vld [vmem:[%s9783_s3 + $0xb2c] ss:$16 sps:$4 sm:$0xff]  }
 0x2ac   : > { %v4956_v9 = vpop.f32.mrf.mxu1  ;;  %5249 = vmatprep.subr.bf16.mxu1 %v7356_v3  ;;  %v7423_v63 = vld [vmem:[%s9783_s3 + $0x928] ss:$16 sps:$4 sm:$0xff]   ;;  %v7431_v22 = vld [vmem:[%s9783_s3 + $0x90c] ss:$16 sps:$4 sm:$0xff]  }
 0x2ad   : > { %5209 = vmatpush1.bf16.msra.mxu0 %v7351_v37  ;;  %v7426_v40 = vld [vmem:[%s9783_s3 + $0xb28] ss:$16 sps:$4 sm:$0xff]   ;;  %v7434_v3 = vld [vmem:[%s9783_s3 + $0xb0c] ss:$16 sps:$4 sm:$0xff]  }
 0x2ae   : > { %5210 = vmatprep.subr.bf16.mxu0 %v7359_v4  ;;  %v7429_v37 = vld [vmem:[%s9783_s3 + $0x908] ss:$16 sps:$4 sm:$0xff]   ;;  %v7437_v2 = vld [vmem:[%s9783_s3 + $0xcec] ss:$16 sps:$4 sm:$0xff]  }
 0x2af   : > { %5250 = vmatpush1.bf16.msra.mxu1 %v7354_v7  ;;  %v7432_v5 = vld [vmem:[%s9783_s3 + $0xb08] ss:$16 sps:$4 sm:$0xff]   ;;  %v7440_v4 = vld [vmem:[%s9783_s3 + $0xeec] ss:$16 sps:$4 sm:$0xff]  }
 0x2b0   : > { %5251 = vmatprep.subr.bf16.mxu1 %v7362_v10  ;;  %v7435_v7 = vld [vmem:[%s9783_s3 + $0xce8] ss:$16 sps:$4 sm:$0xff]   ;;  %v7443_v9 = vld [vmem:[%s9783_s3 + $0xccc] ss:$16 sps:$4 sm:$0xff]  }
 0x2b1   : > { %5211 = vmatpush1.bf16.msra.mxu0 %v7357_v43  ;;  %v7438_v10 = vld [vmem:[%s9783_s3 + $0xee8] ss:$16 sps:$4 sm:$0xff]  }
 0x2b2   : > { %5212 = vmatprep.subr.bf16.mxu0 %v7365_v11  ;;  %v7446_v11 = vld [vmem:[%s9783_s3 + $0xecc] ss:$16 sps:$4 sm:$0xff]  }
 0x2b3   : > { %5252 = vmatpush1.bf16.msra.mxu1 %v7360_v53 }
 0x2b4   : > { %5253 = vmatprep.subr.bf16.mxu1 %v7368_v12  ;;  %v7441_v12 = vld [vmem:[%s9783_s3 + $0xcc8] ss:$16 sps:$4 sm:$0xff]  }
 0x2b5   : > { %5213 = vmatpush1.bf16.msra.mxu0 %v7363_v51 }
 0x2b6   : > { %5214 = vmatprep.subr.bf16.mxu0 %v7371_v13 }
 0x2b7   : > { %5254 = vmatpush1.bf16.msra.mxu1 %v7366_v14 }
 0x2b8   : > { %5255 = vmatprep.subr.bf16.mxu1 %v7374_v15 }
 0x2b9   : > { %5215 = vmatpush1.bf16.msra.mxu0 %v7369_v56  ;;  %v7447_v56 = vld [vmem:[%s9783_s3 + $0xca8] ss:$16 sps:$4 sm:$0xff]  }
 0x2ba   : > { %5216 = vmatprep.subr.bf16.mxu0 %v7377_v44 }
 0x2bb   : > { %5256 = vmatpush1.bf16.msra.mxu1 %v7372_v6 }
 0x2bc   : > { %5257 = vmatprep.subr.bf16.mxu1 %v7380_v17  ;;  %v7450_v17 = vld [vmem:[%s9783_s3 + $0xea8] ss:$16 sps:$4 sm:$0xff]  }
 0x2bd   : > { %5217 = vmatpush1.bf16.msra.mxu0 %v7375_v25 }
 0x2be   : > { %5218 = vmatprep.subr.bf16.mxu0 %v7383_v21  ;;  %v7458_v21 = vld [vmem:[%s9783_s3 + $0xe8c] ss:$16 sps:$4 sm:$0xff]  }
 0x2bf   : > { %5258 = vmatpush1.bf16.msra.mxu1 %v7378_v29  ;;  %v7453_v29 = vld [vmem:[%s9783_s3 + $0xc88] ss:$16 sps:$4 sm:$0xff]  }
 0x2c0   : > { %5259 = vmatprep.subr.bf16.mxu1 %v7386_v31  ;;  %v7461_v31 = vld [vmem:[%s9783_s3 + $0xc6c] ss:$16 sps:$4 sm:$0xff]  }
 0x2c1   : > { %5219 = vmatpush1.bf16.msra.mxu0 %v7381_v33  ;;  %v7456_v33 = vld [vmem:[%s9783_s3 + $0xe88] ss:$16 sps:$4 sm:$0xff]  }
 0x2c2   : > { %5220 = vmatprep.subr.bf16.mxu0 %v7389_v35  ;;  %v7464_v35 = vld [vmem:[%s9783_s3 + $0xe6c] ss:$16 sps:$4 sm:$0xff]  }
 0x2c3   : > { %5260 = vmatpush1.bf16.msra.mxu1 %v7384_v18  ;;  %v7459_v18 = vld [vmem:[%s9783_s3 + $0xc68] ss:$16 sps:$4 sm:$0xff]  }
 0x2c4   : > { %5261 = vmatprep.subr.bf16.mxu1 %v7392_v30  ;;  %v7467_v30 = vld [vmem:[%s9783_s3 + $0xc4c] ss:$16 sps:$4 sm:$0xff]  }
 0x2c5   : > { %5221 = vmatpush2.bf16.msra.mxu0 %v7387_v20  ;;  %v7462_v20 = vld [vmem:[%s9783_s3 + $0xe68] ss:$16 sps:$4 sm:$0xff]  }
 0x2c6   : > { %5222 = vmatprep.subr.bf16.mxu0 %v7395_v45  ;;  %v7470_v45 = vld [vmem:[%s9783_s3 + $0xe4c] ss:$16 sps:$4 sm:$0xff]  }
 0x2c7   : > { %5262 = vmatpush2.bf16.msra.mxu1 %v7390_v1  ;;  %v7465_v1 = vld [vmem:[%s9783_s3 + $0xc48] ss:$16 sps:$4 sm:$0xff]  }
 0x2c8   : > { %5263 = vmatprep.subr.bf16.mxu1 %v7398_v24  ;;  %v7473_v24 = vld [vmem:[%s9783_s3 + $0xc2c] ss:$16 sps:$4 sm:$0xff]  }
 0x2c9   : > { %5223 = vmatpush2.bf16.msra.mxu0 %v7393_v47  ;;  %v7468_v47 = vld [vmem:[%s9783_s3 + $0xe48] ss:$16 sps:$4 sm:$0xff]  }
 0x2ca   : > { %5224 = vmatprep.subr.bf16.mxu0 %v7401_v8  ;;  %v7476_v8 = vld [vmem:[%s9783_s3 + $0xe2c] ss:$16 sps:$4 sm:$0xff]  }
 0x2cb   : > { %5264 = vmatpush2.bf16.msra.mxu1 %v7396_v26  ;;  %v7471_v26 = vld [vmem:[%s9783_s3 + $0xc28] ss:$16 sps:$4 sm:$0xff]  }
 0x2cc   : > { %5265 = vmatprep.subr.bf16.mxu1 %v7404_v55  ;;  %v7479_v55 = vld [vmem:[%s9783_s3 + $0xc0c] ss:$16 sps:$4 sm:$0xff]  }
 0x2cd   : > { %5225 = vmatpush2.bf16.msra.mxu0 %v7399_v28  ;;  %v7474_v28 = vld [vmem:[%s9783_s3 + $0xe28] ss:$16 sps:$4 sm:$0xff]  }
 0x2ce   : > { %5226 = vmatprep.subr.bf16.mxu0 %v7407_v32  ;;  %v7482_v32 = vld [vmem:[%s9783_s3 + $0xe0c] ss:$16 sps:$4 sm:$0xff]  }
 0x2cf   : > { %5266 = vmatpush2.bf16.msra.mxu1 %v7402_v27  ;;  %v7477_v27 = vld [vmem:[%s9783_s3 + $0xc08] ss:$16 sps:$4 sm:$0xff]  }
 0x2d0   : > { %5267 = vmatprep.subr.bf16.mxu1 %v7410_v34  ;;  %v7485_v34 = vld [vmem:[%s9783_s3 + $0xdec] ss:$16 sps:$4 sm:$0xff]  }
 0x2d1   : > { %5227 = vmatpush2.bf16.msra.mxu0 %v7405_v36  ;;  %v7480_v36 = vld [vmem:[%s9783_s3 + $0xe08] ss:$16 sps:$4 sm:$0xff]  }
 0x2d2   : > { %5228 = vmatprep.subr.bf16.mxu0 %v7413_v41  ;;  %v7488_v41 = vld [vmem:[%s9783_s3 + $0xfec] ss:$16 sps:$4 sm:$0xff]  }
 0x2d3   : > { %5268 = vmatpush2.bf16.msra.mxu1 %v7408_v49  ;;  %v7483_v49 = vld [vmem:[%s9783_s3 + $0xde8] ss:$16 sps:$4 sm:$0xff]  }
 0x2d4   : > { %5269 = vmatprep.subr.bf16.mxu1 %v7416_v54  ;;  %v7491_v54 = vld [vmem:[%s9783_s3 + $0xdcc] ss:$16 sps:$4 sm:$0xff]  }
 0x2d5   : > { %5229 = vmatpush2.bf16.msra.mxu0 %v7411_v57  ;;  %v7486_v57 = vld [vmem:[%s9783_s3 + $0xfe8] ss:$16 sps:$4 sm:$0xff]  }
 0x2d6   : > { %5230 = vmatprep.subr.bf16.mxu0 %v7419_v59  ;;  %v7494_v59 = vld [vmem:[%s9783_s3 + $0xfcc] ss:$16 sps:$4 sm:$0xff]  }
 0x2d7   : > { %5270 = vmatpush2.bf16.msra.mxu1 %v7414_v50  ;;  %v7489_v50 = vld [vmem:[%s9783_s3 + $0xdc8] ss:$16 sps:$4 sm:$0xff]  }
 0x2d8   : > { %5271 = vmatprep.subr.bf16.mxu1 %v7422_v52  ;;  %v7497_v52 = vld [vmem:[%s9783_s3 + $0xdac] ss:$16 sps:$4 sm:$0xff]  }
 0x2d9   : > { %5231 = vmatpush2.bf16.msra.mxu0 %v7417_v58  ;;  %v7492_v58 = vld [vmem:[%s9783_s3 + $0xfc8] ss:$16 sps:$4 sm:$0xff]  }
 0x2da   : > { %5232 = vmatprep.subr.bf16.mxu0 %v7425_v46  ;;  %v7500_v46 = vld [vmem:[%s9783_s3 + $0xfac] ss:$16 sps:$4 sm:$0xff]  }
 0x2db   : > { %5272 = vmatpush2.bf16.msra.mxu1 %v7420_v38  ;;  %v7495_v38 = vld [vmem:[%s9783_s3 + $0xda8] ss:$16 sps:$4 sm:$0xff]  }
 0x2dc   : > { %5273 = vmatprep.subr.bf16.mxu1 %v7428_v48  ;;  %v7503_v48 = vld [vmem:[%s9783_s3 + $0xd8c] ss:$16 sps:$4 sm:$0xff]  }
 0x2dd   : > { %5233 = vmatpush2.bf16.msra.mxu0 %v7423_v63  ;;  %v7498_v63 = vld [vmem:[%s9783_s3 + $0xfa8] ss:$16 sps:$4 sm:$0xff]  }
 0x2de   : > { %5234 = vmatprep.subr.bf16.mxu0 %v7431_v22  ;;  %v7506_v22 = vld [vmem:[%s9783_s3 + $0xf8c] ss:$16 sps:$4 sm:$0xff]  }
 0x2df   : > { %5274 = vmatpush2.bf16.msra.mxu1 %v7426_v40  ;;  %v7501_v40 = vld [vmem:[%s9783_s3 + $0xd88] ss:$16 sps:$4 sm:$0xff]  }
 0x2e0   : > { %5275 = vmatprep.subr.bf16.mxu1 %v7434_v3  ;;  %v7509_v3 = vld [vmem:[%s9783_s3 + $0xd6c] ss:$16 sps:$4 sm:$0xff]  }
 0x2e1   : > { %5235 = vmatpush2.bf16.msra.mxu0 %v7429_v37  ;;  %v7504_v37 = vld [vmem:[%s9783_s3 + $0xf88] ss:$16 sps:$4 sm:$0xff]  }
 0x2e2   : > { %5286 = vmatprep.subr.bf16.mxu0 %v7437_v2  ;;  %v7512_v2 = vld [vmem:[%s9783_s3 + $0xf6c] ss:$16 sps:$4 sm:$0xff]  }
 0x2e3   : > { %5276 = vmatpush2.bf16.msra.mxu1 %v7432_v5  ;;  %v7507_v5 = vld [vmem:[%s9783_s3 + $0xd68] ss:$16 sps:$4 sm:$0xff]  }
 0x2e4   : > { %v4992_v43 = vpop.f32.mrf.mxu0  ;;  %5237 = vmatmul.mubr.bf16.vlgmr.msra.gmra.mxu0 %v8205_v42  ;;  %5327 = vmatprep.subr.bf16.mxu1 %v7440_v4  ;;  %v7449_v42 = vld [vmem:[%s9783_s3 + $0xcac] ss:$16 sps:$4 sm:$0xff]  }
 0x2e5   : > { %v4993_v53 = vadd.f32 %v4992_v43, %v9254_v62  ;;  %5287 = vmatpush1.bf16.msra.mxu0 %v7435_v7  ;;  %5318 = vmatprep.mubr.bf16.mxu0 %v8617_v16  ;;  %v7444_v16 = vld [vmem:[%s9783_s3 + $0xec8] ss:$16 sps:$4 sm:$0xff]   ;;  %v7515_v4 = vld [vmem:[%s9783_s3 + $0xd4c] ss:$16 sps:$4 sm:$0xff]  }
 0x2e6   : > { %v9451_v51 = vpop.f32.mrf.mxu0  ;;  %v5033_v13 = vpop.f32.mrf.mxu1  ;;  %5278 = vmatmul.mubr.bf16.vlgmr.msra.gmra.mxu1 %v8628_v0  ;;  %5288 = vmatprep.subr.bf16.mxu0 %v7443_v9  ;;  %v7452_v0 = vld [vmem:[%s9783_s3 + $0xeac] ss:$16 sps:$4 sm:$0xff]   ;;  %v7510_v7 = vld [vmem:[%s9783_s3 + $0xf68] ss:$16 sps:$4 sm:$0xff]  }
 0x2e7   : > { %v9457_v14 = vadd.f32 %v5033_v13, %v4993_v53  ;;  %5328 = vmatpush1.bf16.msra.mxu1 %v7438_v10  ;;  %5359 = vmatprep.mubr.bf16.mxu1 %v8636_v19  ;;  %v7455_v19 = vld [vmem:[%s9783_s3 + $0xc8c] ss:$16 sps:$4 sm:$0xff]   ;;  %v7513_v10 = vld [vmem:[%s9783_s3 + $0xd48] ss:$16 sps:$4 sm:$0xff]  }
 0x2e8   : > { %v4996_v62 = vpop.f32.mrf.mxu0  ;;  %v9463_v15 = vpop.f32.mrf.mxu1  ;;  %5329 = vmatprep.subr.bf16.mxu1 %v7446_v11  ;;  %v7518_v9 = vld [vmem:[%s9783_s3 + $0xf4c] ss:$16 sps:$4 sm:$0xff]   ;;  %v4995_v11 = vadd.f32 %v9451_v51, %v9263_v39  ;;  %v7516_v53 = vld [vmem:[%s9783_s3 + $0xf48] ss:$16 sps:$4 sm:$0xff]  }
 0x2e9   : > { %5289 = vmatpush1.bf16.msra.mxu0 %v7441_v12  ;;  %v7521_v43 = vld [vmem:[%s9783_s3 + $0xd2c] ss:$16 sps:$4 sm:$0xff]   ;;  %v7519_v13 = vld [vmem:[%s9783_s3 + $0xd28] ss:$16 sps:$4 sm:$0xff]  }
 0x2ea   : > { %v4997_v44 = vpop.f32.mrf.mxu0  ;;  %v5037_v6 = vpop.f32.mrf.mxu1  ;;  %5290 = vmatprep.subr.bf16.mxu0 %v7449_v42  ;;  %v7524_v12 = vld [vmem:[%s9783_s3 + $0xf2c] ss:$16 sps:$4 sm:$0xff]   ;;  %v5036_v51 = vadd.f32 %v9463_v15, %v4995_v11  ;;  %v7522_v42 = vld [vmem:[%s9783_s3 + $0xf28] ss:$16 sps:$4 sm:$0xff]  }
 0x2eb   : > { %5330 = vmatpush1.bf16.msra.mxu1 %v7444_v16  ;;  %v7527_v39 = vld [vmem:[%s9783_s3 + $0xd0c] ss:$16 sps:$4 sm:$0xff]   ;;  %v7525_v62 = vld [vmem:[%s9783_s3 + $0xd08] ss:$16 sps:$4 sm:$0xff]   ;;  %v4706_v6 = vsub.s32 3, %v8115_v23 }
 0x2ec   : > { %v5038_v25 = vpop.f32.mrf.mxu1  ;;  %5331 = vmatprep.subr.bf16.mxu1 %v7452_v0  ;;  %v7530_v16 = vld [vmem:[%s9783_s3 + $0xf0c] ss:$16 sps:$4 sm:$0xff]   ;;  %v4702_v0 = vsub.s32 2, %v8115_v23  ;;  %v7528_v44 = vld [vmem:[%s9783_s3 + $0xf08] ss:$16 sps:$4 sm:$0xff]  }
 0x2ed   : > { %5291 = vmatpush1.bf16.msra.mxu0 %v7447_v56  ;;  %v7531_v15 = vld [vmem:[%s9785_s5 + $0x78] sm:$0xff]   ;;  %v5369_v56 = vmax.f32 %v5036_v51, 0.0 }
 0x2ee   : > { %5292 = vmatprep.subr.bf16.mxu0 %v7455_v19  ;;  %v7563_v19 = vld [vmem:[%s9784_s4] sm:$0xf]  ;;  %v7532_v25 = vld [vmem:[%s9785_s5 + $0x38] sm:$0xff]  }
 0x2ef   : > { %5332 = vmatpush1.bf16.msra.mxu1 %v7450_v17  ;;  %v4703_v17 = vrot.slane %v7563_v19, %v4702_v0  ;;  %v7561_v0 = vld [vmem:[%s9785_s5 + $0xc0] sm:$0xff]  }
 0x2f0   : > { %5333 = vmatprep.subr.bf16.mxu1 %v7458_v21  ;;  %v7533_v21 = vld [vmem:[%s9785_s5 + $0x70] sm:$0xff]  }
 0x2f1   : > { %5293 = vmatpush1.bf16.msra.mxu0 %v7453_v29  ;;  %v5373_v29 = vpack.c.bf16 %v5369_v56, %v5369_v56 }
 0x2f2   : > { %5294 = vmatprep.subr.bf16.mxu0 %v7461_v31  ;;  %v4707_v31 = vrot.slane %v7563_v19, %v4706_v6 }
 0x2f3   : > { %5334 = vmatpush1.bf16.msra.mxu1 %v7456_v33 }
 0x2f4   : > { %5335 = vmatprep.subr.bf16.mxu1 %v7464_v35  ;;  %v7534_v35 = vld [vmem:[%s9785_s5 + $0x30] sm:$0xff]  }
 0x2f5   : > { %5295 = vmatpush1.bf16.msra.mxu0 %v7459_v18 }
 0x2f6   : > { %5296 = vmatprep.subr.bf16.mxu0 %v7467_v30 }
 0x2f7   : > { %5336 = vmatpush1.bf16.msra.mxu1 %v7462_v20  ;;  %v7535_v20 = vld [vmem:[%s9785_s5 + $0x68] sm:$0xff]  }
 0x2f8   : > { %5337 = vmatprep.subr.bf16.mxu1 %v7470_v45 }
 0x2f9   : > { %5297 = vmatpush1.bf16.msra.mxu0 %v7465_v1 }
 0x2fa   : > { %5298 = vmatprep.subr.bf16.mxu0 %v7473_v24 }
 0x2fb   : > { %5338 = vmatpush1.bf16.msra.mxu1 %v7468_v47 }
 0x2fc   : > { %5339 = vmatprep.subr.bf16.mxu1 %v7476_v8  ;;  %v7536_v8 = vld [vmem:[%s9785_s5 + $0x28] sm:$0xff]  }
 0x2fd   : > { %5299 = vmatpush1.bf16.msra.mxu0 %v7471_v26 }
 0x2fe   : > { %5300 = vmatprep.subr.bf16.mxu0 %v7479_v55 }
 0x2ff   : > { %5340 = vmatpush1.bf16.msra.mxu1 %v7474_v28 }
 0x300   : > { %5341 = vmatprep.subr.bf16.mxu1 %v7482_v32  ;;  %v7547_v32 = vld [vmem:[%s9785_s5 + $0xf8] sm:$0xff]  }
 0x301   : > { %5301 = vmatpush1.bf16.msra.mxu0 %v7477_v27  ;;  %v7548_v27 = vld [vmem:[%s9785_s5 + $0xb8] sm:$0xff]  }
 0x302   : > { %5302 = vmatprep.subr.bf16.mxu0 %v7485_v34  ;;  %v7549_v34 = vld [vmem:[%s9785_s5 + $0xf0] sm:$0xff]  }
 0x303   : > { %5342 = vmatpush1.bf16.msra.mxu1 %v7480_v36  ;;  %v7538_v36 = vld [vmem:[%s9785_s5 + $0x20] sm:$0xff]  }
 0x304   : > { %5343 = vmatprep.subr.bf16.mxu1 %v7488_v41  ;;  %v7539_v41 = vld [vmem:[%s9785_s5 + $0x58] sm:$0xff]  }
 0x305   : > { %5303 = vmatpush2.bf16.msra.mxu0 %v7483_v49  ;;  %v7550_v49 = vld [vmem:[%s9785_s5 + $0xb0] sm:$0xff]  }
 0x306   : > { %5304 = vmatprep.subr.bf16.mxu0 %v7491_v54  ;;  %v7551_v54 = vld [vmem:[%s9785_s5 + $0xe8] sm:$0xff]  }
 0x307   : > { %5344 = vmatpush2.bf16.msra.mxu1 %v7486_v57  ;;  %v7540_v57 = vld [vmem:[%s9785_s5 + $0x18] sm:$0xff]  }
 0x308   : > { %5345 = vmatprep.subr.bf16.mxu1 %v7494_v59  ;;  %v7541_v59 = vld [vmem:[%s9785_s5 + $0x50] sm:$0xff]  }
 0x309   : > { %5305 = vmatpush2.bf16.msra.mxu0 %v7489_v50  ;;  %v7552_v50 = vld [vmem:[%s9785_s5 + $0xa8] sm:$0xff]  }
 0x30a   : > { %5306 = vmatprep.subr.bf16.mxu0 %v7497_v52  ;;  %v7553_v52 = vld [vmem:[%s9785_s5 + $0xe0] sm:$0xff]  }
 0x30b   : > { %5346 = vmatpush2.bf16.msra.mxu1 %v7492_v58  ;;  %v7542_v58 = vld [vmem:[%s9785_s5 + $0x10] sm:$0xff]  }
 0x30c   : > { %5347 = vmatprep.subr.bf16.mxu1 %v7500_v46  ;;  %v7543_v46 = vld [vmem:[%s9785_s5 + $0x48] sm:$0xff]  }
 0x30d   : > { %5307 = vmatpush2.bf16.msra.mxu0 %v7495_v38  ;;  %v7554_v38 = vld [vmem:[%s9785_s5 + $0xa0] sm:$0xff]  }
 0x30e   : > { %5308 = vmatprep.subr.bf16.mxu0 %v7503_v48  ;;  %v7555_v48 = vld [vmem:[%s9785_s5 + $0xd8] sm:$0xff]  }
 0x30f   : > { %5348 = vmatpush2.bf16.msra.mxu1 %v7498_v63  ;;  %v7544_v63 = vld [vmem:[%s9785_s5 + $0x8] sm:$0xff]  }
 0x310   : > { %5349 = vmatprep.subr.bf16.mxu1 %v7506_v22  ;;  %v7545_v22 = vld [vmem:[%s9785_s5 + $0x40] sm:$0xff]  }
 0x311   : > { %5309 = vmatpush2.bf16.msra.mxu0 %v7501_v40  ;;  %v7556_v40 = vld [vmem:[%s9785_s5 + $0x98] sm:$0xff]  }
 0x312   : > { %5310 = vmatprep.subr.bf16.mxu0 %v7509_v3  ;;  %v7546_v3 = vld [vmem:[%s9785_s5] sm:$0xff]  }
 0x313   : > { %5350 = vmatpush2.bf16.msra.mxu1 %v7504_v37  ;;  %v5368_v37 = vmax.f32 %v9457_v14, 0.0 }
 0x314   : > { %5351 = vmatprep.subr.bf16.mxu1 %v7512_v2 }
 0x315   : > { %5311 = vmatpush2.bf16.msra.mxu0 %v7507_v5  ;;  %v5372_v2 = vpack.c.bf16 %v5368_v37, %v5368_v37 }
 0x316   : > { %5312 = vmatprep.subr.bf16.mxu0 %v7515_v4 }
 0x317   : > { %5352 = vmatpush2.bf16.msra.mxu1 %v7510_v7  ;;  %v7557_v7 = vld [vmem:[%s9785_s5 + $0xd0] sm:$0xff]  }
 0x318   : > { %5353 = vmatprep.subr.bf16.mxu1 %v7518_v9  ;;  %v7558_v9 = vld [vmem:[%s9785_s5 + $0x90] sm:$0xff]  }
 0x319   : > { %5313 = vmatpush2.bf16.msra.mxu0 %v7513_v10 }
 0x31a   : > { %5314 = vmatprep.subr.bf16.mxu0 %v7521_v43 }
 0x31b   : > { %5354 = vmatpush2.bf16.msra.mxu1 %v7516_v53 }
 0x31c   : > { %5355 = vmatprep.subr.bf16.mxu1 %v7524_v12 }
 0x31d   : > { %5315 = vmatpush2.bf16.msra.mxu0 %v7519_v13 }
 0x31e   : > { %5316 = vmatprep.subr.bf16.mxu0 %v7527_v39 }
 0x31f   : > { %5356 = vmatpush2.bf16.msra.mxu1 %v7522_v42  ;;  %v7559_v42 = vld [vmem:[%s9785_s5 + $0xc8] sm:$0xff]  }
 0x320   : > { %5357 = vmatprep.subr.bf16.mxu1 %v7530_v16 }
 0x321   : > { %5317 = vmatpush2.bf16.msra.mxu0 %v7525_v62  ;;  %v7560_v62 = vld [vmem:[%s9785_s5 + $0x88] sm:$0xff]  }
 0x322   : > { %6574 = vmatprep.subr.bf16.mxu0 %v7531_v15  ;;  %v7562_v15 = vld [vmem:[%s9785_s5 + $0x80] sm:$0xff]  }
 0x323   : > { %5358 = vmatpush2.bf16.msra.mxu1 %v7528_v44 }
 0x324   : > { %v5074_v23 = vpop.f32.mrf.mxu0  ;;  %5319 = vmatmul.mubr.bf16.vlgmr.msra.gmra.mxu0 %v8228_v60  ;;  %6596 = vmatprep.subr.bf16.mxu1 %v7547_v32 }
 0x325   : > { %v5075_v33 = vadd.f32 %v5074_v23, %v4703_v17  ;;  %6575 = vmatpush3.bf16.msra.mxu0 %v7532_v25  ;;  %5665 = vmatprep.mubr.bf16.mxu0 %v5373_v29 }
 0x326   : > { %v5076_v18 = vpop.f32.mrf.mxu0  ;;  %v5115_v30 = vpop.f32.mrf.mxu1  ;;  %5360 = vmatmul.mubr.bf16.vlgmr.msra.gmra.mxu1 %v8837_v61  ;;  %6576 = vmatprep.subr.bf16.mxu0 %v7533_v21  ;;  %v7537_v61 = vld [vmem:[%s9785_s5 + $0x60] sm:$0xff]  }
 0x327   : > { %v5077_v45 = vadd.f32 %v5076_v18, %v4707_v31  ;;  %v5116_v1 = vadd.f32 %v5115_v30, %v5075_v33  ;;  %6597 = vmatpush3.bf16.msra.mxu1 %v7548_v27 }
 0x328   : > { %v5078_v24 = vpop.f32.mrf.mxu0  ;;  %v5117_v60 = vpop.f32.mrf.mxu1  ;;  %6598 = vmatprep.subr.bf16.mxu1 %v7549_v34 }
 0x329   : > { %v5118_v47 = vadd.f32 %v5117_v60, %v5077_v45  ;;  %6577 = vmatpush3.bf16.msra.mxu0 %v7534_v35 }
 0x32a   : > { %v5079_v26 = vpop.f32.mrf.mxu0  ;;  %v5119_v55 = vpop.f32.mrf.mxu1  ;;  %6578 = vmatprep.subr.bf16.mxu0 %v7535_v20 }
 0x32b   : > { %6599 = vmatpush3.bf16.msra.mxu1 %v7550_v49 }
 0x32c   : > { %v5120_v28 = vpop.f32.mrf.mxu1  ;;  %6600 = vmatprep.subr.bf16.mxu1 %v7551_v54 }
 0x32d   : > { %6579 = vmatpush3.bf16.msra.mxu0 %v7536_v8 }
 0x32e   : > { %6580 = vmatprep.subr.bf16.mxu0 %v7537_v61 }
 0x32f   : > { %6601 = vmatpush3.bf16.msra.mxu1 %v7552_v50 }
 0x330   : > { %6602 = vmatprep.subr.bf16.mxu1 %v7553_v52 }
 0x331   : > { %6581 = vmatpush3.bf16.msra.mxu0 %v7538_v36 }
 0x332   : > { %6582 = vmatprep.subr.bf16.mxu0 %v7539_v41 }
 0x333   : > { %6603 = vmatpush3.bf16.msra.mxu1 %v7554_v38 }
 0x334   : > { %6604 = vmatprep.subr.bf16.mxu1 %v7555_v48 }
 0x335   : > { %6583 = vmatpush3.bf16.msra.mxu0 %v7540_v57 }
 0x336   : > { %6584 = vmatprep.subr.bf16.mxu0 %v7541_v59  ;;  %v5440_v59 = vld [vmem:[%s9786_s6] sm:$0x1] }
 0x337   : > { %6605 = vmatpush3.bf16.msra.mxu1 %v7556_v40 }
 0x338   : > { %6606 = vmatprep.subr.bf16.mxu1 %v7557_v7 }
 0x339   : > { %6585 = vmatpush3.bf16.msra.mxu0 %v7542_v58 }
 0x33a   : > { %6586 = vmatprep.subr.bf16.mxu0 %v7543_v46 }
 0x33b   : > { %6607 = vmatpush3.bf16.msra.mxu1 %v7558_v9 }
 0x33c   : > { %6608 = vmatprep.subr.bf16.mxu1 %v7559_v42 }
 0x33d   : > { %6587 = vmatpush3.bf16.msra.mxu0 %v7544_v63 }
 0x33e   : > { %6588 = vmatprep.subr.bf16.mxu0 %v7545_v22 }
 0x33f   : > { %6609 = vmatpush3.bf16.msra.mxu1 %v7560_v62 }
 0x340   : > { %6610 = vmatprep.subr.bf16.mxu1 %v7561_v0 }
 0x341   : > { %6589 = vmatpush3.bf16.msra.mxu0 %v7546_v3 }
 0x343   : > { %6611 = vmatpush3.bf16.msra.mxu1 %v7562_v15 }
 0x344   : > { %5666 = vmatmul.mubr.bf16.vlgmr.msra.gmra.mxu0 %v5372_v2 }
 0x364   : > { %v5156_v5 = vpop.f32.mrf.mxu0 }
 0x365   : > { %v5157_v4 = vadd.f32 %v5156_v5, %v5116_v1 }
 0x366   : > { %v5158_v10 = vpop.f32.mrf.mxu0  ;;  %v5197_v43 = vpop.f32.mrf.mxu1 }
 0x367   : > { %v5159_v11 = vadd.f32 %v5158_v10, %v5118_v47  ;;  %v5198_v53 = vadd.f32 %v5197_v43, %v5157_v4 }
 0x368   : > { %v5160_v14 = vpop.f32.mrf.mxu0  ;;  %v5199_v12 = vpop.f32.mrf.mxu1 }
 0x369   : > { %v5200_v13 = vadd.f32 %v5199_v12, %v5159_v11 }
 0x36a   : > { %v5161_v39 = vpop.f32.mrf.mxu0  ;;  %v5201_v51 = vpop.f32.mrf.mxu1 }
 0x36c   : > { %v5202_v16 = vpop.f32.mrf.mxu1 }
 0x3a4   : > { %v5238_v56 = vpop.f32.mrf.mxu0 }
 0x3a5   : > { %v5239_v31 = vadd.f32 %v5238_v56, %v5198_v53 }
 0x3a6   : > { %v5240_v44 = vpop.f32.mrf.mxu0  ;;  %v5279_v6 = vpop.f32.mrf.mxu1 }
 0x3a7   : > { %v5241_v23 = vadd.f32 %v5240_v44, %v5200_v13  ;;  %v5280_v33 = vadd.f32 %v5279_v6, %v5239_v31 }
 0x3a8   : > { %v5242_v19 = vpop.f32.mrf.mxu0  ;;  %v5281_v17 = vpop.f32.mrf.mxu1 }
 0x3a9   : > { %v5282_v18 = vadd.f32 %v5281_v17, %v5241_v23 }
 0x3aa   : > { %v5243_v25 = vpop.f32.mrf.mxu0  ;;  %v5283_v21 = vpop.f32.mrf.mxu1 }
 0x3ac   : > { %v5284_v29 = vpop.f32.mrf.mxu1 }
 0x3e4   : > { %v5320_v35 = vpop.f32.mrf.mxu0 }
 0x3e5   : > { %v5321_v30 = vadd.f32 %v5320_v35, %v5280_v33 }
 0x3e6   : > { %v5322_v20 = vpop.f32.mrf.mxu0  ;;  %v5361_v45 = vpop.f32.mrf.mxu1 }
 0x3e7   : > { %v5323_v1 = vadd.f32 %v5322_v20, %v5282_v18  ;;  %v5362_v24 = vadd.f32 %v5361_v45, %v5321_v30 }
 0x3e8   : > { %v5324_v60 = vpop.f32.mrf.mxu0  ;;  %v5363_v47 = vpop.f32.mrf.mxu1 }
 0x3e9   : > { %v5364_v8 = vadd.f32 %v5363_v47, %v5323_v1  ;;  %v5370_v26 = vmax.f32 %v5362_v24, 0.0 }
 0x3ea   : > { %v5325_v55 = vpop.f32.mrf.mxu0  ;;  %v5365_v61 = vpop.f32.mrf.mxu1 }
 0x3eb   : > { %v5371_v28 = vmax.f32 %v5364_v8, 0.0  ;;  %v5374_v34 = vpack.c.bf16 %v5370_v26, %v5370_v26 }
 0x3ec   : > { %v5366_v32 = vpop.f32.mrf.mxu1 }
 0x3ed   : > { %v5375_v27 = vpack.c.bf16 %v5371_v28, %v5371_v28 }
 0x3ef   : > { %5705 = vmatprep.mubr.bf16.mxu1 %v5375_v27 }
 0x3f0   : > { %5706 = vmatmul.mubr.bf16.vlgmr.msra.gmra.mxu1 %v5374_v34 }
 0x404   : > { %v6590_v36 = vpop.f32.mrf.mxu0 }
 0x406   : > { %v6591_v41 = vpop.f32.mrf.mxu0 }
 0x407   : > { %v6592_v49 = vadd.f32 %v6591_v41, %v6590_v36 }
 0x408   : > { %v6593_v54 = vpop.f32.mrf.mxu0 }
 0x409   : > { %v5668_v58 = vadd.f32 %v6592_v49, %v5440_v59 }
 0x40a   : > { %v6594_v57 = vpop.f32.mrf.mxu0 }
 0x4b0   : > { %v6612_v50 = vpop.f32.mrf.mxu1 }
 0x4b2   : > { %v6613_v52 = vpop.f32.mrf.mxu1 }
 0x4b3   : > { %v6614_v46 = vadd.f32 %v6613_v52, %v6612_v50 }
 0x4b4   : > { %v6615_v38 = vpop.f32.mrf.mxu1 }
 0x4b5   : > { %v5708_v48 = vadd.f32 %v6614_v46, %v5668_v58 }
 0x4b6   : > { %v6616_v63 = vpop.f32.mrf.mxu1 }
 0x4b7   : > { %5713 = vst [vmem:[%s270_s16] sm:$0x1] %v5708_v48 }
 0x4b8   : > { %7577 = shalt.err (!%p7574_p3)
}
 0x4b9   : > { %s7578_s22 = scalar_lea.hbm %s9745_s18, 16  ;;  %s7582_s14 = scalar_lea.hbm %s9787_s7, 32 }
 0x4ba   : > { %p7579_p4 = scmp.ne.s32.totalorder %s9745_s18, %s7578_s22  ;;  %p7583_p9 = scmp.lt.s32.totalorder %s9745_s18, %s9787_s7 }
 0x4bb   : > { %p7584_p10 = scmp.lt.s32.totalorder %s7582_s14, %s7578_s22 }
 0x4bc   : > { %p7580_p7 = pnand %p7579_p4, %p7706_p5 }
 0x4bd   : > { %p7585_p11 = por %p7584_p10, %p7583_p9 }
 0x4be   : > { %p7581_p8 = pneg %p7580_p7 }
 0x4c0   : > { %p7586_p12 = pnand %p7585_p11, %p7581_p8 }
 0x4c2   : > { %7589 = shalt.err (!%p7586_p12)
}
 0x4c3   : > { %6631 = dma.vmem_to_hbm [thread:$0]  (%p7706_p5), %s5728_s17, 16, %s9745_s18, %s5715_s20  }
 0x4c4 PF: > { %p6637_p13 = scmp.ge.s32.totalorder %s7624_s27, 2  ;;  %s5739_s19 = sand.u32 1, %s7612_s24  }
 0x4c5   : > { %s5740_s13 = scalar_lea.sflag [#allocation5], %s5739_s19 }
 0x4c6   : > { %p6634_p0 = pnand %p6637_p13, %p7710_p6 }
 0x4c8   : > { %p6635_p1 = pneg %p6634_p0 }
 0x4ca   : > { %7607 = dma.done.wait (%p6635_p1), %s5740_s13, 16  }
 0x4cb   : > { %7609 = vsyncadd (%p6635_p1), %s5740_s13, 4294967280  ;;  %p17_p2 = scmp.ge.s32.totalorder %s7693_s30, 4   ;;  %s9792_s24 = smov %s7616_s25 }
 0x4cc   : > { %s9793_s25 = smov %s7620_s26  ;;  %s9794_s26 = smov %s7704_s10 }
 0x4cd   : > { %s9795_s27 = smov %s7693_s30  ;;  %19 = sbr.rel (!%p17_p2) target bundleno = 3 (0x3), region = 83 }
 0x4d2   :  { %5744 = vsyncpa [#allocation5], 1 }
 0x4d3   :  { %5746 = vsyncpa [#allocation5 + $0x1], 1 }

</bundles_post_ra>
